<compile_context>
chip_gen: v6e
topology: v6e:2x2x1
jax: 0.10.0
libtpu: 0.0.40
codegen_flags: <defaults>
</compile_context>

<pallas_src>
import functools

import jax
import jax.numpy as jnp
import numpy as np
from jax.experimental import pallas as pl
from jax.experimental.pallas import tpu as pltpu


# ----------------------------- helpers ---------------------------------------

def _make_divisible(v, divisor, min_value=None):
    if min_value is None:
        min_value = divisor
    new_v = max(min_value, int(v + divisor / 2) // divisor * divisor)
    if new_v < 0.9 * v:
        new_v += divisor
    return new_v


def hardswish(x):
    return x * jnp.clip(x + 3.0, 0.0, 6.0) * (1.0 / 6.0)


def fold_bn(w, b, gamma, beta, mean, var, eps):
    """Fold eval-mode BatchNorm into conv weight (out-channels on LAST axis) + bias."""
    scale = gamma / jnp.sqrt(var + eps)
    return w * scale, (b - mean) * scale + beta


# --------------- cached numpy constants (built once per shape) ----------------

@functools.lru_cache(maxsize=None)
def _ca_constants(H, W):
    """Mean-pool + lane-broadcast matrices for one (H, W) image (f32 numpy)."""
    HW = H * W
    hh = np.arange(HW) // W
    ww = np.arange(HW) % W
    oh_h = (hh[:, None] == np.arange(H)[None, :]).astype(np.float32)   # (HW, H)
    oh_w = (ww[:, None] == np.arange(W)[None, :]).astype(np.float32)   # (HW, W)
    pool = np.concatenate([oh_h / W, oh_w / H], axis=1)                # (HW, H+W)
    return pool, oh_h.T.copy(), oh_w.T.copy()                          # (H,HW),(W,HW)


@functools.lru_cache(maxsize=None)
def _dw_tap_masks(H, W, nb):
    """0/1 border masks per 3x3 tap, tiled over nb images: (9, nb*H*W) f32."""
    HW = H * W
    pos = np.arange(HW)
    hh = pos // W
    ww = pos % W
    masks = np.empty((9, HW), np.float32)
    for kh in (-1, 0, 1):
        for kw in (-1, 0, 1):
            tap = (kh + 1) * 3 + (kw + 1)
            valid = (hh >= -kh) & (hh < H - kh) & (ww >= -kw) & (ww < W - kw)
            masks[tap] = valid.astype(np.float32)
    return np.tile(masks, (1, nb))


def _pick_nb(N, max_nb=4):
    """Images per grid step: keep grid length >= 2 (v7x megacore) and NB small."""
    best = 1
    for nb in range(1, min(N, max_nb) + 1):
        if N % nb == 0 and (N // nb >= 2 or (N == 1 and nb == 1)):
            best = nb
    return best


# ----------------------------- Pallas kernel ----------------------------------

def inverted_res_kernel(x_ref,          # (Cin, L)        f32
                        w_exp_ref,      # (Cexp, Cin)     bf16
                        dw_ref,         # (9, Cexp, L)    f32  border-masked tap weights
                        w_ca1_ref,      # (mip, Cexp)     bf16
                        w_cahw_ref,     # (2*Cexp, mip)   bf16  [conv_h ; conv_w]
                        w_proj_ref,     # (Cout, Cexp)    bf16
                        biases_ref,     # (4*Cexp+mip+Cout, 1) f32  stacked biases
                        pool_ref,       # (HW, H+W)       bf16
                        bh_ref,         # (H, HW)         bf16
                        bw_ref,         # (W, HW)         bf16
                        o_ref,          # (Cout, L)       f32
                        *, H, W, NB, Cexp, mip, Cout, use_res):
    HW = H * W
    L = NB * HW
    f32, bf16 = jnp.float32, jnp.bfloat16

    # stacked-bias static offsets
    o_exp, o_dw, o_ca1 = 0, Cexp, 2 * Cexp
    o_cah, o_caw, o_proj = 2 * Cexp + mip, 3 * Cexp + mip, 4 * Cexp + mip

    x = x_ref[...]                                                     # (Cin, L)

    # 1) expand 1x1 + BN + Hardswish  (bf16 MXU, f32 accumulate/elementwise)
    h1 = jnp.dot(w_exp_ref[...], x.astype(bf16),
                 preferred_element_type=f32) + biases_ref[o_exp:o_exp + Cexp]
    h1 = hardswish(h1)                                                 # (Cexp, L)

    # 2) depthwise 3x3, stride 1, pad 1 (+BN +HS):
    #    XLU lane rolls * precomputed border-masked per-tap weights (VPU).
    acc = h1 * dw_ref[4]                                               # centre tap
    for kh in (-1, 0, 1):
        for kw in (-1, 0, 1):
            if kh == 0 and kw == 0:
                continue
            d = kh * W + kw                            # out[p] needs in[p + d]
            tap = (kh + 1) * 3 + (kw + 1)
            acc = acc + pltpu.roll(h1, shift=(-d) % L, axis=1) * dw_ref[tap]
    h2 = hardswish(acc + biases_ref[o_dw:o_dw + Cexp])                 # (Cexp, L)

    # 3) Coordinate Attention: per-image static slices, fused conv_h/conv_w.
    b_ca1 = biases_ref[o_ca1:o_ca1 + mip]
    b_cah = biases_ref[o_cah:o_cah + Cexp]
    b_caw = biases_ref[o_caw:o_caw + Cexp]
    att_parts = []
    for i in range(NB):
        h2_i = h2[:, i * HW:(i + 1) * HW]                              # (Cexp, HW)
        pooled = jnp.dot(h2_i.astype(bf16), pool_ref[...],
                         preferred_element_type=f32)                   # (Cexp, H+W)
        y = hardswish(jnp.dot(w_ca1_ref[...], pooled.astype(bf16),
                              preferred_element_type=f32) + b_ca1)     # (mip, H+W)
        a = jnp.dot(w_cahw_ref[...], y.astype(bf16),
                    preferred_element_type=f32)                        # (2Cexp, H+W)
        a_h = jax.nn.sigmoid(a[:Cexp, :H] + b_cah)                     # (Cexp, H)
        a_w = jax.nn.sigmoid(a[Cexp:, H:] + b_caw)                     # (Cexp, W)
        att_parts.append(
            jnp.dot(a_h.astype(bf16), bh_ref[...], preferred_element_type=f32) *
            jnp.dot(a_w.astype(bf16), bw_ref[...], preferred_element_type=f32))
    att = att_parts[0] if NB == 1 else jnp.concatenate(att_parts, axis=1)
    h3 = h2 * att                                                      # (Cexp, L)

    # 4) project 1x1 + BN (no activation) + residual
    out = jnp.dot(w_proj_ref[...], h3.astype(bf16),
                  preferred_element_type=f32) + biases_ref[o_proj:o_proj + Cout]
    if use_res:
        out = out + x
    o_ref[...] = out.astype(o_ref.dtype)                               # dense L-lane store


# ----------------------------- wrapper ----------------------------------------

def inverted_res_block(x_nchw, params, images_per_step=None):
    """x_nchw: (N, Cin, H, W) float32. Returns (N, Cout, H, W) float32."""
    N, Cin, H, W = x_nchw.shape
    HW = H * W
    Cexp = params['w_exp'].shape[0]
    mip = params['w_ca1'].shape[0]
    Cout = params['w_proj'].shape[0]
    use_res = (Cin == Cout)                     # stride == 1 in this config

    nb = images_per_step if images_per_step is not None else _pick_nb(N)
    assert N % nb == 0, (N, nb)
    L = nb * HW
    grid_len = N // nb

    bf16 = jnp.bfloat16
    # channels-first, lane-flattened layout: (Cin, N*HW)
    x2 = jnp.transpose(x_nchw.astype(jnp.float32), (1, 0, 2, 3)).reshape(Cin, N * HW)

    # constants (numpy, cached per shape), pre-cast to the matmul dtype
    pool_np, bh_np, bw_np = _ca_constants(H, W)
    pool = jnp.asarray(pool_np, bf16)
    bh = jnp.asarray(bh_np, bf16)
    bw = jnp.asarray(bw_np, bf16)
    masks = jnp.asarray(_dw_tap_masks(H, W, nb))                       # (9, L) f32

    # packed operands: bf16 MXU weights, masked tap weights, one stacked bias
    w_exp = params['w_exp'].astype(bf16)                               # (Cexp, Cin)
    dw_taps = params['w_dw'].T[:, :, None] * masks[:, None, :]         # (9, Cexp, L) f32
    w_ca1 = params['w_ca1'].astype(bf16)                               # (mip, Cexp)
    w_cahw = jnp.concatenate([params['w_cah'], params['w_caw']],
                             axis=0).astype(bf16)                      # (2Cexp, mip)
    w_proj = params['w_proj'].astype(bf16)                             # (Cout, Cexp)
    biases = jnp.concatenate(
        [params['b_exp'], params['b_dw'], params['b_ca1'],
         params['b_cah'], params['b_caw'], params['b_proj']],
        axis=0).astype(jnp.float32)                                    # (4Cexp+mip+Cout, 1)

    consts = [w_exp, dw_taps, w_ca1, w_cahw, w_proj, biases, pool, bh, bw]

    def const_spec(a):
        nd = a.ndim
        return pl.BlockSpec(a.shape, lambda b, _nd=nd: (0,) * _nd)

    kern = functools.partial(inverted_res_kernel, H=H, W=W, NB=nb,
                             Cexp=Cexp, mip=mip, Cout=Cout, use_res=use_res)
    out = pl.pallas_call(
        kern,
        out_shape=jax.ShapeDtypeStruct((Cout, N * HW), jnp.float32),
        grid=(grid_len,),
        in_specs=[pl.BlockSpec((Cin, L), lambda b: (0, b))]
                 + [const_spec(a) for a in consts],
        out_specs=pl.BlockSpec((Cout, L), lambda b: (0, b)),
        compiler_params=pltpu.CompilerParams(
            dimension_semantics=("parallel",)),
    )(x2, *consts)
    return jnp.transpose(out.reshape(Cout, N, H, W), (1, 0, 2, 3))


# ----------------------------- params (deterministic) --------------------------

def make_params(key, Cin, Cexp, Cout, reduction=16):
    mip = _make_divisible(Cexp // reduction, 8)
    ks = jax.random.split(key, 24)
    n = lambda i, shape, s=0.1: s * jax.random.normal(ks[i], shape, jnp.float32)
    u = lambda i, shape: jax.random.uniform(ks[i], shape, jnp.float32, 0.5, 1.5)

    eps_cbn = 0.01     # Conv2dBNActivation BatchNorm eps
    eps_ca = 1e-5      # CA's nn.BatchNorm2d default eps

    # expand 1x1 (no bias) + BN
    w_exp, b_exp = fold_bn(n(0, (Cin, Cexp)), jnp.zeros((Cexp,)),
                           u(1, (Cexp,)), n(2, (Cexp,)), n(3, (Cexp,)),
                           u(4, (Cexp,)), eps_cbn)
    # depthwise 3x3 (no bias) + BN
    w_dw, b_dw = fold_bn(n(5, (3, 3, Cexp)), jnp.zeros((Cexp,)),
                         u(6, (Cexp,)), n(7, (Cexp,)), n(8, (Cexp,)),
                         u(9, (Cexp,)), eps_cbn)
    # CA: conv1 (with bias) + bn1
    w_ca1, b_ca1 = fold_bn(n(10, (Cexp, mip)), n(11, (mip,)),
                           u(12, (mip,)), n(13, (mip,)), n(14, (mip,)),
                           u(15, (mip,)), eps_ca)
    # CA: conv_h / conv_w (bias, no BN)
    w_cah, b_cah = n(16, (mip, Cexp)), n(17, (Cexp,))
    w_caw, b_caw = n(18, (mip, Cexp)), n(19, (Cexp,))
    # project 1x1 (no bias) + BN, no activation
    w_proj, b_proj = fold_bn(n(20, (Cexp, Cout)), jnp.zeros((Cout,)),
                             u(21, (Cout,)), n(22, (Cout,)), n(23, (Cout,)),
                             jnp.ones((Cout,)), eps_cbn)

    col = lambda b: b.reshape(-1, 1)
    return dict(
        w_exp=w_exp.T,                    # (Cexp, Cin)
        b_exp=col(b_exp),
        w_dw=w_dw.reshape(9, Cexp).T,     # (Cexp, 9), tap = kh*3+kw
        b_dw=col(b_dw),
        w_ca1=w_ca1.T,                    # (mip, Cexp)
        b_ca1=col(b_ca1),
        w_cah=w_cah.T,                    # (Cexp, mip)
        b_cah=col(b_cah),
        w_caw=w_caw.T,                    # (Cexp, mip)
        b_caw=col(b_caw),
        w_proj=w_proj.T,                  # (Cout, Cexp)
        b_proj=col(b_proj),
    )


# ----------------------------- pure-JAX reference ------------------------------

def reference(x, p):
    """x: (N, Cin, H, W). Faithful f32 NCHW re-implementation of the PyTorch block."""
    N, Cin, H, W = x.shape
    Cout = p['w_proj'].shape[0]
    use_res = (Cin == Cout)
    bc = lambda b: b[:, 0][None, :, None, None]
    # expand 1x1 + BN + HS
    h1 = hardswish(jnp.einsum('oc,nchw->nohw', p['w_exp'], x) + bc(p['b_exp']))
    # depthwise 3x3, pad 1 + BN + HS
    pad = jnp.pad(h1, ((0, 0), (0, 0), (1, 1), (1, 1)))
    acc = sum(pad[:, :, kh:kh + H, kw:kw + W]
              * p['w_dw'][:, kh * 3 + kw][None, :, None, None]
              for kh in range(3) for kw in range(3))
    h2 = hardswish(acc + bc(p['b_dw']))
    # Coordinate Attention
    x_h = h2.mean(axis=3)                                    # (N, Cexp, H)
    x_w = h2.mean(axis=2)                                    # (N, Cexp, W)
    y = jnp.concatenate([x_h, x_w], axis=2)                  # (N, Cexp, H+W)
    y = hardswish(jnp.einsum('mc,ncp->nmp', p['w_ca1'], y)
                  + p['b_ca1'][:, 0][None, :, None])
    a_h = jax.nn.sigmoid(jnp.einsum('cm,nmh->nch', p['w_cah'], y[:, :, :H])
                         + p['b_cah'][:, 0][None, :, None])
    a_w = jax.nn.sigmoid(jnp.einsum('cm,nmw->ncw', p['w_caw'], y[:, :, H:])
                         + p['b_caw'][:, 0][None, :, None])
    h3 = h2 * a_h[:, :, :, None] * a_w[:, :, None, :]
    # project 1x1 + BN (+ residual)
    out = jnp.einsum('oc,nchw->nohw', p['w_proj'], h3) + bc(p['b_proj'])
    if use_res:
        out = out + x
    return out


# ----------------------------- main --------------------------------------------

if __name__ == "__main__":
    # batch 4 -> 2 images per grid step, grid=(2,) (keeps both v7x TCs busy)
    N, Cin, H, W = 4, 16, 16, 16
    Cexp, Cout = 32, 16

    key = jax.random.PRNGKey(0)
    kx, kp = jax.random.split(key)
    x = jax.random.normal(kx, (N, Cin, H, W), jnp.float32)
    params = make_params(kp, Cin, Cexp, Cout)

    out = jax.block_until_ready(inverted_res_block(x, params))
    ref = jax.block_until_ready(reference(x, params))

    assert out.shape == (N, Cout, H, W), out.shape
    # bf16 MXU operands -> looser tolerance than the all-f32 version
    np.testing.assert_allclose(np.asarray(out), np.asarray(ref),
                               rtol=1e-2, atol=1e-2)
    print("KERNEL_OK")
</pallas_src>

<mosaic_0001>
module attributes {stable_mosaic.version = 11 : i64} {
  func.func @inverted_res_kernel(%arg0: i32, %arg1: memref<16x512xf32, #tpu.memory_space<vmem>>, %arg2: memref<32x16xbf16, #tpu.memory_space<vmem>>, %arg3: memref<9x32x512xf32, #tpu.memory_space<vmem>>, %arg4: memref<8x32xbf16, #tpu.memory_space<vmem>>, %arg5: memref<64x8xbf16, #tpu.memory_space<vmem>>, %arg6: memref<16x32xbf16, #tpu.memory_space<vmem>>, %arg7: memref<152x1xf32, #tpu.memory_space<vmem>>, %arg8: memref<256x32xbf16, #tpu.memory_space<vmem>>, %arg9: memref<16x256xbf16, #tpu.memory_space<vmem>>, %arg10: memref<16x256xbf16, #tpu.memory_space<vmem>>, %arg11: memref<16x512xf32, #tpu.memory_space<vmem>>) attributes {dimension_semantics = [#tpu.dimension_semantics<parallel>], iteration_bounds = array<i64: 2>, scalar_prefetch = 0 : i64, scratch_operands = 0 : i64, tpu.core_type = #tpu.core_type<tc>, window_params = [{transform_indices = @transform_0, window_bounds = array<i64: 16, 512>}, {pipeline_mode = #tpu.pipeline_mode<synchronous>, transform_indices = @transform_1, window_bounds = array<i64: 32, 16>}, {pipeline_mode = #tpu.pipeline_mode<synchronous>, transform_indices = @transform_2, window_bounds = array<i64: 9, 32, 512>}, {pipeline_mode = #tpu.pipeline_mode<synchronous>, transform_indices = @transform_3, window_bounds = array<i64: 8, 32>}, {pipeline_mode = #tpu.pipeline_mode<synchronous>, transform_indices = @transform_4, window_bounds = array<i64: 64, 8>}, {pipeline_mode = #tpu.pipeline_mode<synchronous>, transform_indices = @transform_5, window_bounds = array<i64: 16, 32>}, {pipeline_mode = #tpu.pipeline_mode<synchronous>, transform_indices = @transform_6, window_bounds = array<i64: 152, 1>}, {pipeline_mode = #tpu.pipeline_mode<synchronous>, transform_indices = @transform_7, window_bounds = array<i64: 256, 32>}, {pipeline_mode = #tpu.pipeline_mode<synchronous>, transform_indices = @transform_8, window_bounds = array<i64: 16, 256>}, {pipeline_mode = #tpu.pipeline_mode<synchronous>, transform_indices = @transform_9, window_bounds = array<i64: 16, 256>}, {transform_indices = @transform_10, window_bounds = array<i64: 16, 512>}]} {
    %c0 = arith.constant 0 : index
    %c0_0 = arith.constant 0 : index
    %0 = vector.load %arg1[%c0, %c0_0] : memref<16x512xf32, #tpu.memory_space<vmem>>, vector<16x512xf32>
    %c0_1 = arith.constant 0 : index
    %c0_2 = arith.constant 0 : index
    %1 = vector.load %arg2[%c0_1, %c0_2] : memref<32x16xbf16, #tpu.memory_space<vmem>>, vector<32x16xbf16>
    %2 = arith.truncf %0 : vector<16x512xf32> to vector<16x512xbf16>
    %cst = arith.constant dense<0.000000e+00> : vector<32x512xf32>
    %3 = tpu.matmul %1, %2, %cst {dimension_numbers = #tpu.dot_dimension_numbers<[1], [0], [0], [1], [0, 0, 1, 1], [], []>} : vector<32x16xbf16>, vector<16x512xbf16>, vector<32x512xf32> -> vector<32x512xf32>
    %c0_3 = arith.constant 0 : index
    %c0_4 = arith.constant 0 : index
    %4 = vector.load %arg7[%c0_3, %c0_4] : memref<152x1xf32, #tpu.memory_space<vmem>>, vector<32x1xf32>
    %5 = vector.broadcast %4 : vector<32x1xf32> to vector<32x512xf32>
    %6 = arith.addf %3, %5 : vector<32x512xf32>
    %cst_5 = arith.constant 3.000000e+00 : f32
    %7 = vector.broadcast %cst_5 : f32 to vector<32x512xf32>
    %8 = arith.addf %6, %7 : vector<32x512xf32>
    %cst_6 = arith.constant 0.000000e+00 : f32
    %cst_7 = arith.constant 6.000000e+00 : f32
    %9 = vector.broadcast %cst_6 : f32 to vector<32x512xf32>
    %10 = arith.maximumf %9, %8 : vector<32x512xf32>
    %11 = vector.broadcast %cst_7 : f32 to vector<32x512xf32>
    %12 = arith.minimumf %11, %10 : vector<32x512xf32>
    %13 = arith.mulf %6, %12 : vector<32x512xf32>
    %cst_8 = arith.constant 0.166666672 : f32
    %14 = vector.broadcast %cst_8 : f32 to vector<32x512xf32>
    %15 = arith.mulf %13, %14 : vector<32x512xf32>
    %c4 = arith.constant 4 : index
    %c0_9 = arith.constant 0 : index
    %c0_10 = arith.constant 0 : index
    %16 = vector.load %arg3[%c4, %c0_9, %c0_10] : memref<9x32x512xf32, #tpu.memory_space<vmem>>, vector<1x32x512xf32>
    %17 = vector.shape_cast %16 : vector<1x32x512xf32> to vector<32x512xf32>
    %18 = arith.mulf %15, %17 : vector<32x512xf32>
    %c17_i32 = arith.constant 17 : i32
    %19 = tpu.dynamic_rotate %15 by %c17_i32 dim 1 : vector<32x512xf32>, i32 -> vector<32x512xf32>
    %c0_11 = arith.constant 0 : index
    %c0_12 = arith.constant 0 : index
    %c0_13 = arith.constant 0 : index
    %20 = vector.load %arg3[%c0_11, %c0_12, %c0_13] : memref<9x32x512xf32, #tpu.memory_space<vmem>>, vector<1x32x512xf32>
    %21 = vector.shape_cast %20 : vector<1x32x512xf32> to vector<32x512xf32>
    %22 = arith.mulf %19, %21 : vector<32x512xf32>
    %23 = arith.addf %18, %22 : vector<32x512xf32>
    %c16_i32 = arith.constant 16 : i32
    %24 = tpu.dynamic_rotate %15 by %c16_i32 dim 1 : vector<32x512xf32>, i32 -> vector<32x512xf32>
    %c1 = arith.constant 1 : index
    %c0_14 = arith.constant 0 : index
    %c0_15 = arith.constant 0 : index
    %25 = vector.load %arg3[%c1, %c0_14, %c0_15] : memref<9x32x512xf32, #tpu.memory_space<vmem>>, vector<1x32x512xf32>
    %26 = vector.shape_cast %25 : vector<1x32x512xf32> to vector<32x512xf32>
    %27 = arith.mulf %24, %26 : vector<32x512xf32>
    %28 = arith.addf %23, %27 : vector<32x512xf32>
    %c15_i32 = arith.constant 15 : i32
    %29 = tpu.dynamic_rotate %15 by %c15_i32 dim 1 : vector<32x512xf32>, i32 -> vector<32x512xf32>
    %c2 = arith.constant 2 : index
    %c0_16 = arith.constant 0 : index
    %c0_17 = arith.constant 0 : index
    %30 = vector.load %arg3[%c2, %c0_16, %c0_17] : memref<9x32x512xf32, #tpu.memory_space<vmem>>, vector<1x32x512xf32>
    %31 = vector.shape_cast %30 : vector<1x32x512xf32> to vector<32x512xf32>
    %32 = arith.mulf %29, %31 : vector<32x512xf32>
    %33 = arith.addf %28, %32 : vector<32x512xf32>
    %c1_i32 = arith.constant 1 : i32
    %34 = tpu.dynamic_rotate %15 by %c1_i32 dim 1 : vector<32x512xf32>, i32 -> vector<32x512xf32>
    %c3 = arith.constant 3 : index
    %c0_18 = arith.constant 0 : index
    %c0_19 = arith.constant 0 : index
    %35 = vector.load %arg3[%c3, %c0_18, %c0_19] : memref<9x32x512xf32, #tpu.memory_space<vmem>>, vector<1x32x512xf32>
    %36 = vector.shape_cast %35 : vector<1x32x512xf32> to vector<32x512xf32>
    %37 = arith.mulf %34, %36 : vector<32x512xf32>
    %38 = arith.addf %33, %37 : vector<32x512xf32>
    %c511_i32 = arith.constant 511 : i32
    %39 = tpu.dynamic_rotate %15 by %c511_i32 dim 1 : vector<32x512xf32>, i32 -> vector<32x512xf32>
    %c5 = arith.constant 5 : index
    %c0_20 = arith.constant 0 : index
    %c0_21 = arith.constant 0 : index
    %40 = vector.load %arg3[%c5, %c0_20, %c0_21] : memref<9x32x512xf32, #tpu.memory_space<vmem>>, vector<1x32x512xf32>
    %41 = vector.shape_cast %40 : vector<1x32x512xf32> to vector<32x512xf32>
    %42 = arith.mulf %39, %41 : vector<32x512xf32>
    %43 = arith.addf %38, %42 : vector<32x512xf32>
    %c497_i32 = arith.constant 497 : i32
    %44 = tpu.dynamic_rotate %15 by %c497_i32 dim 1 : vector<32x512xf32>, i32 -> vector<32x512xf32>
    %c6 = arith.constant 6 : index
    %c0_22 = arith.constant 0 : index
    %c0_23 = arith.constant 0 : index
    %45 = vector.load %arg3[%c6, %c0_22, %c0_23] : memref<9x32x512xf32, #tpu.memory_space<vmem>>, vector<1x32x512xf32>
    %46 = vector.shape_cast %45 : vector<1x32x512xf32> to vector<32x512xf32>
    %47 = arith.mulf %44, %46 : vector<32x512xf32>
    %48 = arith.addf %43, %47 : vector<32x512xf32>
    %c496_i32 = arith.constant 496 : i32
    %49 = tpu.dynamic_rotate %15 by %c496_i32 dim 1 : vector<32x512xf32>, i32 -> vector<32x512xf32>
    %c7 = arith.constant 7 : index
    %c0_24 = arith.constant 0 : index
    %c0_25 = arith.constant 0 : index
    %50 = vector.load %arg3[%c7, %c0_24, %c0_25] : memref<9x32x512xf32, #tpu.memory_space<vmem>>, vector<1x32x512xf32>
    %51 = vector.shape_cast %50 : vector<1x32x512xf32> to vector<32x512xf32>
    %52 = arith.mulf %49, %51 : vector<32x512xf32>
    %53 = arith.addf %48, %52 : vector<32x512xf32>
    %c495_i32 = arith.constant 495 : i32
    %54 = tpu.dynamic_rotate %15 by %c495_i32 dim 1 : vector<32x512xf32>, i32 -> vector<32x512xf32>
    %c8 = arith.constant 8 : index
    %c0_26 = arith.constant 0 : index
    %c0_27 = arith.constant 0 : index
    %55 = vector.load %arg3[%c8, %c0_26, %c0_27] : memref<9x32x512xf32, #tpu.memory_space<vmem>>, vector<1x32x512xf32>
    %56 = vector.shape_cast %55 : vector<1x32x512xf32> to vector<32x512xf32>
    %57 = arith.mulf %54, %56 : vector<32x512xf32>
    %58 = arith.addf %53, %57 : vector<32x512xf32>
    %c32 = arith.constant 32 : index
    %c0_28 = arith.constant 0 : index
    %59 = vector.load %arg7[%c32, %c0_28] : memref<152x1xf32, #tpu.memory_space<vmem>>, vector<32x1xf32>
    %60 = vector.broadcast %59 : vector<32x1xf32> to vector<32x512xf32>
    %61 = arith.addf %58, %60 : vector<32x512xf32>
    %cst_29 = arith.constant 3.000000e+00 : f32
    %62 = vector.broadcast %cst_29 : f32 to vector<32x512xf32>
    %63 = arith.addf %61, %62 : vector<32x512xf32>
    %cst_30 = arith.constant 0.000000e+00 : f32
    %cst_31 = arith.constant 6.000000e+00 : f32
    %64 = vector.broadcast %cst_30 : f32 to vector<32x512xf32>
    %65 = arith.maximumf %64, %63 : vector<32x512xf32>
    %66 = vector.broadcast %cst_31 : f32 to vector<32x512xf32>
    %67 = arith.minimumf %66, %65 : vector<32x512xf32>
    %68 = arith.mulf %61, %67 : vector<32x512xf32>
    %cst_32 = arith.constant 0.166666672 : f32
    %69 = vector.broadcast %cst_32 : f32 to vector<32x512xf32>
    %70 = arith.mulf %68, %69 : vector<32x512xf32>
    %c64 = arith.constant 64 : index
    %c0_33 = arith.constant 0 : index
    %71 = vector.load %arg7[%c64, %c0_33] : memref<152x1xf32, #tpu.memory_space<vmem>>, vector<8x1xf32>
    %c72 = arith.constant 72 : index
    %c0_34 = arith.constant 0 : index
    %72 = vector.load %arg7[%c72, %c0_34] : memref<152x1xf32, #tpu.memory_space<vmem>>, vector<32x1xf32>
    %c104 = arith.constant 104 : index
    %c0_35 = arith.constant 0 : index
    %73 = vector.load %arg7[%c104, %c0_35] : memref<152x1xf32, #tpu.memory_space<vmem>>, vector<32x1xf32>
    %74 = vector.extract_strided_slice %70 {offsets = [0, 0], sizes = [32, 256], strides = [1, 1]} : vector<32x512xf32> to vector<32x256xf32>
    %75 = arith.truncf %74 : vector<32x256xf32> to vector<32x256xbf16>
    %c0_36 = arith.constant 0 : index
    %c0_37 = arith.constant 0 : index
    %76 = vector.load %arg8[%c0_36, %c0_37] : memref<256x32xbf16, #tpu.memory_space<vmem>>, vector<256x32xbf16>
    %cst_38 = arith.constant dense<0.000000e+00> : vector<32x32xf32>
    %77 = tpu.matmul %75, %76, %cst_38 {dimension_numbers = #tpu.dot_dimension_numbers<[1], [0], [0], [1], [0, 0, 1, 1], [], []>} : vector<32x256xbf16>, vector<256x32xbf16>, vector<32x32xf32> -> vector<32x32xf32>
    %c0_39 = arith.constant 0 : index
    %c0_40 = arith.constant 0 : index
    %78 = vector.load %arg4[%c0_39, %c0_40] : memref<8x32xbf16, #tpu.memory_space<vmem>>, vector<8x32xbf16>
    %79 = arith.truncf %77 : vector<32x32xf32> to vector<32x32xbf16>
    %cst_41 = arith.constant dense<0.000000e+00> : vector<8x32xf32>
    %80 = tpu.matmul %78, %79, %cst_41 {dimension_numbers = #tpu.dot_dimension_numbers<[1], [0], [0], [1], [0, 0, 1, 1], [], []>} : vector<8x32xbf16>, vector<32x32xbf16>, vector<8x32xf32> -> vector<8x32xf32>
    %81 = vector.broadcast %71 : vector<8x1xf32> to vector<8x32xf32>
    %82 = arith.addf %80, %81 : vector<8x32xf32>
    %cst_42 = arith.constant 3.000000e+00 : f32
    %83 = vector.broadcast %cst_42 : f32 to vector<8x32xf32>
    %84 = arith.addf %82, %83 : vector<8x32xf32>
    %cst_43 = arith.constant 0.000000e+00 : f32
    %cst_44 = arith.constant 6.000000e+00 : f32
    %85 = vector.broadcast %cst_43 : f32 to vector<8x32xf32>
    %86 = arith.maximumf %85, %84 : vector<8x32xf32>
    %87 = vector.broadcast %cst_44 : f32 to vector<8x32xf32>
    %88 = arith.minimumf %87, %86 : vector<8x32xf32>
    %89 = arith.mulf %82, %88 : vector<8x32xf32>
    %cst_45 = arith.constant 0.166666672 : f32
    %90 = vector.broadcast %cst_45 : f32 to vector<8x32xf32>
    %91 = arith.mulf %89, %90 : vector<8x32xf32>
    %c0_46 = arith.constant 0 : index
    %c0_47 = arith.constant 0 : index
    %92 = vector.load %arg5[%c0_46, %c0_47] : memref<64x8xbf16, #tpu.memory_space<vmem>>, vector<64x8xbf16>
    %93 = arith.truncf %91 : vector<8x32xf32> to vector<8x32xbf16>
    %cst_48 = arith.constant dense<0.000000e+00> : vector<64x32xf32>
    %94 = tpu.matmul %92, %93, %cst_48 {dimension_numbers = #tpu.dot_dimension_numbers<[1], [0], [0], [1], [0, 0, 1, 1], [], []>} : vector<64x8xbf16>, vector<8x32xbf16>, vector<64x32xf32> -> vector<64x32xf32>
    %95 = vector.extract_strided_slice %94 {offsets = [0, 0], sizes = [32, 16], strides = [1, 1]} : vector<64x32xf32> to vector<32x16xf32>
    %96 = vector.broadcast %72 : vector<32x1xf32> to vector<32x16xf32>
    %97 = arith.addf %95, %96 : vector<32x16xf32>
    %98 = arith.negf %97 : vector<32x16xf32>
    %99 = math.exp %98 : vector<32x16xf32>
    %cst_49 = arith.constant 1.000000e+00 : f32
    %100 = vector.broadcast %cst_49 : f32 to vector<32x16xf32>
    %101 = arith.addf %100, %99 : vector<32x16xf32>
    %102 = arith.divf %100, %101 : vector<32x16xf32>
    %103 = vector.extract_strided_slice %94 {offsets = [32, 16], sizes = [32, 16], strides = [1, 1]} : vector<64x32xf32> to vector<32x16xf32>
    %104 = vector.broadcast %73 : vector<32x1xf32> to vector<32x16xf32>
    %105 = arith.addf %103, %104 : vector<32x16xf32>
    %106 = arith.negf %105 : vector<32x16xf32>
    %107 = math.exp %106 : vector<32x16xf32>
    %cst_50 = arith.constant 1.000000e+00 : f32
    %108 = vector.broadcast %cst_50 : f32 to vector<32x16xf32>
    %109 = arith.addf %108, %107 : vector<32x16xf32>
    %110 = arith.divf %108, %109 : vector<32x16xf32>
    %111 = arith.truncf %102 : vector<32x16xf32> to vector<32x16xbf16>
    %c0_51 = arith.constant 0 : index
    %c0_52 = arith.constant 0 : index
    %112 = vector.load %arg9[%c0_51, %c0_52] : memref<16x256xbf16, #tpu.memory_space<vmem>>, vector<16x256xbf16>
    %cst_53 = arith.constant dense<0.000000e+00> : vector<32x256xf32>
    %113 = tpu.matmul %111, %112, %cst_53 {dimension_numbers = #tpu.dot_dimension_numbers<[1], [0], [0], [1], [0, 0, 1, 1], [], []>} : vector<32x16xbf16>, vector<16x256xbf16>, vector<32x256xf32> -> vector<32x256xf32>
    %114 = arith.truncf %110 : vector<32x16xf32> to vector<32x16xbf16>
    %c0_54 = arith.constant 0 : index
    %c0_55 = arith.constant 0 : index
    %115 = vector.load %arg10[%c0_54, %c0_55] : memref<16x256xbf16, #tpu.memory_space<vmem>>, vector<16x256xbf16>
    %cst_56 = arith.constant dense<0.000000e+00> : vector<32x256xf32>
    %116 = tpu.matmul %114, %115, %cst_56 {dimension_numbers = #tpu.dot_dimension_numbers<[1], [0], [0], [1], [0, 0, 1, 1], [], []>} : vector<32x16xbf16>, vector<16x256xbf16>, vector<32x256xf32> -> vector<32x256xf32>
    %117 = arith.mulf %113, %116 : vector<32x256xf32>
    %118 = vector.extract_strided_slice %70 {offsets = [0, 256], sizes = [32, 256], strides = [1, 1]} : vector<32x512xf32> to vector<32x256xf32>
    %119 = arith.truncf %118 : vector<32x256xf32> to vector<32x256xbf16>
    %c0_57 = arith.constant 0 : index
    %c0_58 = arith.constant 0 : index
    %120 = vector.load %arg8[%c0_57, %c0_58] : memref<256x32xbf16, #tpu.memory_space<vmem>>, vector<256x32xbf16>
    %cst_59 = arith.constant dense<0.000000e+00> : vector<32x32xf32>
    %121 = tpu.matmul %119, %120, %cst_59 {dimension_numbers = #tpu.dot_dimension_numbers<[1], [0], [0], [1], [0, 0, 1, 1], [], []>} : vector<32x256xbf16>, vector<256x32xbf16>, vector<32x32xf32> -> vector<32x32xf32>
    %c0_60 = arith.constant 0 : index
    %c0_61 = arith.constant 0 : index
    %122 = vector.load %arg4[%c0_60, %c0_61] : memref<8x32xbf16, #tpu.memory_space<vmem>>, vector<8x32xbf16>
    %123 = arith.truncf %121 : vector<32x32xf32> to vector<32x32xbf16>
    %cst_62 = arith.constant dense<0.000000e+00> : vector<8x32xf32>
    %124 = tpu.matmul %122, %123, %cst_62 {dimension_numbers = #tpu.dot_dimension_numbers<[1], [0], [0], [1], [0, 0, 1, 1], [], []>} : vector<8x32xbf16>, vector<32x32xbf16>, vector<8x32xf32> -> vector<8x32xf32>
    %125 = vector.broadcast %71 : vector<8x1xf32> to vector<8x32xf32>
    %126 = arith.addf %124, %125 : vector<8x32xf32>
    %cst_63 = arith.constant 3.000000e+00 : f32
    %127 = vector.broadcast %cst_63 : f32 to vector<8x32xf32>
    %128 = arith.addf %126, %127 : vector<8x32xf32>
    %cst_64 = arith.constant 0.000000e+00 : f32
    %cst_65 = arith.constant 6.000000e+00 : f32
    %129 = vector.broadcast %cst_64 : f32 to vector<8x32xf32>
    %130 = arith.maximumf %129, %128 : vector<8x32xf32>
    %131 = vector.broadcast %cst_65 : f32 to vector<8x32xf32>
    %132 = arith.minimumf %131, %130 : vector<8x32xf32>
    %133 = arith.mulf %126, %132 : vector<8x32xf32>
    %cst_66 = arith.constant 0.166666672 : f32
    %134 = vector.broadcast %cst_66 : f32 to vector<8x32xf32>
    %135 = arith.mulf %133, %134 : vector<8x32xf32>
    %c0_67 = arith.constant 0 : index
    %c0_68 = arith.constant 0 : index
    %136 = vector.load %arg5[%c0_67, %c0_68] : memref<64x8xbf16, #tpu.memory_space<vmem>>, vector<64x8xbf16>
    %137 = arith.truncf %135 : vector<8x32xf32> to vector<8x32xbf16>
    %cst_69 = arith.constant dense<0.000000e+00> : vector<64x32xf32>
    %138 = tpu.matmul %136, %137, %cst_69 {dimension_numbers = #tpu.dot_dimension_numbers<[1], [0], [0], [1], [0, 0, 1, 1], [], []>} : vector<64x8xbf16>, vector<8x32xbf16>, vector<64x32xf32> -> vector<64x32xf32>
    %139 = vector.extract_strided_slice %138 {offsets = [0, 0], sizes = [32, 16], strides = [1, 1]} : vector<64x32xf32> to vector<32x16xf32>
    %140 = vector.broadcast %72 : vector<32x1xf32> to vector<32x16xf32>
    %141 = arith.addf %139, %140 : vector<32x16xf32>
    %142 = arith.negf %141 : vector<32x16xf32>
    %143 = math.exp %142 : vector<32x16xf32>
    %cst_70 = arith.constant 1.000000e+00 : f32
    %144 = vector.broadcast %cst_70 : f32 to vector<32x16xf32>
    %145 = arith.addf %144, %143 : vector<32x16xf32>
    %146 = arith.divf %144, %145 : vector<32x16xf32>
    %147 = vector.extract_strided_slice %138 {offsets = [32, 16], sizes = [32, 16], strides = [1, 1]} : vector<64x32xf32> to vector<32x16xf32>
    %148 = vector.broadcast %73 : vector<32x1xf32> to vector<32x16xf32>
    %149 = arith.addf %147, %148 : vector<32x16xf32>
    %150 = arith.negf %149 : vector<32x16xf32>
    %151 = math.exp %150 : vector<32x16xf32>
    %cst_71 = arith.constant 1.000000e+00 : f32
    %152 = vector.broadcast %cst_71 : f32 to vector<32x16xf32>
    %153 = arith.addf %152, %151 : vector<32x16xf32>
    %154 = arith.divf %152, %153 : vector<32x16xf32>
    %155 = arith.truncf %146 : vector<32x16xf32> to vector<32x16xbf16>
    %c0_72 = arith.constant 0 : index
    %c0_73 = arith.constant 0 : index
    %156 = vector.load %arg9[%c0_72, %c0_73] : memref<16x256xbf16, #tpu.memory_space<vmem>>, vector<16x256xbf16>
    %cst_74 = arith.constant dense<0.000000e+00> : vector<32x256xf32>
    %157 = tpu.matmul %155, %156, %cst_74 {dimension_numbers = #tpu.dot_dimension_numbers<[1], [0], [0], [1], [0, 0, 1, 1], [], []>} : vector<32x16xbf16>, vector<16x256xbf16>, vector<32x256xf32> -> vector<32x256xf32>
    %158 = arith.truncf %154 : vector<32x16xf32> to vector<32x16xbf16>
    %c0_75 = arith.constant 0 : index
    %c0_76 = arith.constant 0 : index
    %159 = vector.load %arg10[%c0_75, %c0_76] : memref<16x256xbf16, #tpu.memory_space<vmem>>, vector<16x256xbf16>
    %cst_77 = arith.constant dense<0.000000e+00> : vector<32x256xf32>
    %160 = tpu.matmul %158, %159, %cst_77 {dimension_numbers = #tpu.dot_dimension_numbers<[1], [0], [0], [1], [0, 0, 1, 1], [], []>} : vector<32x16xbf16>, vector<16x256xbf16>, vector<32x256xf32> -> vector<32x256xf32>
    %161 = arith.mulf %157, %160 : vector<32x256xf32>
    %162 = tpu.concatenate %117, %161 in 1 : vector<32x256xf32>, vector<32x256xf32> -> vector<32x512xf32>
    %163 = arith.mulf %70, %162 : vector<32x512xf32>
    %c0_78 = arith.constant 0 : index
    %c0_79 = arith.constant 0 : index
    %164 = vector.load %arg6[%c0_78, %c0_79] : memref<16x32xbf16, #tpu.memory_space<vmem>>, vector<16x32xbf16>
    %165 = arith.truncf %163 : vector<32x512xf32> to vector<32x512xbf16>
    %cst_80 = arith.constant dense<0.000000e+00> : vector<16x512xf32>
    %166 = tpu.matmul %164, %165, %cst_80 {dimension_numbers = #tpu.dot_dimension_numbers<[1], [0], [0], [1], [0, 0, 1, 1], [], []>} : vector<16x32xbf16>, vector<32x512xbf16>, vector<16x512xf32> -> vector<16x512xf32>
    %c136 = arith.constant 136 : index
    %c0_81 = arith.constant 0 : index
    %167 = vector.load %arg7[%c136, %c0_81] : memref<152x1xf32, #tpu.memory_space<vmem>>, vector<16x1xf32>
    %168 = vector.broadcast %167 : vector<16x1xf32> to vector<16x512xf32>
    %169 = arith.addf %166, %168 : vector<16x512xf32>
    %170 = arith.addf %169, %0 : vector<16x512xf32>
    %c0_82 = arith.constant 0 : index
    %c0_83 = arith.constant 0 : index
    %171 = vector.load %arg11[%c0_82, %c0_83] : memref<16x512xf32, #tpu.memory_space<vmem>>, vector<16x512xf32>
    tpu.vector_store %arg11[%c0_82, %c0_83], %170 {strides = array<i32>} : memref<16x512xf32, #tpu.memory_space<vmem>>, vector<16x512xf32>,
    return
  }
  func.func @transform_0(%arg0: i32) -> (i32, i32) {
    %c0_i32 = arith.constant 0 : i32
    %c0_i32_0 = arith.constant 0 : i32
    return %c0_i32, %arg0 : i32, i32
  }
  func.func @transform_1(%arg0: i32) -> (i32, i32) {
    %c0_i32 = arith.constant 0 : i32
    %c0_i32_0 = arith.constant 0 : i32
    %c0_i32_1 = arith.constant 0 : i32
    return %c0_i32, %c0_i32_0 : i32, i32
  }
  func.func @transform_2(%arg0: i32) -> (i32, i32, i32) {
    %c0_i32 = arith.constant 0 : i32
    %c0_i32_0 = arith.constant 0 : i32
    %c0_i32_1 = arith.constant 0 : i32
    %c0_i32_2 = arith.constant 0 : i32
    return %c0_i32, %c0_i32_0, %c0_i32_1 : i32, i32, i32
  }
  func.func @transform_3(%arg0: i32) -> (i32, i32) {
    %c0_i32 = arith.constant 0 : i32
    %c0_i32_0 = arith.constant 0 : i32
    %c0_i32_1 = arith.constant 0 : i32
    return %c0_i32, %c0_i32_0 : i32, i32
  }
  func.func @transform_4(%arg0: i32) -> (i32, i32) {
    %c0_i32 = arith.constant 0 : i32
    %c0_i32_0 = arith.constant 0 : i32
    %c0_i32_1 = arith.constant 0 : i32
    return %c0_i32, %c0_i32_0 : i32, i32
  }
  func.func @transform_5(%arg0: i32) -> (i32, i32) {
    %c0_i32 = arith.constant 0 : i32
    %c0_i32_0 = arith.constant 0 : i32
    %c0_i32_1 = arith.constant 0 : i32
    return %c0_i32, %c0_i32_0 : i32, i32
  }
  func.func @transform_6(%arg0: i32) -> (i32, i32) {
    %c0_i32 = arith.constant 0 : i32
    %c0_i32_0 = arith.constant 0 : i32
    %c0_i32_1 = arith.constant 0 : i32
    return %c0_i32, %c0_i32_0 : i32, i32
  }
  func.func @transform_7(%arg0: i32) -> (i32, i32) {
    %c0_i32 = arith.constant 0 : i32
    %c0_i32_0 = arith.constant 0 : i32
    %c0_i32_1 = arith.constant 0 : i32
    return %c0_i32, %c0_i32_0 : i32, i32
  }
  func.func @transform_8(%arg0: i32) -> (i32, i32) {
    %c0_i32 = arith.constant 0 : i32
    %c0_i32_0 = arith.constant 0 : i32
    %c0_i32_1 = arith.constant 0 : i32
    return %c0_i32, %c0_i32_0 : i32, i32
  }
  func.func @transform_9(%arg0: i32) -> (i32, i32) {
    %c0_i32 = arith.constant 0 : i32
    %c0_i32_0 = arith.constant 0 : i32
    %c0_i32_1 = arith.constant 0 : i32
    return %c0_i32, %c0_i32_0 : i32, i32
  }
  func.func @transform_10(%arg0: i32) -> (i32, i32) {
    %c0_i32 = arith.constant 0 : i32
    %c0_i32_0 = arith.constant 0 : i32
    return %c0_i32, %arg0 : i32, i32
  }
}

</mosaic_0001>

<bundles_post_ra>
// kernel: tpu_custom_call.1
= control target key start
LH: loop header
LB: loop body
LE: loop exit
PB: predicated region body
PF: predicated region fallthrough
CT: control target
= control target key end

     0   :  { %15 = vsyncpa [#allocation4], 0  ;;  %s4959_s0 = inlined_call_operand.vmem [shape: f32[16,1024], index: 0, kind: input, shape index: {}]   ;;  %s4960_s1 = inlined_call_operand.vmem [shape: bf16[32,16], index: 1, kind: input, shape index: {}]   ;;  %s4961_s2 = inlined_call_operand.hbm [shape: f32[9,32,512], index: 2, kind: input, shape index: {}]   ;;  %s4962_s3 = inlined_call_operand.vmem [shape: bf16[8,32], index: 3, kind: input, shape index: {}]   ;;  %s4963_s4 = inlined_call_operand.vmem [shape: bf16[64,8], index: 4, kind: input, shape index: {}]   ;;  %s4964_s5 = inlined_call_operand.vmem [shape: bf16[16,32], index: 5, kind: input, shape index: {}]   ;;  %s4965_s6 = inlined_call_operand.vmem [shape: f32[152,1], index: 6, kind: input, shape index: {}]   ;;  %s4966_s7 = inlined_call_operand.vmem [shape: bf16[256,32], index: 7, kind: input, shape index: {}]   ;;  %s4967_s8 = inlined_call_operand.vmem [shape: bf16[16,256], index: 8, kind: input, shape index: {}]   ;;  %s4968_s9 = inlined_call_operand.vmem [shape: bf16[16,256], index: 9, kind: input, shape index: {}]   ;;  %s4969_s10 = inlined_call_operand.hbm [shape: f32[16,1024], index: 10, kind: output, shape index: {}]  }
   0x1   :  { %16 = vsyncpa [#allocation5], 0 }
   0x2   :  { %18 = vsyncpa [#allocation5 + $0x1], 0  ;;  %s3353_s13 = smov 0   ;;  %s3355_s14 = smov 0  }
   0x3   :  { %s3357_s15 = smov 0   ;;  %s3359_s16 = smov 0  }
   0x4 LB: > { %s3374_s17 = sadd.s32 4294967295, %s3278_s16   ;;  %s2808_s18 = sadd.s32 4294967294, %s3278_s16   ;;  %s3278_s16 = sphi %s3359_s16, %s5227_s16   ;;  %s3274_s15 = sphi %s3357_s15, %s5231_s15   ;;  %s3270_s14 = sphi %s3355_s14, %s5230_s14   ;;  %s3266_s13 = sphi %s3353_s13, %s5229_s13  }
   0x5   : > { %s3378_s19 = sadd.s32 1, %s3278_s16   ;;  %s31_s20 = sadd.s32 1, %s3274_s15 }
   0x6   : > { %5070 = sst [smem:[#allocation9_spill]] %s3378_s19  ;;  %s28_s21 = ssub.s32 %s3278_s16, %s3378_s19 }
   0x7   : > { %p38_p0 = scmp.ne.s32.totalorder %s3274_s15, %s3270_s14  ;;  %p29_p1 = scmp.eq.s32.totalorder %s28_s21, 0 }
   0x8   : > { %p39_p2 = scmp.eq.s32.totalorder %s3278_s16, 0  ;;  %p257_p3 = scmp.eq.s32.totalorder %s3374_s17, 1 }
   0x9   : > { %p262_p4 = scmp.ne.s32.totalorder %s3270_s14, %s3266_s13  ;;  %p263_p7 = scmp.eq.s32.totalorder %s2808_s18, 1 }
   0xa   : > { %s3390_s22 = scalar_select %p29_p1, %s3274_s15, %s31_s20  }
   0xb   : > { %p3392_p5 = por %p39_p2, %p38_p0  ;;  %p3396_p6 = por %p257_p3, %p38_p0 }
   0xc   : > { %5071 = sst [smem:[#allocation10_spill]] %s3390_s22  ;;  %p2809_p8 = scmp.ge.s32.totalorder %s3278_s16, 1 }
   0xd   : > { %s5073_s24 = scalar_select %p3396_p6, 1, 0 }
   0xe   : > { %p270_p9 = scmp.lt.s32.totalorder %s3278_s16, 3  ;;  %p3402_p10 = por %p263_p7, %p262_p4 }
   0xf   : > { %p3017_p11 = scmp.eq.s32.totalorder %s3374_s17, 0  ;;  %s3280_s27 = smov [#allocation3]  }
  0x10   : > { %s5074_s25 = scalar_select %p3402_p10, 1, 0 }
  0x11   : > { %p3407_p12 = pnand %p2809_p8, %p270_p9  ;;  %s285_s28 = sshll.u32 %s3280_s27, 4  ;;  %s286_s28 = int_to_ptr.vmem [resolvable:$true] %s285_s28 }
  0x12   : > { %s3199_s29 = scalar_lea.vmem %s286_s28, 18432  ;;  %p3207_p7 = scmp.lt.s32.totalorder %s286_s28, %s286_s28 }
  0x13   : > { %p3009_p13 = pneg %p3407_p12  ;;  %p3200_p2 = scmp.ne.s32.totalorder %s286_s28, %s3199_s29 }
  0x14   : > { %p3208_p10 = scmp.lt.s32.totalorder %s3199_s29, %s3199_s29 }
  0x15   : > { %p3010_p0 = pnand %p3017_p11, %p3009_p13 }
  0x16   : > { %p3209_p6 = por %p3208_p10, %p3207_p7 }
  0x17   : > { %p3190_p1 = pneg %p3010_p0 }
  0x19   : > { %p3202_p3 = pnand %p3200_p2, %p3190_p1 }
  0x1b   : > { %p3203_p4 = pneg %p3202_p3 }
  0x1d   : > { %p3210_p8 = pnand %p3209_p6, %p3203_p4 }
  0x1f   : > { %3213 = shalt.err (!%p3210_p8)
}
  0x20   : > { %s3281_s30 = smov 512   ;;  %s3282_s11 = smov 32  }
  0x21   : > { %3012 = dma.hbm_to_vmem [thread:$0]  (!%p3010_p0), %s4961_s2, 18432, %s286_s28, [#allocation4], %s3281_s30, %s3281_s30, %s3282_s11  }
  0x22   : > { %p2811_p9 = scmp.ge.s32.totalorder %s3278_s16, 2 }
  0x24   : > { %316 = sbr.rel (%p2811_p9) target bundleno = 49 (0x31), region = 52 }
  0x29   : > { %319 = sbr.rel (!%p3392_p5) target bundleno = 49 (0x31), region = 56  ;;  %s321_s20 = sand.u32 (%p3392_p5), 1, %s3274_s15  }
  0x2a   : > { %s2891_s21 = sshll.u32 (%p3392_p5), %s3278_s16, 5  ;;  %s2812_s27 = sshll.u32 (%p3392_p5), %s321_s20, 6 }
  0x2b   : > { %s326_s19 = scalar_lea.vmem (%p3392_p5), %s4959_s0, %s2891_s21  ;;  %s323_s28 = scalar_lea.vmem (%p3392_p5), [#allocation2], %s2812_s27 }
  0x2c   : > { %v339_v0 = vld [vmem:[%s326_s19] sm:$0xff] (%p3392_p5)  ;;  %v341_v1 = vld [vmem:[%s326_s19 + $0x8] sm:$0xff] (%p3392_p5)  ;;  %v343_v2 = vld [vmem:[%s326_s19 + $0x10] sm:$0xff] (%p3392_p5) }
  0x2d   : > { %340 = vst [vmem:[%s323_s28] sm:$0xff] (%p3392_p5), %v339_v0  ;;  %342 = vst [vmem:[%s323_s28 + $0x8] sm:$0xff] (%p3392_p5), %v341_v1  ;;  %v345_v3 = vld [vmem:[%s326_s19 + $0x18] sm:$0xff] (%p3392_p5)  ;;  %v347_v4 = vld [vmem:[%s326_s19 + $0x40] sm:$0xff] (%p3392_p5) }
  0x2e   : > { %344 = vst [vmem:[%s323_s28 + $0x10] sm:$0xff] %v343_v2  ;;  %v349_v5 = vld [vmem:[%s326_s19 + $0x48] sm:$0xff]  ;;  %346 = vst [vmem:[%s323_s28 + $0x18] sm:$0xff] %v345_v3  ;;  %v351_v6 = vld [vmem:[%s326_s19 + $0x50] sm:$0xff] }
  0x2f   : > { %348 = vst [vmem:[%s323_s28 + $0x20] sm:$0xff] %v347_v4  ;;  %350 = vst [vmem:[%s323_s28 + $0x28] sm:$0xff] %v349_v5  ;;  %v353_v7 = vld [vmem:[%s326_s19 + $0x58] sm:$0xff] }
  0x30   : > { %352 = vst [vmem:[%s323_s28 + $0x30] sm:$0xff] %v351_v6  ;;  %354 = vst [vmem:[%s323_s28 + $0x38] sm:$0xff] %v353_v7 }
  0x31 PF: > { %363 = sbr.rel (%p3407_p12) target bundleno = 2511 (0x9cf), region = 79 }
  0x36   : > { %s4973_s22 = sand.u32 1, %s3270_s14  }
  0x37   : > { %s3433_s23 = sshll.u32 %s4973_s22, 6 }
  0x38   : > { %s3436_s30 = scalar_lea.vmem [#allocation2], %s3433_s23 }
  0x39   : > { %3257 = dma.done.wait (%p3017_p11), [#allocation4], 18432  }
  0x3a   : > { %3259 = vsyncadd (%p3017_p11), [#allocation4], 4294948864  ;;  %v4986_v8 = vmov 0   ;;  %v411_v9 = vld [vmem:[%s3436_s30 + $0x8] sm:$0xff]  ;;  %v413_v11 = vld [vmem:[%s3436_s30 + $0x18] sm:$0xff]  ;;  %vm460_vm0 = vcmask 130048  }
  0x3b   : > { %499 = vmatprep.mubr.bf16.mxu0 %v4986_v8  ;;  %552 = vmatprep.mubr.bf16.mxu1 %v4986_v8  ;;  %v415_v10 = vld [vmem:[%s3436_s30 + $0x28] sm:$0xff]  ;;  %v417_v13 = vld [vmem:[%s3436_s30 + $0x38] sm:$0xff]  ;;  %v410_v14 = vld [vmem:[%s3436_s30] sm:$0xff]  ;;  %s4982_s19 = smov 17   ;;  %s4974_s26 = smov 16   ;;  %vm3293_vm9 = vmmov 0  }
  0x3c   : > { %3069 = vset.pattern.permute.xlu0 %v4986_v8  ;;  %3070 = vset.pattern.permute.xlu1 %v4986_v8  ;;  %v423_v12 = vpack.c.bf16 %v415_v10, %v411_v9  ;;  %v414_v15 = vld [vmem:[%s3436_s30 + $0x20] sm:$0xff]  ;;  %v425_v16 = vpack.c.bf16 %v417_v13, %v413_v11  ;;  %v412_v18 = vld [vmem:[%s3436_s30 + $0x10] sm:$0xff]  ;;  %v427_v23 = vld [vmem:[%s4965_s6 + $0x8] sm:$0xff]  ;;  %s3286_s11 = smov 15   ;;  %s5008_s12 = smov 1   ;;  %vm1789_vm10 = vcmask 261120  }
  0x3d   : > { %v422_v17 = vpack.c.bf16 %v414_v15, %v410_v14  ;;  %v416_v19 = vld [vmem:[%s3436_s30 + $0x30] sm:$0xff]  ;;  %v3071_v21 = vld [vmem:[%s4960_s1] sm:$0xff]   ;;  %v429_v25 = vld [vmem:[%s4965_s6 + $0x18] sm:$0xff]  ;;  %s4984_s18 = smov 127   ;;  %s4978_s20 = smov 113   ;;  %vm1867_vm11 = vcmask 64512  }
  0x3e   : > { %481 = vmatprep.subr.bf16.mxu0 %v423_v12  ;;  %v424_v20 = vpack.c.bf16 %v416_v19, %v412_v18  ;;  %v426_v22 = vld [vmem:[%s4965_s6] sm:$0xff]  ;;  %534 = vmatprep.subr.bf16.mxu1 %v425_v16  ;;  %v428_v24 = vld [vmem:[%s4965_s6 + $0x10] sm:$0xff]  ;;  %v3072_v27 = vld [vmem:[%s4960_s1 + $0x8] sm:$0xff]   ;;  %s4976_s21 = smov 112   ;;  %s4980_s27 = smov 111   ;;  %vm1880_vm12 = vcmask 1043456  }
  0x3f   : > { %482 = vmatpush1.bf16.msra.mxu0 %v422_v17  ;;  %432 = vperm.xlu0 %3069, %v426_v22   ;;  %v1471_v26 = vld [vmem:[%s4965_s6 + $0x20] sm:$0xff]  ;;  %v1472_v28 = vld [vmem:[%s4965_s6 + $0x28] sm:$0xff]  ;;  %v1473_v29 = vld [vmem:[%s4965_s6 + $0x30] sm:$0xff]  ;;  %s5078_s29 = smov 16   ;;  %s5089_s28 = smov 111  }
  0x40   : > { %535 = vmatpush1.bf16.msra.mxu1 %v424_v20  ;;  %442 = vperm.xlu1 %3070, %v428_v24   ;;  %v1474_v30 = vld [vmem:[%s4965_s6 + $0x38] sm:$0xff]  ;;  %s5093_s22 = smov 17   ;;  %p5225_p6 = scmp.ne.s32.totalorder %s5073_s24, 0 }
  0x42   : > { %2821 = vmatmul.mubr.msk.bf16.vlgmr.msra.gmra.mxu0 %vm460_vm0, %v3071_v21 }
  0x43   : > { %2823 = vmatmul.mubr.msk.bf16.vlgmr.msra.gmra.mxu1 %vm460_vm0, %v3071_v21  ;;  %509 = vmatprep.mubr.bf16.mxu0 %v4986_v8 }
  0x44   : > { %437 = vperm.xlu0 %3069, %v427_v23   ;;  %562 = vmatprep.mubr.bf16.mxu1 %v4986_v8  ;;  %v737_v8 = vld [vmem:[#allocation3] sm:$0xff] }
  0x45   : > { %447 = vperm.xlu1 %3070, %v429_v25  }
  0x48   : > { %1477 = vperm.xlu0 %3069, %v1471_v26  }
  0x49   : > { %1482 = vperm.xlu1 %3070, %v1472_v28  }
  0x4a   : > { %2822 = vmatmul.mubr.msk.bf16.gmra.mxu0 %vm460_vm0, %v3072_v27 }
  0x4b   : > { %2824 = vmatmul.mubr.msk.bf16.gmra.mxu1 %vm460_vm0, %v3072_v27 }
  0x4c   : > { %1487 = vperm.xlu0 %3069, %v1473_v29  }
  0x4d   : > { %1492 = vperm.xlu1 %3070, %v1474_v30   ;;  %v3073_v30 = vld [vmem:[%s4966_s7 + $0x78] sm:$0xff]  }
  0x4e   : > { %2893 = vmatprep.subr.bf16.mxu0 %v3073_v30 }
  0xba   : > { %v433_v31 = vpop.permute.xlu0 %432 }
  0xbb   : > { %v3576_v27 = vpop.permute.xlu1 %442 }
  0xbf   : > { %v438_v36 = vpop.permute.xlu0 %437 }
 0x102   : > { %v501_v32 = vpop.f32.mrf.mxu0 }
 0x103   : > { %v502_v33 = vadd.f32 %v501_v32, %v433_v31  ;;  %v554_v34 = vpop.f32.mrf.mxu1  ;;  %v3595_v32 = vpop.permute.xlu1 %447 }
 0x104   : > { %v503_v35 = vpop.f32.mrf.mxu0  ;;  %v555_v43 = vadd.f32 %v554_v34, %v433_v31 }
 0x105   : > { %v573_v37 = vadd.f32 3.0, %v502_v33  ;;  %v556_v38 = vpop.f32.mrf.mxu1  ;;  %v504_v63 = vadd.f32 %v503_v35, %v433_v31 }
 0x106   : > { %v505_v39 = vpop.f32.mrf.mxu0  ;;  %v575_v49 = vadd.f32 3.0, %v555_v43  ;;  %v557_v2 = vadd.f32 %v556_v38, %v433_v31  ;;  %v3074_v31 = vld [vmem:[%s4966_s7 + $0x38] sm:$0xff]  }
 0x107   : > { %v589_v40 = vmax.f32 %v573_v37, 0.0  ;;  %v506_v41 = vadd.f32 %v505_v39, %v438_v36  ;;  %v558_v45 = vpop.f32.mrf.mxu1  ;;  %v574_v1 = vadd.f32 3.0, %v504_v63  ;;  %2894 = vmatpush3.bf16.msra.mxu0 %v3074_v31  ;;  %v3076_v37 = vld [vmem:[%s4966_s7 + $0x30] sm:$0xff]  }
 0x108   : > { %v559_v51 = vadd.f32 %v558_v45, %v438_v36  ;;  %v591_v53 = vmax.f32 %v575_v49, 0.0  ;;  %v507_v0 = vpop.f32.mrf.mxu0  ;;  %v576_v6 = vadd.f32 3.0, %v557_v2  ;;  %v3078_v49 = vld [vmem:[%s4966_s7 + $0x28] sm:$0xff]  }
 0x109   : > { %v605_v42 = vmin.f32 %v589_v40, 6.0  ;;  %v577_v44 = vadd.f32 3.0, %v506_v41  ;;  %v508_v3 = vadd.f32 %v507_v0, %v438_v36  ;;  %v560_v4 = vpop.f32.mrf.mxu1  ;;  %v590_v5 = vmax.f32 %v574_v1, 0.0  ;;  %v3082_v0 = vld [vmem:[%s4966_s7 + $0x18] sm:$0xff]   ;;  %v3083_v1 = vld [vmem:[%s4966_s7 + $0x50] sm:$0xff]  }
 0x10a   : > { %v579_v55 = vadd.f32 3.0, %v559_v51  ;;  %v607_v56 = vmin.f32 %v591_v53, 6.0  ;;  %v561_v9 = vadd.f32 %v560_v4, %v438_v36  ;;  %v592_v11 = vmax.f32 %v576_v6, 0.0  ;;  %v511_v26 = vpop.f32.mrf.mxu0  ;;  %v3075_v36 = vld [vmem:[%s4966_s7 + $0x70] sm:$0xff]   ;;  %v3663_v6 = vpop.permute.xlu0 %1477 }
 0x10b   : > { %v621_v46 = vmul.f32 %v605_v42, %v502_v33  ;;  %v593_v47 = vmax.f32 %v577_v44, 0.0  ;;  %v578_v7 = vadd.f32 3.0, %v508_v3  ;;  %v606_v10 = vmin.f32 %v590_v5, 6.0  ;;  %2895 = vmatprep.subr.bf16.mxu0 %v3075_v36  ;;  %v564_v40 = vpop.f32.mrf.mxu1  ;;  %v3084_v4 = vld [vmem:[%s4966_s7 + $0x10] sm:$0xff]   ;;  %v3085_v5 = vld [vmem:[%s4966_s7 + $0x48] sm:$0xff]   ;;  %5079 = vst [vmem:[#allocation13_spill] sm:$0xff] %v3663_v6 }
 0x10c   : > { %v595_v57 = vmax.f32 %v579_v55, 0.0  ;;  %v623_v58 = vmul.f32 %v607_v56, %v555_v43  ;;  %v580_v13 = vadd.f32 3.0, %v561_v9  ;;  %v608_v15 = vmin.f32 %v592_v11, 6.0  ;;  %v3582_v28 = vpop.f32.mrf.mxu0  ;;  %2896 = vmatpush3.bf16.msra.mxu0 %v3076_v37  ;;  %v3079_v56 = vld [vmem:[%s4966_s7 + $0x60] sm:$0xff]  }
 0x10d   : > { %v3490_v48 = vmul.f32 0.16666667, %v621_v46  ;;  %v609_v50 = vmin.f32 %v593_v47, 6.0  ;;  %v594_v12 = vmax.f32 %v578_v7, 0.0  ;;  %v622_v14 = vmul.f32 %v606_v10, %v504_v63  ;;  %v3616_v43 = vpop.f32.mrf.mxu1  ;;  %v3077_v47 = vld [vmem:[%s4966_s7 + $0x68] sm:$0xff]   ;;  %v3081_v63 = vld [vmem:[%s4966_s7 + $0x58] sm:$0xff]  }
 0x10e   : > { %v611_v59 = vmin.f32 %v595_v57, 6.0  ;;  %v3508_v60 = vmul.f32 0.16666667, %v623_v58  ;;  %v596_v17 = vmax.f32 %v580_v13, 0.0  ;;  %v624_v19 = vmul.f32 %v608_v15, %v557_v2  ;;  %v515_v33 = vpop.f32.mrf.mxu0  ;;  %2897 = vmatprep.subr.bf16.mxu0 %v3077_v47  ;;  %v3080_v57 = vld [vmem:[%s4966_s7 + $0x20] sm:$0xff]   ;;  %v3086_v10 = vld [vmem:[%s4966_s7 + $0x8] sm:$0xff]   ;;  %v3681_v13 = vpop.permute.xlu0 %1487 }
 0x10f   : > { %v625_v52 = vmul.f32 %v609_v50, %v506_v41  ;;  %686 = vrot.lane.b32.xlu0 %v3490_v48, %s4982_s19  ;;  %v610_v16 = vmin.f32 %v594_v12, 6.0  ;;  %v3544_v18 = vmul.f32 0.16666667, %v622_v14  ;;  %v512_v29 = vadd.f32 %v511_v26, %v3576_v27  ;;  %v568_v50 = vpop.f32.mrf.mxu1  ;;  %v3087_v11 = vld [vmem:[%s4966_s7 + $0x40] sm:$0xff]   ;;  %v3675_v12 = vpop.permute.xlu1 %1482  ;;  %5081 = vst [vmem:[#allocation15_spill] sm:$0xff] %v3681_v13 }
 0x110   : > { %v627_v61 = vmul.f32 %v611_v59, %v559_v51  ;;  %v612_v21 = vmin.f32 %v596_v17, 6.0  ;;  %v3550_v22 = vmul.f32 0.16666667, %v624_v19  ;;  %v516_v35 = vadd.f32 %v515_v33, %v3595_v32  ;;  %2898 = vmatpush3.bf16.msra.mxu0 %v3078_v49  ;;  %5080 = vst [vmem:[#allocation14_spill] sm:$0xff] %v3675_v12 }
 0x111   : > { %v3494_v54 = vmul.f32 0.16666667, %v625_v52  ;;  %v626_v20 = vmul.f32 %v610_v16, %v508_v3  ;;  %v581_v34 = vadd.f32 3.0, %v512_v29  ;;  %v565_v45 = vadd.f32 %v564_v40, %v3576_v27  ;;  %2899 = vmatprep.subr.bf16.mxu0 %v3079_v56  ;;  %v3088_v16 = vld [vmem:[%s4966_s7] sm:$0xff]  }
 0x112   : > { %v3514_v62 = vmul.f32 0.16666667, %v627_v61  ;;  %5076 = vst [vmem:[#allocation11_spill] sm:$0xff] %v3550_v22  ;;  %v628_v24 = vmul.f32 %v612_v21, %v561_v9  ;;  %v585_v39 = vadd.f32 3.0, %v516_v35  ;;  %v569_v55 = vadd.f32 %v568_v50, %v3595_v32 }
 0x113   : > { %688 = vrot.lane.b32.xlu1 %v3494_v54, %s4982_s19  ;;  %785 = vrot.lane.b32.xlu0 %v3490_v48, %s4974_s26  ;;  %v3552_v23 = vmul.f32 0.16666667, %v626_v20  ;;  %v597_v38 = vmax.f32 %v581_v34, 0.0  ;;  %v583_v52 = vadd.f32 3.0, %v565_v45  ;;  %v3694_v19 = vpop.permute.xlu1 %1492  ;;  %v514_v21 = vadd.f32 %v3582_v28, %v3576_v27 }
 0x114   : > { %v3558_v25 = vmul.f32 0.16666667, %v628_v24  ;;  %v601_v42 = vmax.f32 %v585_v39, 0.0  ;;  %v587_v61 = vadd.f32 3.0, %v569_v55  ;;  %2900 = vmatpush3.bf16.msra.mxu0 %v3080_v57  ;;  %5084 = vst [vmem:[#allocation17_spill] sm:$0xff] %v3694_v19  ;;  %v567_v31 = vadd.f32 %v3616_v43, %v3576_v27  ;;  %v658_v19 = vld [vmem:[#allocation3 + $0x220] sm:$0xff] }
 0x115   : > { %v613_v41 = vmin.f32 %v597_v38, 6.0  ;;  %v599_v58 = vmax.f32 %v583_v52, 0.0  ;;  %2901 = vmatprep.subr.bf16.mxu0 %v3081_v63  ;;  %v582_v30 = vadd.f32 3.0, %v514_v21 }
 0x116   : > { %5077 = vst [vmem:[#allocation12_spill] sm:$0xff] %v3558_v25  ;;  %v617_v46 = vmin.f32 %v601_v42, 6.0  ;;  %v603_v3 = vmax.f32 %v587_v61, 0.0  ;;  %v584_v37 = vadd.f32 3.0, %v567_v31 }
 0x117   : > { %787 = vrot.lane.b32.xlu1 %v3494_v54, %s4974_s26  ;;  %883 = vrot.lane.b32.xlu0 %v3490_v48, %s3286_s11  ;;  %v629_v44 = vmul.f32 %v613_v41, %v512_v29  ;;  %v615_v2 = vmin.f32 %v599_v58, 6.0  ;;  %v517_v29 = vpop.f32.mrf.mxu0  ;;  %v598_v36 = vmax.f32 %v582_v30, 0.0 }
 0x118   : > { %v633_v53 = vmul.f32 %v617_v46, %v516_v35  ;;  %2902 = vmatpush3.bf16.msra.mxu0 %v3082_v0  ;;  %v619_v9 = vmin.f32 %v603_v3, 6.0  ;;  %v518_v33 = vadd.f32 %v517_v29, %v3595_v32  ;;  %v570_v35 = vpop.f32.mrf.mxu1  ;;  %v600_v42 = vmax.f32 %v584_v37, 0.0 }
 0x119   : > { %v3629_v51 = vmul.f32 0.16666667, %v629_v44  ;;  %2903 = vmatprep.subr.bf16.mxu0 %v3083_v1  ;;  %v631_v7 = vmul.f32 %v615_v2, %v565_v45  ;;  %v571_v39 = vadd.f32 %v570_v35, %v3595_v32  ;;  %v614_v41 = vmin.f32 %v598_v36, 6.0 }
 0x11a   : > { %v3642_v59 = vmul.f32 0.16666667, %v633_v53  ;;  %v635_v15 = vmul.f32 %v619_v9, %v569_v55  ;;  %v586_v38 = vadd.f32 3.0, %v518_v33  ;;  %v616_v47 = vmin.f32 %v600_v42, 6.0 }
 0x11b   : > { %885 = vrot.lane.b32.xlu1 %v3494_v54, %s3286_s11  ;;  %981 = vrot.lane.b32.xlu0 %v3490_v48, %s5008_s12  ;;  %v3683_v14 = vmul.f32 0.16666667, %v631_v7  ;;  %v588_v44 = vadd.f32 3.0, %v571_v39  ;;  %v630_v32 = vmul.f32 %v614_v41, %v514_v21 }
 0x11c   : > { %2904 = vmatpush3.bf16.msra.mxu0 %v3084_v4  ;;  %v3692_v17 = vmul.f32 0.16666667, %v635_v15  ;;  %v602_v43 = vmax.f32 %v586_v38, 0.0  ;;  %v632_v56 = vmul.f32 %v616_v47, %v567_v31  ;;  %v718_v38 = vlaneseq  ;;  %v738_v47 = vld [vmem:[#allocation3 + $0x8] sm:$0xff] }
 0x11d   : > { %2905 = vmatprep.subr.bf16.mxu0 %v3085_v5  ;;  %v604_v50 = vmax.f32 %v588_v44, 0.0  ;;  %v3748_v55 = vmul.f32 0.16666667, %v630_v32  ;;  %v655_v32 = vld [vmem:[#allocation3 + $0x208] sm:$0xff] }
 0x11e   : > { %5083 = vst [vmem:[#allocation16_spill] sm:$0xff] %v3692_v17  ;;  %v618_v49 = vmin.f32 %v602_v43, 6.0  ;;  %v3758_v0 = vmul.f32 0.16666667, %v632_v56  ;;  %v3832_v42 = vand.u32 127, %v718_v38  ;;  %v654_v38 = vld [vmem:[#allocation3 + $0x200] sm:$0xff] }
 0x11f   : > { %983 = vrot.lane.b32.xlu1 %v3494_v54, %s5008_s12  ;;  %1095 = vrot.lane.b32.xlu0 %v3508_v60, %s4984_s18  ;;  %5090 = vst [vmem:[#allocation20_spill] sm:$0xff] %v3748_v55  ;;  %v620_v58 = vmin.f32 %v604_v50, 6.0 }
 0x120   : > { %2906 = vmatpush3.bf16.msra.mxu0 %v3086_v10  ;;  %v634_v57 = vmul.f32 %v618_v49, %v518_v33  ;;  %5094 = vst [vmem:[#allocation23_spill] sm:$0xff] %v3758_v0  ;;  %vm720_vm1 = vcmp.lt.s32.totalorder %v3832_v42, 17  ;;  %vm817_vm2 = vcmp.lt.s32.totalorder %v3832_v42, 16  ;;  %vm915_vm3 = vcmp.lt.s32.totalorder %v3832_v42, 15 }
 0x121   : > { %2907 = vmatprep.subr.bf16.mxu0 %v3087_v11  ;;  %v636_v2 = vmul.f32 %v620_v58, %v571_v39  ;;  %v742_v58 = vld [vmem:[#allocation3 + $0x28] sm:$0xff]  ;;  %vm1013_vm4 = vcmp.lt.s32.totalorder %v3832_v42, 1  ;;  %vm1111_vm5 = vcmp.lt.s32.totalorder %v3832_v42, 127  ;;  %vm1209_vm6 = vcmp.lt.s32.totalorder %v3832_v42, 113 }
 0x122   : > { %v3760_v1 = vmul.f32 0.16666667, %v634_v57  ;;  %v659_v57 = vld [vmem:[#allocation3 + $0x228] sm:$0xff]  ;;  %vm1307_vm7 = vcmp.lt.s32.totalorder %v3832_v42, 112  ;;  %vm1405_vm8 = vcmp.lt.s32.totalorder %v3832_v42, 111 }
 0x123   : > { %1097 = vrot.lane.b32.xlu1 %v3514_v62, %s4984_s18  ;;  %1079 = vrot.lane.b32.xlu0 %v3490_v48, %s4984_s18  ;;  %v3770_v5 = vmul.f32 0.16666667, %v636_v2 }
 0x124   : > { %2908 = vmatpush3.bf16.msra.mxu0 %v3088_v16 }
 0x125   : > { %5097 = vst [vmem:[#allocation26_spill] sm:$0xff] %v3770_v5 }
 0x127   : > { %1081 = vrot.lane.b32.xlu1 %v3494_v54, %s4984_s18  ;;  %1193 = vrot.lane.b32.xlu0 %v3508_v60, %s4978_s20 }
 0x12b   : > { %1195 = vrot.lane.b32.xlu1 %v3514_v62, %s4978_s20  ;;  %1177 = vrot.lane.b32.xlu0 %v3490_v48, %s4978_s20 }
 0x12f   : > { %1179 = vrot.lane.b32.xlu1 %v3494_v54, %s4978_s20  ;;  %1291 = vrot.lane.b32.xlu0 %v3508_v60, %s4976_s21 }
 0x133   : > { %1293 = vrot.lane.b32.xlu1 %v3514_v62, %s4976_s21  ;;  %1275 = vrot.lane.b32.xlu0 %v3490_v48, %s4976_s21 }
 0x137   : > { %1277 = vrot.lane.b32.xlu1 %v3494_v54, %s4976_s21  ;;  %1389 = vrot.lane.b32.xlu0 %v3508_v60, %s4980_s27 }
 0x13b   : > { %1391 = vrot.lane.b32.xlu1 %v3514_v62, %s4980_s27  ;;  %1373 = vrot.lane.b32.xlu0 %v3490_v48, %s4980_s27 }
 0x13f   : > { %1375 = vrot.lane.b32.xlu1 %v3494_v54, %s4980_s27  ;;  %694 = vrot.lane.b32.xlu0 %v3544_v18, %s4982_s19 }
 0x143   : > { %696 = vrot.lane.b32.xlu1 %v3552_v23, %s4982_s19  ;;  %710 = vrot.lane.b32.xlu0 %v3550_v22, %s4982_s19 }
 0x147   : > { %712 = vrot.lane.b32.xlu1 %v3558_v25, %s4982_s19  ;;  %793 = vrot.lane.b32.xlu0 %v3544_v18, %s4974_s26 }
 0x14b   : > { %795 = vrot.lane.b32.xlu1 %v3552_v23, %s4974_s26  ;;  %809 = vrot.lane.b32.xlu0 %v3550_v22, %s4974_s26 }
 0x14f   : > { %811 = vrot.lane.b32.xlu1 %v3558_v25, %s4974_s26  ;;  %891 = vrot.lane.b32.xlu0 %v3544_v18, %s3286_s11 }
 0x153   : > { %893 = vrot.lane.b32.xlu1 %v3552_v23, %s3286_s11  ;;  %907 = vrot.lane.b32.xlu0 %v3550_v22, %s3286_s11 }
 0x157   : > { %909 = vrot.lane.b32.xlu1 %v3558_v25, %s3286_s11  ;;  %989 = vrot.lane.b32.xlu0 %v3544_v18, %s5008_s12 }
 0x15b   : > { %991 = vrot.lane.b32.xlu1 %v3552_v23, %s5008_s12  ;;  %1005 = vrot.lane.b32.xlu0 %v3550_v22, %s5008_s12 }
 0x15f   : > { %1007 = vrot.lane.b32.xlu1 %v3558_v25, %s5008_s12  ;;  %1087 = vrot.lane.b32.xlu0 %v3544_v18, %s4984_s18  ;;  %v675_v25 = vmul.f32 %v659_v57, %v3552_v23 }
 0x163   : > { %1089 = vrot.lane.b32.xlu1 %v3552_v23, %s4984_s18  ;;  %1185 = vrot.lane.b32.xlu0 %v3544_v18, %s4978_s20 }
 0x167   : > { %1187 = vrot.lane.b32.xlu1 %v3552_v23, %s4978_s20  ;;  %1283 = vrot.lane.b32.xlu0 %v3544_v18, %s4976_s21  ;;  %s5082_s20 = smov 127  }
 0x16b   : > { %1285 = vrot.lane.b32.xlu1 %v3552_v23, %s4976_s21  ;;  %1381 = vrot.lane.b32.xlu0 %v3544_v18, %s4980_s27  ;;  %s5085_s21 = smov 113  }
 0x16f   : > { %1383 = vrot.lane.b32.xlu1 %v3552_v23, %s4980_s27  ;;  %690 = vrot.lane.b32.xlu0 %v3629_v51, %s4982_s19  ;;  %s5086_s27 = smov 112  }
 0x173   : > { %692 = vrot.lane.b32.xlu1 %v3642_v59, %s4982_s19  ;;  %789 = vrot.lane.b32.xlu0 %v3629_v51, %s5078_s29 }
 0x177   : > { %791 = vrot.lane.b32.xlu1 %v3642_v59, %s5078_s29  ;;  %887 = vrot.lane.b32.xlu0 %v3629_v51, %s3286_s11 }
 0x17b   : > { %889 = vrot.lane.b32.xlu1 %v3642_v59, %s3286_s11  ;;  %985 = vrot.lane.b32.xlu0 %v3629_v51, %s5008_s12 }
 0x17f   : > { %987 = vrot.lane.b32.xlu1 %v3642_v59, %s5008_s12  ;;  %1099 = vrot.lane.b32.xlu0 %v3683_v14, %s5082_s20 }
 0x181   : > { %v3696_v20 = vpop.permute.xlu0 %686 }
 0x183   : > { %1101 = vrot.lane.b32.xlu1 %v3692_v17, %s5082_s20  ;;  %1083 = vrot.lane.b32.xlu0 %v3629_v51, %s5082_s20 }
 0x185   : > { %v3704_v24 = vpop.permute.xlu1 %688  ;;  %v3706_v26 = vpop.permute.xlu0 %785 }
 0x187   : > { %1085 = vrot.lane.b32.xlu1 %v3642_v59, %s5082_s20  ;;  %1197 = vrot.lane.b32.xlu0 %v3683_v14, %s5085_s21 }
 0x189   : > { %v3715_v34 = vpop.permute.xlu1 %787  ;;  %v3717_v28 = vpop.permute.xlu0 %883 }
 0x18b   : > { %1199 = vrot.lane.b32.xlu1 %v3692_v17, %s5085_s21  ;;  %1181 = vrot.lane.b32.xlu0 %v3629_v51, %s5085_s21 }
 0x18d   : > { %v3724_v40 = vpop.permute.xlu1 %885  ;;  %v3726_v27 = vpop.permute.xlu0 %981 }
 0x18f   : > { %1183 = vrot.lane.b32.xlu1 %v3642_v59, %s5085_s21  ;;  %1295 = vrot.lane.b32.xlu0 %v3683_v14, %s5086_s27 }
 0x191   : > { %v3732_v45 = vpop.permute.xlu1 %983  ;;  %v3734_v46 = vpop.permute.xlu0 %1095 }
 0x192   : > { %5087 = vst [vmem:[#allocation18_spill] sm:$0xff] %v3734_v46 }
 0x193   : > { %1297 = vrot.lane.b32.xlu1 %v3692_v17, %s5086_s27  ;;  %1279 = vrot.lane.b32.xlu0 %v3629_v51, %s5086_s27 }
 0x195   : > { %v3740_v52 = vpop.permute.xlu1 %1097  ;;  %v3742_v53 = vpop.permute.xlu0 %1079 }
 0x196   : > { %5088 = vst [vmem:[#allocation19_spill] sm:$0xff] %v3742_v53 }
 0x197   : > { %1281 = vrot.lane.b32.xlu1 %v3642_v59, %s5086_s27  ;;  %1393 = vrot.lane.b32.xlu0 %v3683_v14, %s5089_s28 }
 0x199   : > { %v3750_v61 = vpop.permute.xlu1 %1081  ;;  %v3752_v63 = vpop.permute.xlu0 %1193 }
 0x19a   : > { %5091 = vst [vmem:[#allocation21_spill] sm:$0xff] %v3750_v61  ;;  %5092 = vst [vmem:[#allocation22_spill] sm:$0xff] %v3752_v63 }
 0x19b   : > { %1395 = vrot.lane.b32.xlu1 %v3692_v17, %s5089_s28  ;;  %698 = vrot.lane.b32.xlu0 %v3748_v55, %s5093_s22 }
 0x19d   : > { %v3762_v3 = vpop.permute.xlu1 %1195  ;;  %v3764_v4 = vpop.permute.xlu0 %1177 }
 0x19e   : > { %5095 = vst [vmem:[#allocation24_spill] sm:$0xff] %v3762_v3  ;;  %5096 = vst [vmem:[#allocation25_spill] sm:$0xff] %v3764_v4 }
 0x19f   : > { %700 = vrot.lane.b32.xlu1 %v3760_v1, %s5093_s22  ;;  %714 = vrot.lane.b32.xlu0 %v3758_v0, %s5093_s22 }
 0x1a1   : > { %v3772_v7 = vpop.permute.xlu1 %1179  ;;  %v3774_v9 = vpop.permute.xlu0 %1291 }
 0x1a2   : > { %5098 = vst [vmem:[#allocation27_spill] sm:$0xff] %v3772_v7  ;;  %5099 = vst [vmem:[#allocation28_spill] sm:$0xff] %v3774_v9 }
 0x1a3   : > { %716 = vrot.lane.b32.xlu1 %v3770_v5, %s5093_s22  ;;  %797 = vrot.lane.b32.xlu0 %v3748_v55, %s5078_s29 }
 0x1a5   : > { %v3780_v10 = vpop.permute.xlu1 %1293  ;;  %v3782_v11 = vpop.permute.xlu0 %1275 }
 0x1a6   : > { %5100 = vst [vmem:[#allocation29_spill] sm:$0xff] %v3780_v10  ;;  %5101 = vst [vmem:[#allocation30_spill] sm:$0xff] %v3782_v11 }
 0x1a7   : > { %799 = vrot.lane.b32.xlu1 %v3760_v1, %s5078_s29  ;;  %813 = vrot.lane.b32.xlu0 %v3758_v0, %s5078_s29 }
 0x1a9   : > { %v3788_v15 = vpop.permute.xlu1 %1277  ;;  %v3790_v16 = vpop.permute.xlu0 %1389 }
 0x1aa   : > { %5102 = vst [vmem:[#allocation31_spill] sm:$0xff] %v3788_v15  ;;  %5103 = vst [vmem:[#allocation32_spill] sm:$0xff] %v3790_v16 }
 0x1ab   : > { %815 = vrot.lane.b32.xlu1 %v3770_v5, %s5078_s29  ;;  %895 = vrot.lane.b32.xlu0 %v3748_v55, %s3286_s11 }
 0x1ad   : > { %v3796_v21 = vpop.permute.xlu1 %1391  ;;  %v3798_v29 = vpop.permute.xlu0 %1373 }
 0x1ae   : > { %5104 = vst [vmem:[#allocation33_spill] sm:$0xff] %v3796_v21  ;;  %5105 = vst [vmem:[#allocation34_spill] sm:$0xff] %v3798_v29 }
 0x1af   : > { %897 = vrot.lane.b32.xlu1 %v3760_v1, %s3286_s11  ;;  %911 = vrot.lane.b32.xlu0 %v3758_v0, %s3286_s11 }
 0x1b1   : > { %v3804_v30 = vpop.permute.xlu1 %1375  ;;  %v3806_v31 = vpop.permute.xlu0 %694 }
 0x1b2   : > { %5106 = vst [vmem:[#allocation35_spill] sm:$0xff] %v3804_v30  ;;  %5107 = vst [vmem:[#allocation36_spill] sm:$0xff] %v3806_v31  ;;  %v729_v49 = vsel %vm720_vm1, %v3696_v20, %v3806_v31 }
 0x1b3   : > { %913 = vrot.lane.b32.xlu1 %v3770_v5, %s3286_s11  ;;  %993 = vrot.lane.b32.xlu0 %v3748_v55, %s5008_s12  ;;  %v754_v13 = vmul.f32 %v738_v47, %v729_v49 }
 0x1b5   : > { %v3812_v33 = vpop.permute.xlu1 %696  ;;  %v3814_v35 = vpop.permute.xlu0 %710 }
 0x1b6   : > { %5108 = vst [vmem:[#allocation37_spill] sm:$0xff] %v3812_v33  ;;  %5109 = vst [vmem:[#allocation38_spill] sm:$0xff] %v3814_v35  ;;  %v730_v2 = vsel %vm720_vm1, %v3704_v24, %v3812_v33  ;;  %v733_v31 = vsel %vm720_vm1, %v3814_v35, %v3696_v20  ;;  %v671_v35 = vmul.f32 %v655_v32, %v3544_v18  ;;  %v835_v32 = vld [vmem:[#allocation3 + $0x80] sm:$0xff] }
 0x1b7   : > { %995 = vrot.lane.b32.xlu1 %v3760_v1, %s5008_s12  ;;  %1009 = vrot.lane.b32.xlu0 %v3758_v0, %s5008_s12  ;;  %v836_v0 = vld [vmem:[#allocation3 + $0x88] sm:$0xff]  ;;  %v758_v22 = vmul.f32 %v742_v58, %v730_v2  ;;  %v753_v17 = vmul.f32 %v737_v8, %v733_v31 }
 0x1b8   : > { %v770_v8 = vadd.f32 %v754_v13, %v671_v35  ;;  %v934_v31 = vld [vmem:[#allocation3 + $0x108] sm:$0xff] }
 0x1b9   : > { %v3820_v36 = vpop.permute.xlu1 %712  ;;  %v3822_v37 = vpop.permute.xlu0 %793 }
 0x1ba   : > { %5110 = vst [vmem:[#allocation39_spill] sm:$0xff] %v3820_v36  ;;  %5111 = vst [vmem:[#allocation40_spill] sm:$0xff] %v3822_v37  ;;  %v734_v33 = vsel %vm720_vm1, %v3820_v36, %v3704_v24  ;;  %v826_v20 = vsel %vm817_vm2, %v3706_v26, %v3822_v37  ;;  %v674_v24 = vmul.f32 %v658_v19, %v3494_v54  ;;  %v840_v36 = vld [vmem:[#allocation3 + $0xa8] sm:$0xff]  ;;  %v839_v54 = vld [vmem:[#allocation3 + $0xa0] sm:$0xff] }
 0x1bb   : > { %1011 = vrot.lane.b32.xlu1 %v3770_v5, %s5008_s12  ;;  %1091 = vrot.lane.b32.xlu0 %v3748_v55, %s5082_s20  ;;  %v741_v5 = vld [vmem:[#allocation3 + $0x20] sm:$0xff]  ;;  %v852_v23 = vmul.f32 %v836_v0, %v826_v20  ;;  %s5119_s12 = smov 1  }
 0x1bc   : > { %v757_v18 = vmul.f32 %v741_v5, %v734_v33  ;;  %v1591_v0 = vld [vmem:[%s4965_s6 + $0x40] sm:$0xff]  ;;  %v938_v33 = vld [vmem:[#allocation3 + $0x128] sm:$0xff] }
 0x1bd   : > { %v3828_v39 = vpop.permute.xlu1 %795  ;;  %v3830_v41 = vpop.permute.xlu0 %809  ;;  %v868_v20 = vadd.f32 %v852_v23, %v770_v8 }
 0x1be   : > { %v827_v37 = vsel %vm817_vm2, %v3715_v34, %v3828_v39 }
 0x1bf   : > { %1093 = vrot.lane.b32.xlu1 %v3760_v1, %s5082_s20  ;;  %1189 = vrot.lane.b32.xlu0 %v3748_v55, %s5085_s21  ;;  %v856_v5 = vmul.f32 %v840_v36, %v827_v37  ;;  %v937_v36 = vld [vmem:[#allocation3 + $0x120] sm:$0xff] }
 0x1c1   : > { %v3838_v43 = vpop.permute.xlu1 %811  ;;  %v3840_v44 = vpop.permute.xlu0 %891 }
 0x1c2   : > { %5112 = vst [vmem:[#allocation41_spill] sm:$0xff] %v3840_v44  ;;  %v831_v19 = vsel %vm817_vm2, %v3838_v43, %v3715_v34  ;;  %v924_v13 = vsel %vm915_vm3, %v3717_v28, %v3840_v44  ;;  %v1032_v44 = vld [vmem:[#allocation3 + $0x188] sm:$0xff] }
 0x1c3   : > { %1191 = vrot.lane.b32.xlu1 %v3760_v1, %s5085_s21  ;;  %1287 = vrot.lane.b32.xlu0 %v3748_v55, %s5086_s27 }
 0x1c5   : > { %v3852_v50 = vpop.permute.xlu1 %893  ;;  %v3854_v56 = vpop.permute.xlu0 %907 }
 0x1c6   : > { %5113 = vst [vmem:[#allocation42_spill] sm:$0xff] %v3852_v50  ;;  %v925_v34 = vsel %vm915_vm3, %v3724_v40, %v3852_v50  ;;  %v855_v50 = vmul.f32 %v839_v54, %v831_v19  ;;  %v1036_v54 = vld [vmem:[#allocation3 + $0x1a8] sm:$0xff] }
 0x1c7   : > { %1289 = vrot.lane.b32.xlu1 %v3760_v1, %s5086_s27  ;;  %1385 = vrot.lane.b32.xlu0 %v3748_v55, %s5089_s28  ;;  %v670_v55 = vmul.f32 %v654_v38, %v3490_v48  ;;  %v830_v48 = vsel %vm817_vm2, %v3830_v41, %v3706_v26  ;;  %v774_v26 = vadd.f32 %v758_v22, %v675_v25  ;;  %v933_v22 = vld [vmem:[#allocation3 + $0x100] sm:$0xff] }
 0x1c8   : > { %v851_v2 = vmul.f32 %v835_v32, %v830_v48  ;;  %v928_v25 = vsel %vm915_vm3, %v3854_v56, %v3717_v28  ;;  %v773_v38 = vadd.f32 %v757_v18, %v674_v24  ;;  %v1031_v32 = vld [vmem:[#allocation3 + $0x180] sm:$0xff]  ;;  %v1592_v24 = vld [vmem:[%s4965_s6 + $0x48] sm:$0xff]  ;;  %v1593_v18 = vld [vmem:[%s4965_s6 + $0x50] sm:$0xff] }
 0x1c9   : > { %v3879_v47 = vpop.permute.xlu1 %909  ;;  %v3881_v49 = vpop.permute.xlu0 %989  ;;  %v769_v58 = vadd.f32 %v753_v17, %v670_v55  ;;  %v950_v17 = vmul.f32 %v934_v31, %v924_v13  ;;  %v954_v55 = vmul.f32 %v938_v33, %v925_v34  ;;  %v872_v23 = vadd.f32 %v856_v5, %v774_v26  ;;  %v1129_v34 = vld [vmem:[#allocation3 + $0x280] sm:$0xff]  ;;  %v1130_v26 = vld [vmem:[#allocation3 + $0x288] sm:$0xff] }
 0x1ca   : > { %5114 = vst [vmem:[#allocation43_spill] sm:$0xff] %v3879_v47  ;;  %5115 = vst [vmem:[#allocation44_spill] sm:$0xff] %v3881_v49  ;;  %v929_v37 = vsel %vm915_vm3, %v3879_v47, %v3724_v40  ;;  %v1022_v28 = vsel %vm1013_vm4, %v3726_v27, %v3881_v49  ;;  %v949_v48 = vmul.f32 %v933_v22, %v928_v25  ;;  %v1228_v49 = vld [vmem:[#allocation3 + $0x308] sm:$0xff] }
 0x1cb   : > { %1387 = vrot.lane.b32.xlu1 %v3760_v1, %s5089_s28  ;;  %1377 = vrot.lane.b32.xlu0 %v3629_v51, %s5089_s28  ;;  %v953_v8 = vmul.f32 %v937_v36, %v929_v37  ;;  %v867_v13 = vadd.f32 %v851_v2, %v769_v58  ;;  %v871_v25 = vadd.f32 %v855_v50, %v773_v38 }
 0x1cc   : > { %v1048_v36 = vmul.f32 %v1032_v44, %v1022_v28  ;;  %v966_v58 = vadd.f32 %v950_v17, %v868_v20  ;;  %v970_v2 = vadd.f32 %v954_v55, %v872_v23  ;;  %v1595_v28 = vld [vmem:[%s4965_s6 + $0x60] sm:$0xff]  ;;  %v1134_v17 = vld [vmem:[#allocation3 + $0x2a8] sm:$0xff] }
 0x1cd   : > { %v3914_v35 = vpop.permute.xlu1 %991  ;;  %v3916_v57 = vpop.permute.xlu0 %1005  ;;  %v969_v47 = vadd.f32 %v953_v8, %v871_v25  ;;  %v1133_v20 = vld [vmem:[#allocation3 + $0x2a0] sm:$0xff]  ;;  %v1232_v25 = vld [vmem:[#allocation3 + $0x328] sm:$0xff] }
 0x1ce   : > { %5116 = vst [vmem:[#allocation45_spill] sm:$0xff] %v3914_v35  ;;  %5117 = vst [vmem:[#allocation46_spill] sm:$0xff] %v3916_v57  ;;  %v1026_v40 = vsel %vm1013_vm4, %v3916_v57, %v3726_v27  ;;  %v1023_v19 = vsel %vm1013_vm4, %v3732_v45, %v3914_v35  ;;  %v965_v57 = vadd.f32 %v949_v48, %v867_v13  ;;  %v1326_v13 = vld [vmem:[#allocation3 + $0x388] sm:$0xff] }
 0x1cf   : > { %1379 = vrot.lane.b32.xlu1 %v3642_v59, %s5089_s28  ;;  %1786 = vperm.xlu0 %3069, %v1591_v0   ;;  %v1035_v0 = vld [vmem:[#allocation3 + $0x1a0] sm:$0xff]  ;;  %v1047_v37 = vmul.f32 %v1031_v32, %v1026_v40 }
 0x1d1   : > { %v3947_v31 = vpop.permute.xlu1 %1007  ;;  %v1088_v27 = vpop.permute.xlu0 %1087  ;;  %v1063_v23 = vadd.f32 %v1047_v37, %v965_v57 }
 0x1d2   : > { %5118 = vst [vmem:[#allocation47_spill] sm:$0xff] %v3947_v31  ;;  %v1027_v33 = vsel %vm1013_vm4, %v3947_v31, %v3732_v45  ;;  %v1116_v5 = vsel %vm1111_vm5, %v1088_v27, %v3734_v46  ;;  %v1120_v22 = vsel %vm1111_vm5, %v3742_v53, %v1088_v27  ;;  %v1052_v45 = vmul.f32 %v1036_v54, %v1023_v19  ;;  %v1227_v31 = vld [vmem:[#allocation3 + $0x300] sm:$0xff]  ;;  %v1594_v46 = vld [vmem:[%s4965_s6 + $0x58] sm:$0xff] }
 0x1d3   : > { %1951 = vperm.xlu1 %3070, %v1592_v24   ;;  %1956 = vperm.xlu0 %3069, %v1593_v18   ;;  %v1051_v35 = vmul.f32 %v1035_v0, %v1027_v33  ;;  %v1145_v27 = vmul.f32 %v1129_v34, %v1120_v22  ;;  %v1146_v50 = vmul.f32 %v1130_v26, %v1116_v5  ;;  %v1325_v0 = vld [vmem:[#allocation3 + $0x380] sm:$0xff] }
 0x1d4   : > { %v1064_v18 = vadd.f32 %v1048_v36, %v966_v58  ;;  %v1068_v54 = vadd.f32 %v1052_v45, %v970_v2  ;;  %v1231_v22 = vld [vmem:[#allocation3 + $0x320] sm:$0xff] }
 0x1d5   : > { %v1090_v44 = vpop.permute.xlu1 %1089  ;;  %v1186_v38 = vpop.permute.xlu0 %1185  ;;  %v1067_v19 = vadd.f32 %v1051_v35, %v969_v47  ;;  %v1161_v33 = vadd.f32 %v1145_v27, %v1063_v23  ;;  %v1329_v58 = vld [vmem:[#allocation3 + $0x3a0] sm:$0xff]  ;;  %v1330_v27 = vld [vmem:[#allocation3 + $0x3a8] sm:$0xff] }
 0x1d6   : > { %v1117_v55 = vsel %vm1111_vm5, %v1090_v44, %v3740_v52  ;;  %v1121_v32 = vsel %vm1111_vm5, %v3750_v61, %v1090_v44  ;;  %v1214_v40 = vsel %vm1209_vm6, %v1186_v38, %v3752_v63  ;;  %v1218_v24 = vsel %vm1209_vm6, %v3764_v4, %v1186_v38  ;;  %v662_v4 = vld [vmem:[#allocation3 + $0x240] sm:$0xff] }
 0x1d7   : > { %v1243_v48 = vmul.f32 %v1227_v31, %v1218_v24  ;;  %v1244_v8 = vmul.f32 %v1228_v49, %v1214_v40  ;;  %1961 = vperm.xlu1 %3070, %v1594_v46   ;;  %1966 = vperm.xlu0 %3069, %v1595_v28   ;;  %v1162_v34 = vadd.f32 %v1146_v50, %v1064_v18  ;;  %v1423_v50 = vld [vmem:[#allocation3 + $0x400] sm:$0xff]  ;;  %v1424_v28 = vld [vmem:[#allocation3 + $0x408] sm:$0xff] }
 0x1d8   : > { %v1149_v26 = vmul.f32 %v1133_v20, %v1121_v32  ;;  %v1150_v5 = vmul.f32 %v1134_v17, %v1117_v55 }
 0x1d9   : > { %v1188_v44 = vpop.permute.xlu1 %1187  ;;  %v1284_v38 = vpop.permute.xlu0 %1283  ;;  %v1259_v57 = vadd.f32 %v1243_v48, %v1161_v33  ;;  %v1260_v31 = vadd.f32 %v1244_v8, %v1162_v34 }
 0x1da   : > { %v1215_v49 = vsel %vm1209_vm6, %v1188_v44, %v3762_v3  ;;  %v1219_v46 = vsel %vm1209_vm6, %v3772_v7, %v1188_v44  ;;  %v1312_v47 = vsel %vm1307_vm7, %v1284_v38, %v3774_v9  ;;  %v1316_v35 = vsel %vm1307_vm7, %v3782_v11, %v1284_v38  ;;  %v847_v9 = vld [vmem:[#allocation3 + $0xe0] sm:$0xff]  ;;  %v942_v3 = vld [vmem:[#allocation3 + $0x148] sm:$0xff] }
 0x1db   : > { %v1341_v36 = vmul.f32 %v1325_v0, %v1316_v35  ;;  %v1342_v37 = vmul.f32 %v1326_v13, %v1312_v47  ;;  %702 = vrot.lane.b32.xlu1 %v3508_v60, %s5093_s22  ;;  %v1247_v2 = vmul.f32 %v1231_v22, %v1219_v46  ;;  %v1248_v45 = vmul.f32 %v1232_v25, %v1215_v49 }
 0x1dc   : > { %704 = vrot.lane.b32.xlu0 %v3514_v62, %s5093_s22  ;;  %v1165_v20 = vadd.f32 %v1149_v26, %v1067_v19  ;;  %v1166_v17 = vadd.f32 %v1150_v5, %v1068_v54  ;;  %v1427_v26 = vld [vmem:[#allocation3 + $0x420] sm:$0xff]  ;;  %v1428_v5 = vld [vmem:[#allocation3 + $0x428] sm:$0xff] }
 0x1dd   : > { %v1357_v55 = vadd.f32 %v1341_v36, %v1259_v57  ;;  %v1358_v32 = vadd.f32 %v1342_v37, %v1260_v31  ;;  %v1286_v40 = vpop.permute.xlu1 %1285  ;;  %v1382_v24 = vpop.permute.xlu0 %1381 }
 0x1de   : > { %v1313_v18 = vsel %vm1307_vm7, %v1286_v40, %v3780_v10  ;;  %v1317_v23 = vsel %vm1307_vm7, %v3788_v15, %v1286_v40  ;;  %v1410_v48 = vsel %vm1405_vm8, %v1382_v24, %v3790_v16  ;;  %v1414_v8 = vsel %vm1405_vm8, %v3798_v29, %v1382_v24  ;;  %v667_v29 = vld [vmem:[#allocation3 + $0x268] sm:$0xff] }
 0x1df   : > { %v1345_v54 = vmul.f32 %v1329_v58, %v1317_v23  ;;  %v1346_v19 = vmul.f32 %v1330_v27, %v1313_v18  ;;  %v1439_v0 = vmul.f32 %v1423_v50, %v1414_v8  ;;  %v1440_v13 = vmul.f32 %v1424_v28, %v1410_v48  ;;  %801 = vrot.lane.b32.xlu1 %v3508_v60, %s5078_s29 }
 0x1e0   : > { %v1263_v33 = vadd.f32 %v1247_v2, %v1165_v20  ;;  %v1264_v34 = vadd.f32 %v1248_v45, %v1166_v17  ;;  %803 = vrot.lane.b32.xlu0 %v3514_v62, %s5078_s29 }
 0x1e1   : > { %v1455_v22 = vadd.f32 %v1439_v0, %v1357_v55  ;;  %v1456_v25 = vadd.f32 %v1440_v13, %v1358_v32  ;;  %v1384_v44 = vpop.permute.xlu1 %1383  ;;  %v4011_v38 = vpop.permute.xlu0 %690  ;;  %v5120_v13 = vld [vmem:[#allocation16_spill] sm:$0xff] }
 0x1e2   : > { %v1361_v49 = vadd.f32 %v1345_v54, %v1263_v33  ;;  %v1362_v46 = vadd.f32 %v1346_v19, %v1264_v34  ;;  %v1411_v47 = vsel %vm1405_vm8, %v1384_v44, %v3796_v21  ;;  %v1415_v35 = vsel %vm1405_vm8, %v3804_v30, %v1384_v44  ;;  %v5121_v44 = vld [vmem:[#allocation11_spill] sm:$0xff]  ;;  %v844_v30 = vld [vmem:[#allocation3 + $0xc8] sm:$0xff] }
 0x1e3   : > { %v1495_v57 = vadd.f32 %v3663_v6, %v1455_v22  ;;  %v1496_v31 = vadd.f32 %v3663_v6, %v1456_v25  ;;  %v1443_v36 = vmul.f32 %v1427_v26, %v1415_v35  ;;  %v1444_v37 = vmul.f32 %v1428_v5, %v1411_v47  ;;  %899 = vrot.lane.b32.xlu1 %v3508_v60, %s3286_s11  ;;  %v5123_v47 = vld [vmem:[#allocation12_spill] sm:$0xff]  ;;  %v749_v21 = vld [vmem:[#allocation3 + $0x60] sm:$0xff] }
 0x1e4   : > { %901 = vrot.lane.b32.xlu0 %v3514_v62, %s3286_s11 }
 0x1e5   : > { %v1511_v58 = vadd.f32 3.0, %v1495_v57  ;;  %v1512_v2 = vadd.f32 3.0, %v1496_v31  ;;  %v1459_v45 = vadd.f32 %v1443_v36, %v1361_v49  ;;  %v1460_v27 = vadd.f32 %v1444_v37, %v1362_v46  ;;  %v4025_v50 = vpop.permute.xlu1 %692  ;;  %v4027_v28 = vpop.permute.xlu0 %789 }
 0x1e7   : > { %v1527_v20 = vmax.f32 %v1511_v58, 0.0  ;;  %v1499_v17 = vadd.f32 %v3675_v12, %v1459_v45  ;;  %v1500_v55 = vadd.f32 %v3675_v12, %v1460_v27  ;;  %997 = vrot.lane.b32.xlu1 %v3508_v60, %s5119_s12  ;;  %v1528_v32 = vmax.f32 %v1512_v2, 0.0  ;;  %v745_v12 = vld [vmem:[#allocation3 + $0x40] sm:$0xff] }
 0x1e8   : > { %999 = vrot.lane.b32.xlu0 %v3514_v62, %s5119_s12 }
 0x1e9   : > { %v1543_v40 = vmin.f32 %v1527_v20, 6.0  ;;  %v1515_v24 = vadd.f32 3.0, %v1499_v17  ;;  %v1516_v18 = vadd.f32 3.0, %v1500_v55  ;;  %v4035_v23 = vpop.permute.xlu1 %791  ;;  %v4037_v48 = vpop.permute.xlu0 %887  ;;  %v1544_v8 = vmin.f32 %v1528_v32, 6.0 }
 0x1eb   : > { %v1531_v54 = vmax.f32 %v1515_v24, 0.0  ;;  %706 = vrot.lane.b32.xlu1 %v3683_v14, %s5093_s22  ;;  %v1532_v19 = vmax.f32 %v1516_v18, 0.0  ;;  %v1559_v0 = vmul.f32 %v1543_v40, %v1495_v57  ;;  %v1560_v22 = vmul.f32 %v1544_v8, %v1496_v31 }
 0x1ec   : > { %708 = vrot.lane.b32.xlu0 %v5120_v13, %s5093_s22 }
 0x1ed   : > { %v1547_v33 = vmin.f32 %v1531_v54, 6.0  ;;  %v4043_v34 = vpop.permute.xlu1 %889  ;;  %v4045_v26 = vpop.permute.xlu0 %985  ;;  %v1548_v5 = vmin.f32 %v1532_v19, 6.0  ;;  %v4049_v46 = vmul.f32 0.16666667, %v1559_v0  ;;  %v4059_v37 = vmul.f32 0.16666667, %v1560_v22 }
 0x1ee   : > { %v5135_v0 = vld [vmem:[#allocation23_spill] sm:$0xff] }
 0x1ef   : > { %v1563_v25 = vmul.f32 %v1547_v33, %v1499_v17  ;;  %1103 = vrot.lane.b32.xlu1 %v5121_v44, %s5082_s20  ;;  %v1564_v49 = vmul.f32 %v1548_v5, %v1500_v55  ;;  %5122 = vst [vmem:[#allocation16_spill] sm:$0xff] %v4049_v46  ;;  %5126 = vst [vmem:[#allocation48_spill] sm:$0xff] %v4059_v37  ;;  %v5136_v33 = vld [vmem:[#allocation26_spill] sm:$0xff] }
 0x1f0   : > { %1105 = vrot.lane.b32.xlu0 %v5123_v47, %s5082_s20 }
 0x1f1   : > { %v4053_v35 = vmul.f32 0.16666667, %v1563_v25  ;;  %v4055_v57 = vpop.permute.xlu1 %987  ;;  %v4057_v36 = vpop.permute.xlu0 %1099  ;;  %v4061_v58 = vmul.f32 0.16666667, %v1564_v49  ;;  %v746_v25 = vld [vmem:[#allocation3 + $0x48] sm:$0xff] }
 0x1f2   : > { %5125 = vst [vmem:[#allocation12_spill] sm:$0xff] %v4057_v36 }
 0x1f3   : > { %5124 = vst [vmem:[#allocation11_spill] sm:$0xff] %v4053_v35  ;;  %5127 = vst [vmem:[#allocation49_spill] sm:$0xff] %v4061_v58  ;;  %v1600_v31 = vpack.c.bf16 %v4053_v35, %v4049_v46  ;;  %805 = vrot.lane.b32.xlu1 %v3683_v14, %s5078_s29  ;;  %v1601_v2 = vpack.c.bf16 %v4061_v58, %v4059_v37  ;;  %v663_v58 = vld [vmem:[#allocation3 + $0x248] sm:$0xff] }
 0x1f4   : > { %807 = vrot.lane.b32.xlu0 %v5120_v13, %s5078_s29  ;;  %v750_v35 = vld [vmem:[#allocation3 + $0x68] sm:$0xff] }
 0x1f5   : > { %v4071_v45 = vpop.permute.xlu1 %1101  ;;  %1764 = vmatprep.mubr.bf16.mxu0 %v1601_v2  ;;  %v4073_v27 = vpop.permute.xlu0 %1083 }
 0x1f6   : > { %5128 = vst [vmem:[#allocation50_spill] sm:$0xff] %v4071_v45  ;;  %5129 = vst [vmem:[#allocation51_spill] sm:$0xff] %v4073_v27  ;;  %1765 = vmatmul.mubr.bf16.vlgmr.msra.gmra.mxu0 %v1600_v31 }
 0x1f7   : > { %1201 = vrot.lane.b32.xlu1 %v5121_v44, %s5085_s21 }
 0x1f8   : > { %1203 = vrot.lane.b32.xlu0 %v5123_v47, %s5085_s21 }
 0x1f9   : > { %v4079_v20 = vpop.permute.xlu1 %1085  ;;  %v4081_v17 = vpop.permute.xlu0 %1197 }
 0x1fa   : > { %5130 = vst [vmem:[#allocation52_spill] sm:$0xff] %v4079_v20  ;;  %5131 = vst [vmem:[#allocation53_spill] sm:$0xff] %v4081_v17 }
 0x1fb   : > { %903 = vrot.lane.b32.xlu1 %v3683_v14, %s3286_s11 }
 0x1fc   : > { %905 = vrot.lane.b32.xlu0 %v5120_v13, %s3286_s11  ;;  %s3294_s11 = smov [#allocation6]  }
 0x1fd   : > { %v4087_v55 = vpop.permute.xlu1 %1199  ;;  %v4089_v32 = vpop.permute.xlu0 %1181  ;;  %s3218_s29 = sshll.u32 %s3294_s11, 4  ;;  %s3219_s29 = int_to_ptr.vmem [resolvable:$false] %s3218_s29 }
 0x1fe   : > { %5132 = vst [vmem:[#allocation54_spill] sm:$0xff] %v4087_v55  ;;  %5133 = vst [vmem:[#allocation55_spill] sm:$0xff] %v4089_v32 }
 0x1ff   : > { %1299 = vrot.lane.b32.xlu1 %v5121_v44, %s5086_s27 }
 0x200   : > { %1301 = vrot.lane.b32.xlu0 %v5123_v47, %s5086_s27 }
 0x201   : > { %v4095_v40 = vpop.permute.xlu1 %1183  ;;  %v4097_v24 = vpop.permute.xlu0 %1295 }
 0x202   : > { %5134 = vst [vmem:[#allocation56_spill] sm:$0xff] %v4097_v24 }
 0x203   : > { %1001 = vrot.lane.b32.xlu1 %v3683_v14, %s5119_s12 }
 0x204   : > { %1003 = vrot.lane.b32.xlu0 %v5120_v13, %s5119_s12 }
 0x205   : > { %v4103_v18 = vpop.permute.xlu1 %1297  ;;  %v4105_v8 = vpop.permute.xlu0 %1279 }
 0x207   : > { %1397 = vrot.lane.b32.xlu1 %v5121_v44, %s5089_s28 }
 0x208   : > { %1399 = vrot.lane.b32.xlu0 %v5123_v47, %s5089_s28 }
 0x209   : > { %v4111_v54 = vpop.permute.xlu1 %1281  ;;  %v4113_v19 = vpop.permute.xlu0 %1393 }
 0x20b   : > { %1107 = vrot.lane.b32.xlu1 %v5135_v0, %s5082_s20 }
 0x20c   : > { %1109 = vrot.lane.b32.xlu0 %v5136_v33, %s5082_s20  ;;  %s3220_s20 = scalar_lea.vmem %s3219_s29, 2048 }
 0x20d   : > { %v4119_v5 = vpop.permute.xlu1 %1395  ;;  %v4121_v22 = vpop.permute.xlu0 %698 }
 0x20e   : > { %v731_v49 = vsel %vm720_vm1, %v4011_v38, %v4121_v22 }
 0x20f   : > { %1205 = vrot.lane.b32.xlu1 %v5135_v0, %s5085_s21  ;;  %v762_v37 = vmul.f32 %v746_v25, %v731_v49  ;;  %v5137_v25 = vld [vmem:[#allocation20_spill] sm:$0xff] }
 0x210   : > { %1207 = vrot.lane.b32.xlu0 %v5136_v33, %s5085_s21  ;;  %v679_v49 = vmul.f32 %v663_v58, %v5137_v25  ;;  %v683_v58 = vmul.f32 %v667_v29, %v3760_v1  ;;  %v843_v25 = vld [vmem:[#allocation3 + $0xc0] sm:$0xff]  ;;  %v1597_v29 = vld [vmem:[%s4965_s6 + $0x70] sm:$0xff] }
 0x211   : > { %v4131_v31 = vpop.permute.xlu1 %700  ;;  %v4133_v2 = vpop.permute.xlu0 %714 }
 0x212   : > { %v732_v46 = vsel %vm720_vm1, %v4025_v50, %v4131_v31  ;;  %v735_v6 = vsel %vm720_vm1, %v4133_v2, %v4011_v38  ;;  %v778_v53 = vadd.f32 %v762_v37, %v679_v49  ;;  %v666_v37 = vld [vmem:[#allocation3 + $0x260] sm:$0xff] }
 0x213   : > { %1303 = vrot.lane.b32.xlu1 %v5135_v0, %s5086_s27  ;;  %v766_v7 = vmul.f32 %v750_v35, %v732_v46  ;;  %v761_v38 = vmul.f32 %v745_v12, %v735_v6  ;;  %v848_v35 = vld [vmem:[#allocation3 + $0xe8] sm:$0xff]  ;;  %v678_v12 = vmul.f32 %v662_v4, %v3629_v51 }
 0x214   : > { %1305 = vrot.lane.b32.xlu0 %v5136_v33, %s5086_s27  ;;  %v1596_v6 = vld [vmem:[%s4965_s6 + $0x68] sm:$0xff] }
 0x215   : > { %v4148_v15 = vpop.permute.xlu1 %716  ;;  %v4150_v11 = vpop.permute.xlu0 %797 }
 0x216   : > { %5138 = vst [vmem:[#allocation23_spill] sm:$0xff] %v4150_v11  ;;  %v828_v61 = vsel %vm817_vm2, %v4027_v28, %v4150_v11  ;;  %v736_v46 = vsel %vm720_vm1, %v4148_v15, %v4025_v50  ;;  %v782_v50 = vadd.f32 %v766_v7, %v683_v58  ;;  %v1598_v7 = vld [vmem:[%s4965_s6 + $0x78] sm:$0xff]  ;;  %v682_v58 = vmul.f32 %v666_v37, %v3642_v59 }
 0x217   : > { %v860_v16 = vmul.f32 %v844_v30, %v828_v61  ;;  %1401 = vrot.lane.b32.xlu1 %v5135_v0, %s5089_s28  ;;  %v765_v4 = vmul.f32 %v749_v21, %v736_v46  ;;  %v1599_v21 = vld [vmem:[%s4965_s6 + $0x80] sm:$0xff] }
 0x218   : > { %1403 = vrot.lane.b32.xlu0 %v5136_v33, %s5089_s28  ;;  %s2892_s28 = sshll.u32 %s3374_s17, 9  ;;  %s5224_s17 = sand.u32 1, %s3270_s14  }
 0x219   : > { %v876_v61 = vadd.f32 %v860_v16, %v778_v53  ;;  %v4169_v30 = vpop.permute.xlu1 %799  ;;  %v4171_v1 = vpop.permute.xlu0 %813  ;;  %v777_v53 = vadd.f32 %v761_v38, %v678_v12  ;;  %v781_v38 = vadd.f32 %v765_v4, %v682_v58  ;;  %s4911_s26 = scalar_lea.hbm %s4969_s10, %s2892_s28  ;;  %s4918_s19 = scalar_lea.sflag [#allocation5], %s5224_s17 }
 0x21a   : > { %5139 = vst [vmem:[#allocation20_spill] sm:$0xff] %v4169_v30  ;;  %v829_v49 = vsel %vm817_vm2, %v4035_v23, %v4169_v30  ;;  %v832_v51 = vsel %vm817_vm2, %v4171_v1, %v4027_v28 }
 0x21b   : > { %v864_v16 = vmul.f32 %v848_v35, %v829_v49  ;;  %v859_v10 = vmul.f32 %v843_v25, %v832_v51  ;;  %1999 = vperm.xlu1 %3070, %v1596_v6   ;;  %v946_v35 = vld [vmem:[#allocation3 + $0x168] sm:$0xff]  ;;  %v941_v25 = vld [vmem:[#allocation3 + $0x140] sm:$0xff] }
 0x21c   : > { %2004 = vperm.xlu0 %3069, %v1597_v29   ;;  %v945_v49 = vld [vmem:[#allocation3 + $0x160] sm:$0xff]  ;;  %v1040_v51 = vld [vmem:[#allocation3 + $0x1c8] sm:$0xff] }
 0x21d   : > { %v880_v63 = vadd.f32 %v864_v16, %v782_v50  ;;  %v875_v30 = vadd.f32 %v859_v10, %v777_v53  ;;  %v4188_v11 = vpop.permute.xlu1 %815  ;;  %v4190_v33 = vpop.permute.xlu0 %895 }
 0x21e   : > { %v833_v28 = vsel %vm817_vm2, %v4188_v11, %v4035_v23  ;;  %v926_v59 = vsel %vm915_vm3, %v4037_v48, %v4190_v33 }
 0x21f   : > { %v863_v10 = vmul.f32 %v847_v9, %v833_v28  ;;  %v958_v46 = vmul.f32 %v942_v3, %v926_v59  ;;  %2009 = vperm.xlu1 %3070, %v1598_v7   ;;  %v1044_v28 = vld [vmem:[#allocation3 + $0x1e8] sm:$0xff]  ;;  %v1039_v59 = vld [vmem:[#allocation3 + $0x1c0] sm:$0xff] }
 0x220   : > { %2014 = vperm.xlu0 %3069, %v1599_v21  }
 0x221   : > { %v879_v6 = vadd.f32 %v863_v10, %v781_v38  ;;  %v974_v12 = vadd.f32 %v958_v46, %v876_v61  ;;  %v4203_v29 = vpop.permute.xlu1 %897  ;;  %v4205_v50 = vpop.permute.xlu0 %911 }
 0x222   : > { %v927_v23 = vsel %vm915_vm3, %v4043_v34, %v4203_v29  ;;  %v930_v3 = vsel %vm915_vm3, %v4205_v50, %v4037_v48 }
 0x223   : > { %v962_v9 = vmul.f32 %v946_v35, %v927_v23  ;;  %v957_v37 = vmul.f32 %v941_v25, %v930_v3  ;;  %v1043_v23 = vld [vmem:[#allocation3 + $0x1e0] sm:$0xff] }
 0x225   : > { %v978_v53 = vadd.f32 %v962_v9, %v880_v63  ;;  %v973_v61 = vadd.f32 %v957_v37, %v875_v30  ;;  %v4215_v4 = vpop.permute.xlu1 %913  ;;  %v4217_v16 = vpop.permute.xlu0 %993 }
 0x226   : > { %v931_v7 = vsel %vm915_vm3, %v4215_v4, %v4043_v34  ;;  %v1024_v48 = vsel %vm1013_vm4, %v4045_v26, %v4217_v16 }
 0x227   : > { %v961_v58 = vmul.f32 %v945_v49, %v931_v7  ;;  %v1056_v21 = vmul.f32 %v1040_v51, %v1024_v48  ;;  %v1138_v51 = vld [vmem:[#allocation3 + $0x2c8] sm:$0xff]  ;;  %v1137_v48 = vld [vmem:[#allocation3 + $0x2c0] sm:$0xff] }
 0x229   : > { %v977_v63 = vadd.f32 %v961_v58, %v879_v6  ;;  %v1072_v30 = vadd.f32 %v1056_v21, %v974_v12  ;;  %v4227_v38 = vpop.permute.xlu1 %995  ;;  %v4229_v10 = vpop.permute.xlu0 %1009  ;;  %v1236_v21 = vld [vmem:[#allocation3 + $0x348] sm:$0xff] }
 0x22a   : > { %5140 = vst [vmem:[#allocation57_spill] sm:$0xff] %v4227_v38  ;;  %v1025_v34 = vsel %vm1013_vm4, %v4055_v57, %v4227_v38  ;;  %v1028_v46 = vsel %vm1013_vm4, %v4229_v10, %v4045_v26 }
 0x22b   : > { %v1060_v35 = vmul.f32 %v1044_v28, %v1025_v34  ;;  %v1055_v25 = vmul.f32 %v1039_v59, %v1028_v46  ;;  %v1142_v59 = vld [vmem:[#allocation3 + $0x2e8] sm:$0xff] }
 0x22d   : > { %v1076_v3 = vadd.f32 %v1060_v35, %v978_v53  ;;  %v1071_v6 = vadd.f32 %v1055_v25, %v973_v61  ;;  %v4239_v12 = vpop.permute.xlu1 %1011  ;;  %v1092_v9 = vpop.permute.xlu0 %1091  ;;  %v1235_v35 = vld [vmem:[#allocation3 + $0x340] sm:$0xff] }
 0x22e   : > { %5141 = vst [vmem:[#allocation58_spill] sm:$0xff] %v4239_v12  ;;  %v1029_v37 = vsel %vm1013_vm4, %v4239_v12, %v4055_v57  ;;  %v1118_v7 = vsel %vm1111_vm5, %v1092_v9, %v4057_v36  ;;  %v1122_v53 = vsel %vm1111_vm5, %v4073_v27, %v1092_v9  ;;  %v1239_v36 = vld [vmem:[#allocation3 + $0x360] sm:$0xff] }
 0x22f   : > { %v1059_v49 = vmul.f32 %v1043_v23, %v1029_v37  ;;  %v1154_v57 = vmul.f32 %v1138_v51, %v1118_v7  ;;  %v1153_v46 = vmul.f32 %v1137_v48, %v1122_v53 }
 0x231   : > { %v1075_v26 = vadd.f32 %v1059_v49, %v977_v63  ;;  %v1094_v61 = vpop.permute.xlu1 %1093  ;;  %v1190_v58 = vpop.permute.xlu0 %1189  ;;  %v1334_v63 = vld [vmem:[#allocation3 + $0x3c8] sm:$0xff]  ;;  %v1141_v49 = vld [vmem:[#allocation3 + $0x2e0] sm:$0xff]  ;;  %v1170_v27 = vadd.f32 %v1154_v57, %v1072_v30 }
 0x232   : > { %v1216_v28 = vsel %vm1209_vm6, %v1190_v58, %v4081_v17  ;;  %v1119_v34 = vsel %vm1111_vm5, %v1094_v61, %v4071_v45  ;;  %v1220_v25 = vsel %vm1209_vm6, %v4089_v32, %v1190_v58  ;;  %v1123_v51 = vsel %vm1111_vm5, %v4079_v20, %v1094_v61  ;;  %v1240_v17 = vld [vmem:[#allocation3 + $0x368] sm:$0xff]  ;;  %v1333_v58 = vld [vmem:[#allocation3 + $0x3c0] sm:$0xff] }
 0x233   : > { %v1252_v23 = vmul.f32 %v1236_v21, %v1216_v28  ;;  %v1158_v7 = vmul.f32 %v1142_v59, %v1119_v34  ;;  %v1169_v32 = vadd.f32 %v1153_v46, %v1071_v6  ;;  %v1251_v45 = vmul.f32 %v1235_v35, %v1220_v25  ;;  %v1338_v61 = vld [vmem:[#allocation3 + $0x3e8] sm:$0xff] }
 0x234   : > { %v1432_v59 = vld [vmem:[#allocation3 + $0x448] sm:$0xff]  ;;  %v1157_v34 = vmul.f32 %v1141_v49, %v1123_v51 }
 0x235   : > { %v1192_v9 = vpop.permute.xlu1 %1191  ;;  %v1288_v37 = vpop.permute.xlu0 %1287  ;;  %v1268_v20 = vadd.f32 %v1252_v23, %v1170_v27  ;;  %v1174_v57 = vadd.f32 %v1158_v7, %v1076_v3  ;;  %v1337_v27 = vld [vmem:[#allocation3 + $0x3e0] sm:$0xff]  ;;  %v1267_v23 = vadd.f32 %v1251_v45, %v1169_v32  ;;  %v1436_v3 = vld [vmem:[#allocation3 + $0x468] sm:$0xff] }
 0x236   : > { %v1217_v48 = vsel %vm1209_vm6, %v1192_v9, %v4087_v55  ;;  %v1314_v53 = vsel %vm1307_vm7, %v1288_v37, %v4097_v24  ;;  %v1318_v21 = vsel %vm1307_vm7, %v4105_v8, %v1288_v37  ;;  %v1221_v55 = vsel %vm1209_vm6, %v4095_v40, %v1192_v9  ;;  %v1431_v37 = vld [vmem:[#allocation3 + $0x440] sm:$0xff] }
 0x237   : > { %v1350_v28 = vmul.f32 %v1334_v63, %v1314_v53  ;;  %v1256_v38 = vmul.f32 %v1240_v17, %v1217_v48  ;;  %v1349_v12 = vmul.f32 %v1333_v58, %v1318_v21  ;;  %v1255_v9 = vmul.f32 %v1239_v36, %v1221_v55  ;;  %v5142_v36 = vld [vmem:[#allocation15_spill] sm:$0xff] }
 0x238   : > { %v1173_v49 = vadd.f32 %v1157_v34, %v1075_v26 }
 0x239   : > { %v1290_v24 = vpop.permute.xlu1 %1289  ;;  %v1386_v30 = vpop.permute.xlu0 %1385  ;;  %v1366_v46 = vadd.f32 %v1350_v28, %v1268_v20  ;;  %v1272_v51 = vadd.f32 %v1256_v38, %v1174_v57  ;;  %v1365_v58 = vadd.f32 %v1349_v12, %v1267_v23  ;;  %v1435_v28 = vld [vmem:[#allocation3 + $0x460] sm:$0xff] }
 0x23a   : > { %v1315_v63 = vsel %vm1307_vm7, %v1290_v24, %v4103_v18  ;;  %v1412_v6 = vsel %vm1405_vm8, %v1386_v30, %v4113_v19  ;;  %v1319_v35 = vsel %vm1307_vm7, %v4111_v54, %v1290_v24  ;;  %v1271_v38 = vadd.f32 %v1255_v9, %v1173_v49 }
 0x23b   : > { %v1354_v25 = vmul.f32 %v1338_v61, %v1315_v63  ;;  %v1448_v17 = vmul.f32 %v1432_v59, %v1412_v6  ;;  %v1353_v21 = vmul.f32 %v1337_v27, %v1319_v35  ;;  %v5143_v6 = vld [vmem:[#allocation17_spill] sm:$0xff] }
 0x23d   : > { %v1464_v7 = vadd.f32 %v1448_v17, %v1366_v46  ;;  %v1388_v48 = vpop.permute.xlu1 %1387  ;;  %v4284_v53 = vpop.permute.xlu0 %1377  ;;  %v1370_v45 = vadd.f32 %v1354_v25, %v1272_v51  ;;  %v1369_v57 = vadd.f32 %v1353_v21, %v1271_v38 }
 0x23e   : > { %v1413_v20 = vsel %vm1405_vm8, %v1388_v48, %v4119_v5  ;;  %v1416_v24 = vsel %vm1405_vm8, %v4284_v53, %v1386_v30 }
 0x23f   : > { %v1504_v55 = vadd.f32 %v5142_v36, %v1464_v7  ;;  %v1452_v32 = vmul.f32 %v1436_v3, %v1413_v20  ;;  %v1447_v26 = vmul.f32 %v1431_v37, %v1416_v24 }
 0x241   : > { %v1520_v61 = vadd.f32 3.0, %v1504_v55  ;;  %v1468_v59 = vadd.f32 %v1452_v32, %v1370_v45  ;;  %v1463_v34 = vadd.f32 %v1447_v26, %v1365_v58  ;;  %v4293_v12 = vpop.permute.xlu1 %1379 }
 0x242   : > { %v1417_v63 = vsel %vm1405_vm8, %v4293_v12, %v1388_v48 }
 0x243   : > { %v1508_v46 = vadd.f32 %v5143_v6, %v1468_v59  ;;  %v1503_v30 = vadd.f32 %v5142_v36, %v1463_v34  ;;  %v1451_v27 = vmul.f32 %v1435_v28, %v1417_v63  ;;  %v1536_v35 = vmax.f32 %v1520_v61, 0.0 }
 0x245   : > { %v1524_v25 = vadd.f32 3.0, %v1508_v46  ;;  %v1519_v17 = vadd.f32 3.0, %v1503_v30  ;;  %v1467_v23 = vadd.f32 %v1451_v27, %v1369_v57  ;;  %v1552_v9 = vmin.f32 %v1536_v35, 6.0  ;;  %v656_v27 = vld [vmem:[#allocation3 + $0x210] sm:$0xff] }
 0x246   : > { %v739_v35 = vld [vmem:[#allocation3 + $0x10] sm:$0xff] }
 0x247   : > { %v1507_v3 = vadd.f32 %v5143_v6, %v1467_v23  ;;  %v1540_v37 = vmax.f32 %v1524_v25, 0.0  ;;  %v1535_v49 = vmax.f32 %v1519_v17, 0.0  ;;  %v1568_v58 = vmul.f32 %v1552_v9, %v1504_v55  ;;  %v740_v25 = vld [vmem:[#allocation3 + $0x18] sm:$0xff]  ;;  %v743_v9 = vld [vmem:[#allocation3 + $0x30] sm:$0xff] }
 0x248   : > { %v657_v17 = vld [vmem:[#allocation3 + $0x218] sm:$0xff] }
 0x249   : > { %v1523_v51 = vadd.f32 3.0, %v1507_v3  ;;  %v1556_v7 = vmin.f32 %v1540_v37, 6.0  ;;  %v1551_v21 = vmin.f32 %v1535_v49, 6.0  ;;  %v4303_v45 = vmul.f32 0.16666667, %v1568_v58  ;;  %v5153_v49 = vld [vmem:[#allocation38_spill] sm:$0xff] }
 0x24a   : > { %v4301_v20 = vpop.permute.xlu0 %1786  ;;  %v5152_v37 = vmov 0  }
 0x24b   : > { %v1572_v48 = vmul.f32 %v1556_v7, %v1508_v46  ;;  %v1539_v24 = vmax.f32 %v1523_v51, 0.0  ;;  %5144 = vst [vmem:[#allocation59_spill] sm:$0xff] %v4303_v45  ;;  %v1567_v38 = vmul.f32 %v1551_v21, %v1503_v30  ;;  %v5154_v7 = vld [vmem:[#allocation36_spill] sm:$0xff]  ;;  %v660_v21 = vld [vmem:[#allocation3 + $0x230] sm:$0xff] }
 0x24c   : > { %v676_v6 = vmul.f32 %v660_v21, %v3514_v62 }
 0x24d   : > { %v4305_v32 = vmul.f32 0.16666667, %v1572_v48  ;;  %v1555_v26 = vmin.f32 %v1539_v24, 6.0  ;;  %v4313_v55 = vmul.f32 0.16666667, %v1567_v38  ;;  %v661_v48 = vld [vmem:[#allocation3 + $0x238] sm:$0xff] }
 0x24e   : > { %v4307_v28 = vpop.permute.xlu1 %1951  ;;  %v4309_v61 = vpop.permute.xlu0 %1956 }
 0x24f   : > { %5145 = vst [vmem:[#allocation60_spill] sm:$0xff] %v4305_v32  ;;  %5146 = vst [vmem:[#allocation61_spill] sm:$0xff] %v4307_v28  ;;  %v1603_v59 = vpack.c.bf16 %v4305_v32, %v4303_v45  ;;  %v1571_v34 = vmul.f32 %v1555_v26, %v1507_v3  ;;  %v744_v3 = vld [vmem:[#allocation3 + $0x38] sm:$0xff]  ;;  %v672_v32 = vmul.f32 %v656_v27, %v3508_v60  ;;  %v5157_v60 = vld [vmem:[#allocation40_spill] sm:$0xff] }
 0x250   : > { %5147 = vst [vmem:[#allocation62_spill] sm:$0xff] %v4309_v61  ;;  %5148 = vst [vmem:[#allocation63_spill] sm:$0xff] %v4313_v55 }
 0x251   : > { %1772 = vmatprep.mubr.bf16.mxu0 %v1603_v59  ;;  %v4315_v57 = vmul.f32 0.16666667, %v1571_v34  ;;  %v5155_v59 = vld [vmem:[#allocation39_spill] sm:$0xff] }
 0x252   : > { %v4317_v63 = vpop.permute.xlu1 %1961  ;;  %v4319_v46 = vpop.permute.xlu0 %1966 }
 0x253   : > { %5149 = vst [vmem:[#allocation64_spill] sm:$0xff] %v4315_v57  ;;  %5150 = vst [vmem:[#allocation65_spill] sm:$0xff] %v4317_v63  ;;  %v1602_v30 = vpack.c.bf16 %v4315_v57, %v4313_v55 }
 0x254   : > { %5151 = vst [vmem:[#allocation66_spill] sm:$0xff] %v4319_v46 }
 0x255   : > { %1773 = vmatmul.mubr.bf16.gmra.mxu0 %v1602_v30  ;;  %v5156_v30 = vld [vmem:[#allocation37_spill] sm:$0xff] }
 0x256   : > { %v703_v23 = vpop.permute.xlu1 %702  ;;  %2176 = vmatprep.mubr.bf16.mxu0 %v5152_v37  ;;  %v705_v24 = vpop.permute.xlu0 %704 }
 0x257   : > { %v721_v51 = vsel %vm720_vm1, %v703_v23, %v5153_v49  ;;  %v725_v58 = vsel %vm720_vm1, %v5154_v7, %v703_v23  ;;  %v722_v34 = vsel %vm720_vm1, %v705_v24, %v5155_v59  ;;  %v726_v45 = vsel %vm720_vm1, %v5156_v30, %v705_v24  ;;  %v837_v23 = vld [vmem:[#allocation3 + $0x90] sm:$0xff]  ;;  %v838_v7 = vld [vmem:[#allocation3 + $0x98] sm:$0xff] }
 0x258   : > { %v755_v26 = vmul.f32 %v739_v35, %v725_v58  ;;  %v756_v38 = vmul.f32 %v740_v25, %v721_v51  ;;  %v673_v49 = vmul.f32 %v657_v17, %v5121_v44  ;;  %v759_v57 = vmul.f32 %v743_v9, %v726_v45  ;;  %v841_v51 = vld [vmem:[#allocation3 + $0xb0] sm:$0xff]  ;;  %v842_v58 = vld [vmem:[#allocation3 + $0xb8] sm:$0xff] }
 0x259   : > { %v760_v55 = vmul.f32 %v744_v3, %v722_v34  ;;  %v677_v35 = vmul.f32 %v661_v48, %v5123_v47  ;;  %v936_v48 = vld [vmem:[#allocation3 + $0x118] sm:$0xff]  ;;  %v939_v30 = vld [vmem:[#allocation3 + $0x130] sm:$0xff] }
 0x25a   : > { %v802_v25 = vpop.permute.xlu1 %801  ;;  %v771_v59 = vadd.f32 %v755_v26, %v672_v32  ;;  %v772_v36 = vadd.f32 %v756_v38, %v673_v49  ;;  %v804_v45 = vpop.permute.xlu0 %803  ;;  %v775_v32 = vadd.f32 %v759_v57, %v676_v6  ;;  %v940_v49 = vld [vmem:[#allocation3 + $0x138] sm:$0xff] }
 0x25b   : > { %v818_v24 = vsel %vm817_vm2, %v802_v25, %v3830_v41  ;;  %v822_v44 = vsel %vm817_vm2, %v5157_v60, %v802_v25  ;;  %v819_v62 = vsel %vm817_vm2, %v804_v45, %v3838_v43  ;;  %v823_v47 = vsel %vm817_vm2, %v3828_v39, %v804_v45  ;;  %v935_v41 = vld [vmem:[#allocation3 + $0x110] sm:$0xff] }
 0x25c   : > { %v853_v27 = vmul.f32 %v837_v23, %v822_v44  ;;  %v854_v17 = vmul.f32 %v838_v7, %v818_v24  ;;  %v776_v9 = vadd.f32 %v760_v55, %v677_v35  ;;  %v857_v3 = vmul.f32 %v841_v51, %v823_v47  ;;  %v5158_v25 = vld [vmem:[#allocation41_spill] sm:$0xff]  ;;  %v5159_v35 = vld [vmem:[#allocation43_spill] sm:$0xff]  ;;  %v5160_v51 = vld [vmem:[#allocation42_spill] sm:$0xff] }
 0x25d   : > { %v858_v21 = vmul.f32 %v842_v58, %v819_v62  ;;  %v1033_v60 = vld [vmem:[#allocation3 + $0x190] sm:$0xff]  ;;  %v1034_v44 = vld [vmem:[#allocation3 + $0x198] sm:$0xff] }
 0x25e   : > { %v869_v26 = vadd.f32 %v853_v27, %v771_v59  ;;  %v870_v38 = vadd.f32 %v854_v17, %v772_v36  ;;  %v900_v34 = vpop.permute.xlu1 %899  ;;  %v873_v23 = vadd.f32 %v857_v3, %v775_v32  ;;  %v902_v6 = vpop.permute.xlu0 %901  ;;  %v1037_v17 = vld [vmem:[#allocation3 + $0x1b0] sm:$0xff]  ;;  %v1038_v62 = vld [vmem:[#allocation3 + $0x1b8] sm:$0xff] }
 0x25f   : > { %v874_v7 = vadd.f32 %v858_v21, %v776_v9  ;;  %v916_v43 = vsel %vm915_vm3, %v900_v34, %v3854_v56  ;;  %v920_v39 = vsel %vm915_vm3, %v5158_v25, %v900_v34  ;;  %v917_v36 = vsel %vm915_vm3, %v902_v6, %v5159_v35  ;;  %v5161_v9 = vld [vmem:[#allocation46_spill] sm:$0xff]  ;;  %v5162_v21 = vld [vmem:[#allocation44_spill] sm:$0xff]  ;;  %v747_v35 = vld [vmem:[#allocation3 + $0x50] sm:$0xff] }
 0x260   : > { %v951_v55 = vmul.f32 %v935_v41, %v920_v39  ;;  %v952_v57 = vmul.f32 %v936_v48, %v916_v43  ;;  %v921_v58 = vsel %vm915_vm3, %v5160_v51, %v902_v6  ;;  %v956_v24 = vmul.f32 %v940_v49, %v917_v36  ;;  %v5163_v49 = vld [vmem:[#allocation47_spill] sm:$0xff] }
 0x261   : > { %v955_v59 = vmul.f32 %v939_v30, %v921_v58  ;;  %v748_v58 = vld [vmem:[#allocation3 + $0x58] sm:$0xff] }
 0x262   : > { %v967_v56 = vadd.f32 %v951_v55, %v869_v26  ;;  %v968_v45 = vadd.f32 %v952_v57, %v870_v38  ;;  %v998_v27 = vpop.permute.xlu1 %997  ;;  %v972_v32 = vadd.f32 %v956_v24, %v874_v7  ;;  %v1000_v48 = vpop.permute.xlu0 %999  ;;  %v5164_v38 = vld [vmem:[#allocation45_spill] sm:$0xff] }
 0x263   : > { %v971_v47 = vadd.f32 %v955_v59, %v873_v23  ;;  %v1014_v3 = vsel %vm1013_vm4, %v998_v27, %v5161_v9  ;;  %v1018_v41 = vsel %vm1013_vm4, %v5162_v21, %v998_v27  ;;  %v1015_v26 = vsel %vm1013_vm4, %v1000_v48, %v5163_v49  ;;  %v664_v24 = vld [vmem:[#allocation3 + $0x250] sm:$0xff]  ;;  %v752_v27 = vld [vmem:[#allocation3 + $0x78] sm:$0xff] }
 0x264   : > { %v1049_v34 = vmul.f32 %v1033_v60, %v1018_v41  ;;  %v1050_v30 = vmul.f32 %v1034_v44, %v1014_v3  ;;  %v1019_v23 = vsel %vm1013_vm4, %v5164_v38, %v1000_v48  ;;  %v1054_v43 = vmul.f32 %v1038_v62, %v1015_v26  ;;  %v665_v60 = vld [vmem:[#allocation3 + $0x258] sm:$0xff]  ;;  %v1131_v44 = vld [vmem:[#allocation3 + $0x290] sm:$0xff] }
 0x265   : > { %v1053_v7 = vmul.f32 %v1037_v17, %v1019_v23  ;;  %v668_v9 = vld [vmem:[#allocation3 + $0x270] sm:$0xff]  ;;  %v5165_v3 = vld [vmem:[#allocation18_spill] sm:$0xff]  ;;  %v680_v48 = vmul.f32 %v664_v24, %v3683_v14 }
 0x266   : > { %v1065_v25 = vadd.f32 %v1049_v34, %v967_v56  ;;  %v4376_v39 = vadd.f32 %v1050_v30, %v968_v45  ;;  %v707_v6 = vpop.permute.xlu1 %706  ;;  %v4378_v57 = vadd.f32 %v1054_v43, %v972_v32  ;;  %v709_v51 = vpop.permute.xlu0 %708  ;;  %v751_v45 = vld [vmem:[#allocation3 + $0x70] sm:$0xff]  ;;  %v681_v34 = vmul.f32 %v665_v60, %v5135_v0  ;;  %v846_v23 = vld [vmem:[#allocation3 + $0xd8] sm:$0xff]  ;;  %v5167_v0 = vld [vmem:[#allocation23_spill] sm:$0xff] }
 0x267   : > { %v1069_v55 = vadd.f32 %v1053_v7, %v971_v47  ;;  %v727_v36 = vsel %vm720_vm1, %v4121_v22, %v707_v6  ;;  %v723_v59 = vsel %vm720_vm1, %v707_v6, %v4133_v2  ;;  %v724_v17 = vsel %vm720_vm1, %v709_v51, %v4148_v15  ;;  %v1135_v47 = vld [vmem:[#allocation3 + $0x2b0] sm:$0xff]  ;;  %v669_v2 = vld [vmem:[#allocation3 + $0x278] sm:$0xff] }
 0x268   : > { %v763_v56 = vmul.f32 %v747_v35, %v727_v36  ;;  %v728_v22 = vsel %vm720_vm1, %v4131_v31, %v709_v51  ;;  %v764_v32 = vmul.f32 %v748_v58, %v723_v59  ;;  %v768_v49 = vmul.f32 %v752_v27, %v724_v17  ;;  %v845_v38 = vld [vmem:[#allocation3 + $0xd0] sm:$0xff]  ;;  %v5166_v6 = vld [vmem:[#allocation26_spill] sm:$0xff] }
 0x269   : > { %v767_v30 = vmul.f32 %v751_v45, %v728_v22  ;;  %v684_v43 = vmul.f32 %v668_v9, %v5120_v13  ;;  %v685_v35 = vmul.f32 %v669_v2, %v5166_v6  ;;  %v849_v51 = vld [vmem:[#allocation3 + $0xf0] sm:$0xff]  ;;  %v850_v58 = vld [vmem:[#allocation3 + $0xf8] sm:$0xff] }
 0x26a   : > { %v4392_v62 = vpop.permute.xlu1 %1103  ;;  %v4398_v41 = vpop.permute.xlu0 %1105  ;;  %v779_v7 = vadd.f32 %v763_v56, %v680_v48  ;;  %v780_v59 = vadd.f32 %v764_v32, %v681_v34  ;;  %v947_v6 = vld [vmem:[#allocation3 + $0x170] sm:$0xff] }
 0x26b   : > { %v1112_v21 = vsel %vm1111_vm5, %v5165_v3, %v4392_v62  ;;  %v1113_v31 = vsel %vm1111_vm5, %v3740_v52, %v4398_v41  ;;  %v784_v17 = vadd.f32 %v768_v49, %v685_v35  ;;  %v1233_v3 = vld [vmem:[#allocation3 + $0x330] sm:$0xff]  ;;  %v948_v35 = vld [vmem:[#allocation3 + $0x178] sm:$0xff] }
 0x26c   : > { %v1147_v15 = vmul.f32 %v1131_v44, %v1112_v21  ;;  %v1151_v26 = vmul.f32 %v1135_v47, %v1113_v31 }
 0x26e   : > { %v1163_v36 = vadd.f32 %v1147_v15, %v1065_v25  ;;  %v806_v14 = vpop.permute.xlu1 %805  ;;  %v1167_v24 = vadd.f32 %v1151_v26, %v1069_v55  ;;  %v808_v44 = vpop.permute.xlu0 %807  ;;  %v5168_v25 = vld [vmem:[#allocation20_spill] sm:$0xff]  ;;  %v783_v55 = vadd.f32 %v767_v30, %v684_v43  ;;  %v5169_v15 = vld [vmem:[#allocation22_spill] sm:$0xff] }
 0x26f   : > { %v820_v52 = vsel %vm817_vm2, %v806_v14, %v4171_v1  ;;  %v824_v60 = vsel %vm817_vm2, %v5167_v0, %v806_v14  ;;  %v821_v13 = vsel %vm817_vm2, %v808_v44, %v4188_v11  ;;  %v825_v27 = vsel %vm817_vm2, %v5168_v25, %v808_v44  ;;  %v1229_v1 = vld [vmem:[#allocation3 + $0x310] sm:$0xff]  ;;  %v5170_v30 = vld [vmem:[#allocation24_spill] sm:$0xff] }
 0x270   : > { %v861_v56 = vmul.f32 %v845_v38, %v824_v60  ;;  %v862_v45 = vmul.f32 %v846_v23, %v820_v52  ;;  %v865_v22 = vmul.f32 %v849_v51, %v825_v27  ;;  %v866_v47 = vmul.f32 %v850_v58, %v821_v13  ;;  %v943_v38 = vld [vmem:[#allocation3 + $0x150] sm:$0xff]  ;;  %v944_v23 = vld [vmem:[#allocation3 + $0x158] sm:$0xff] }
 0x271   : > { %v1331_v25 = vld [vmem:[#allocation3 + $0x3b0] sm:$0xff] }
 0x272   : > { %v877_v32 = vadd.f32 %v861_v56, %v779_v7  ;;  %v878_v9 = vadd.f32 %v862_v45, %v780_v59  ;;  %v4420_v2 = vpop.permute.xlu1 %1201  ;;  %v881_v21 = vadd.f32 %v865_v22, %v783_v55  ;;  %v882_v48 = vadd.f32 %v866_v47, %v784_v17  ;;  %v4426_v31 = vpop.permute.xlu0 %1203  ;;  %v1327_v56 = vld [vmem:[#allocation3 + $0x390] sm:$0xff]  ;;  %v5171_v55 = vld [vmem:[#allocation28_spill] sm:$0xff] }
 0x273   : > { %v1210_v11 = vsel %vm1209_vm6, %v5169_v15, %v4420_v2  ;;  %v1211_v49 = vsel %vm1209_vm6, %v5170_v30, %v4426_v31 }
 0x274   : > { %v1245_v34 = vmul.f32 %v1229_v1, %v1210_v11  ;;  %v1249_v26 = vmul.f32 %v1233_v3, %v1211_v49 }
 0x276   : > { %v1261_v7 = vadd.f32 %v1245_v34, %v1163_v36  ;;  %v904_v43 = vpop.permute.xlu1 %903  ;;  %v1265_v14 = vadd.f32 %v1249_v26, %v1167_v24  ;;  %v906_v59 = vpop.permute.xlu0 %905 }
 0x277   : > { %v918_v51 = vsel %vm915_vm3, %v904_v43, %v4205_v50  ;;  %v922_v58 = vsel %vm915_vm3, %v4190_v33, %v904_v43  ;;  %v919_v60 = vsel %vm915_vm3, %v906_v59, %v4215_v4  ;;  %v923_v36 = vsel %vm915_vm3, %v4203_v29, %v906_v59  ;;  %v5172_v29 = vld [vmem:[#allocation29_spill] sm:$0xff] }
 0x278   : > { %v959_v52 = vmul.f32 %v943_v38, %v922_v58  ;;  %v960_v0 = vmul.f32 %v944_v23, %v918_v51  ;;  %v963_v24 = vmul.f32 %v947_v6, %v923_v36  ;;  %v964_v44 = vmul.f32 %v948_v35, %v919_v60  ;;  %v5173_v23 = vld [vmem:[#allocation58_spill] sm:$0xff]  ;;  %v1425_v51 = vld [vmem:[#allocation3 + $0x410] sm:$0xff]  ;;  %v5175_v60 = vld [vmem:[#allocation32_spill] sm:$0xff] }
 0x27a   : > { %v975_v45 = vadd.f32 %v959_v52, %v877_v32  ;;  %v976_v50 = vadd.f32 %v960_v0, %v878_v9  ;;  %v4444_v13 = vpop.permute.xlu1 %1299  ;;  %v979_v33 = vadd.f32 %v963_v24, %v881_v21  ;;  %v980_v27 = vadd.f32 %v964_v44, %v882_v48  ;;  %v4450_v4 = vpop.permute.xlu0 %1301  ;;  %v1041_v32 = vld [vmem:[#allocation3 + $0x1d0] sm:$0xff]  ;;  %v1042_v9 = vld [vmem:[#allocation3 + $0x1d8] sm:$0xff] }
 0x27b   : > { %v1308_v17 = vsel %vm1307_vm7, %v5171_v55, %v4444_v13  ;;  %v1309_v47 = vsel %vm1307_vm7, %v5172_v29, %v4450_v4  ;;  %v1045_v21 = vld [vmem:[#allocation3 + $0x1f0] sm:$0xff]  ;;  %v1046_v48 = vld [vmem:[#allocation3 + $0x1f8] sm:$0xff] }
 0x27c   : > { %v1343_v22 = vmul.f32 %v1327_v56, %v1308_v17  ;;  %v1347_v1 = vmul.f32 %v1331_v25, %v1309_v47  ;;  %v5176_v56 = vld [vmem:[#allocation33_spill] sm:$0xff]  ;;  %v5177_v17 = vld [vmem:[#allocation12_spill] sm:$0xff] }
 0x27d   : > { %v1139_v25 = vld [vmem:[#allocation3 + $0x2d0] sm:$0xff] }
 0x27e   : > { %v1359_v3 = vadd.f32 %v1343_v22, %v1261_v7  ;;  %v1002_v15 = vpop.permute.xlu1 %1001  ;;  %v1363_v11 = vadd.f32 %v1347_v1, %v1265_v14  ;;  %v1004_v49 = vpop.permute.xlu0 %1003  ;;  %v5174_v7 = vld [vmem:[#allocation57_spill] sm:$0xff] }
 0x27f   : > { %v1016_v34 = vsel %vm1013_vm4, %v1002_v15, %v4229_v10  ;;  %v1020_v30 = vsel %vm1013_vm4, %v4217_v16, %v1002_v15  ;;  %v1017_v43 = vsel %vm1013_vm4, %v1004_v49, %v5173_v23  ;;  %v1021_v6 = vsel %vm1013_vm4, %v5174_v7, %v1004_v49  ;;  %v1429_v16 = vld [vmem:[#allocation3 + $0x430] sm:$0xff] }
 0x280   : > { %v1057_v26 = vmul.f32 %v1041_v32, %v1020_v30  ;;  %v1058_v38 = vmul.f32 %v1042_v9, %v1016_v34  ;;  %v1061_v35 = vmul.f32 %v1045_v21, %v1021_v6  ;;  %v1062_v14 = vmul.f32 %v1046_v48, %v1017_v43  ;;  %v1143_v1 = vld [vmem:[#allocation3 + $0x2f0] sm:$0xff]  ;;  %v5178_v32 = vld [vmem:[#allocation50_spill] sm:$0xff] }
 0x281   : > { %v5057_v48 = vmov 0.0  }
 0x282   : > { %v1073_v58 = vadd.f32 %v1057_v26, %v975_v45  ;;  %v4468_v10 = vadd.f32 %v1058_v38, %v976_v50  ;;  %v4470_v59 = vpop.permute.xlu1 %1397  ;;  %v1077_v52 = vadd.f32 %v1061_v35, %v979_v33  ;;  %v4472_v0 = vadd.f32 %v1062_v14, %v980_v27  ;;  %v4478_v24 = vpop.permute.xlu0 %1399  ;;  %2965 = vmatprep.subr.bf16.mxu1 %v5057_v48 }
 0x283   : > { %v1406_v36 = vsel %vm1405_vm8, %v5175_v60, %v4470_v59  ;;  %v1407_v45 = vsel %vm1405_vm8, %v5176_v56, %v4478_v24  ;;  %2969 = vmatprep.mubr.msk.bf16.mxu1 %vm3293_vm9, %v5057_v48 }
 0x284   : > { %v1441_v44 = vmul.f32 %v1425_v51, %v1406_v36  ;;  %v1445_v50 = vmul.f32 %v1429_v16, %v1407_v45  ;;  %v4511_v16 = vld [vmem:[%s4962_s3] sm:$0xf] }
 0x286   : > { %v4484_v55 = vadd.f32 %v1441_v44, %v1359_v3  ;;  %v4486_v33 = vpop.permute.xlu1 %1107  ;;  %v4488_v27 = vadd.f32 %v1445_v50, %v1363_v11  ;;  %v4494_v29 = vpop.permute.xlu0 %1109 }
 0x287   : > { %v1114_v22 = vsel %vm1111_vm5, %v5177_v17, %v4486_v33  ;;  %v1115_v9 = vsel %vm1111_vm5, %v5178_v32, %v4494_v29 }
 0x288   : > { %v1155_v47 = vmul.f32 %v1139_v25, %v1114_v22  ;;  %v1159_v15 = vmul.f32 %v1143_v1, %v1115_v9  ;;  %v4528_v9 = vld [vmem:[%s4963_s4 + $0x8] sm:$0xff]  }
 0x28a   : > { %v4500_v3 = vadd.f32 %v1155_v47, %v1073_v58  ;;  %v4502_v21 = vadd.f32 %v1159_v15, %v1077_v52  ;;  %v4518_v52 = vld [vmem:[%s4963_s4] sm:$0xff]   ;;  %v4533_v15 = vld [vmem:[%s4963_s4 + $0x10] sm:$0xff]  }
 0x28b   : > { %5179 = vst [vmem:[#allocation38_spill] sm:$0xff] %v4533_v15 }
 0x2b6   : > { %v2909_v11 = vpop.f32.mrf.mxu0 }
 0x2b8   : > { %v2910_v34 = vpop.f32.mrf.mxu0 }
 0x2b9   : > { %v2911_v51 = vadd.f32 %v2910_v34, %v2909_v11  ;;  %v4542_v11 = vld [vmem:[%s4963_s4 + $0x18] sm:$0xff]   ;;  %v4550_v34 = vld [vmem:[%s4967_s8] ss:$8 sps:$4 sm:$0xff]  }
 0x2ba   : > { %v2912_v30 = vpop.f32.mrf.mxu0  ;;  %5180 = vst [vmem:[#allocation36_spill] sm:$0xff] %v4542_v11  ;;  %5181 = vst [vmem:[#allocation39_spill] sm:$0xff] %v4550_v34 }
 0x2bc   : > { %v2913_v49 = vpop.f32.mrf.mxu0 }
 0x2bd   : > { %v2914_v35 = vadd.f32 %v2913_v49, %v2912_v30  ;;  %v4555_v30 = vld [vmem:[%s4967_s8 + $0x4] ss:$8 sps:$4 sm:$0xff]   ;;  %v3164_v49 = vld [vmem:[%s4966_s7 + $0x78] sm:$0xff]  }
 0x2bf   : > { %v1782_v58 = vpack.c.bf16 %v2914_v35, %v2911_v51 }
 0x315   : > { %v2915_v26 = vpop.f32.mrf.mxu0 }
 0x317   : > { %v2916_v38 = vpop.f32.mrf.mxu0 }
 0x318   : > { %v2917_v7 = vadd.f32 %v2916_v38, %v2915_v26  ;;  %v4565_v26 = vld [vmem:[%s4968_s9] ss:$8 sps:$4 sm:$0xff]   ;;  %v4570_v38 = vld [vmem:[%s4968_s9 + $0x4] ss:$8 sps:$4 sm:$0xff]  }
 0x319   : > { %v2918_v23 = vpop.f32.mrf.mxu0  ;;  %2158 = vmatprep.subr.bf16.mxu0 %v4570_v38 }
 0x31a   : > { %2159 = vmatpush1.bf16.msra.mxu0 %v4565_v26 }
 0x31b   : > { %v2919_v43 = vpop.f32.mrf.mxu0  ;;  %2983 = vmatprep.subr.bf16.mxu0 %v5057_v48 }
 0x31c   : > { %v2920_v6 = vadd.f32 %v2919_v43, %v2918_v23  ;;  %v4575_v23 = vpop.permute.xlu1 %1205  ;;  %v4577_v43 = vpop.permute.xlu0 %1207 }
 0x31e   : > { %v1783_v14 = vpack.c.bf16 %v2920_v6, %v2917_v7 }
 0x320   : > { %2966 = vmatpush3.bf16.msra.mxu1 %v1783_v14  ;;  %v4579_v7 = vpop.permute.xlu1 %1303  ;;  %v4581_v6 = vpop.permute.xlu0 %1305 }
 0x321   : > { %2967 = vmatprep.subr.bf16.mxu1 %v5057_v48  ;;  %v1132_v48 = vld [vmem:[#allocation3 + $0x298] sm:$0xff] }
 0x324   : > { %2968 = vmatpush3.bf16.msra.mxu1 %v1782_v58  ;;  %v4583_v35 = vpop.permute.xlu1 %1401  ;;  %v4585_v14 = vpop.permute.xlu0 %1403 }
 0x327   : > { %2970 = vmatmul.mubr.msk.bf16.vlgmr.msra.gmra.mxu1 %vm1789_vm10, %v4511_v16 }
 0x328   : > { %2975 = vmatprep.mubr.msk.bf16.mxu1 %vm1867_vm11, %v4518_v52 }
 0x3e7   : > { %v1827_v60 = vpop.f32.mrf.mxu1 }
 0x3e8   : > { %v1828_v36 = vadd.f32 %v1827_v60, %v4301_v20  ;;  %v4588_v60 = vpop.permute.xlu1 %1999 }
 0x3e9   : > { %v2971_v44 = vpop.f32.mrf.mxu1  ;;  %5182 = vst [vmem:[#allocation37_spill] sm:$0xff] %v4588_v60 }
 0x3ea   : > { %v1833_v56 = vadd.f32 3.0, %v1828_v36 }
 0x3eb   : > { %v1830_v45 = vpop.f32.mrf.mxu1 }
 0x3ec   : > { %v1834_v50 = vmax.f32 %v1833_v56, 0.0 }
 0x3ed   : > { %v2972_v25 = vpop.f32.mrf.mxu1 }
 0x3ee   : > { %v1835_v17 = vmin.f32 %v1834_v50, 6.0 }
 0x3f0   : > { %v1836_v22 = vmul.f32 %v1835_v17, %v1828_v36  ;;  %v4592_v17 = vpop.permute.xlu0 %2004 }
 0x3f1   : > { %5183 = vst [vmem:[#allocation40_spill] sm:$0xff] %v4592_v17 }
 0x3f2   : > { %v1837_v47 = vmul.f32 0.16666667, %v1836_v22 }
 0x3f4   : > { %v1846_v1 = vpack.c.bf16 %v1837_v47, %v1837_v47 }
 0x3f6   : > { %3001 = vmatprep.subr.msk.bf16.mxu1 %vm1880_vm12, %v1846_v1  ;;  %v1882_v32 = vsel %vm1880_vm12, %v1846_v1, 0 }
 0x3f7   : > { %2974 = vmatpush3.bf16.msra.mxu1 %v1882_v32  ;;  %v5184_v32 = vld [vmem:[#allocation19_spill] sm:$0xff] }
 0x3f8   : > { %2079 = vmatprep.subr.bf16.mxu1 %v4555_v30 }
 0x3fa   : > { %2976 = vmatmul.mubr.msk.bf16.vlgmr.msra.gmra.mxu1 %vm1867_vm11, %v4528_v9 }
 0x3fb   : > { %2979 = vmatprep.mubr.msk.bf16.mxu1 %vm1867_vm11, %v4533_v15  ;;  %2080 = vmatpush1.bf16.msra.mxu1 %v4550_v34  ;;  %v5191_v15 = vld [vmem:[#allocation31_spill] sm:$0xff] }
 0x3fc   : > { %2929 = vmatprep.subr.bf16.mxu1 %v3164_v49  ;;  %v1124_v49 = vsel %vm1111_vm5, %v4392_v62, %v5184_v32  ;;  %v1230_v32 = vld [vmem:[#allocation3 + $0x318] sm:$0xff] }
 0x402   : > { %2980 = vmatmul.mubr.msk.bf16.gmra.mxu1 %vm1867_vm11, %v4542_v11  ;;  %v1332_v11 = vld [vmem:[#allocation3 + $0x3b8] sm:$0xff] }
 0x403   : > { %2097 = vmatprep.mubr.bf16.mxu1 %v5152_v37 }
 0x4ba   : > { %v2977_v51 = vpop.f32.mrf.mxu1 }
 0x4bb   : > { %v1971_v58 = vadd.f32 %v2977_v51, %v4317_v63  ;;  %v4599_v51 = vpop.permute.xlu1 %2009 }
 0x4bc   : > { %v1918_v36 = vpop.f32.mrf.mxu1  ;;  %5185 = vst [vmem:[#allocation41_spill] sm:$0xff] %v4599_v51 }
 0x4bd   : > { %v1969_v44 = vadd.f32 %v4307_v28, %v1918_v36  ;;  %v2852_v45 = vmul.f32 -1.442695, %v1971_v58  ;;  %v1136_v58 = vld [vmem:[#allocation3 + $0x2b8] sm:$0xff]  ;;  %v5188_v28 = vld [vmem:[#allocation27_spill] sm:$0xff] }
 0x4be   : > { %v2978_v56 = vpop.f32.mrf.mxu1  ;;  %v1223_v63 = vsel %vm1209_vm6, %v4426_v31, %v5188_v28  ;;  %v1321_v28 = vsel %vm1307_vm7, %v4450_v4, %v5191_v15 }
 0x4bf   : > { %v2850_v50 = vmul.f32 -1.442695, %v1969_v44  ;;  %v1972_v25 = vadd.f32 %v2978_v56, %v4319_v46  ;;  %v5186_v44 = vld [vmem:[#allocation21_spill] sm:$0xff]  ;;  %v1234_v46 = vld [vmem:[#allocation3 + $0x338] sm:$0xff] }
 0x4c0   : > { %v1921_v22 = vpop.f32.mrf.mxu1  ;;  %v1125_v56 = vsel %vm1111_vm5, %v4398_v41, %v5186_v44  ;;  %v5189_v44 = vld [vmem:[#allocation30_spill] sm:$0xff] }
 0x4c1   : > { %3100 = vpow2.f32 %v2850_v50  ;;  %v2853_v47 = vmul.f32 -1.442695, %v1972_v25  ;;  %v1970_v1 = vadd.f32 %v4309_v61, %v1921_v22  ;;  %v5187_v22 = vld [vmem:[#allocation25_spill] sm:$0xff] }
 0x4c2   : > { %v2981_v36 = vpop.f32.mrf.mxu1  ;;  %3102 = vpow2.f32 %v2852_v45  ;;  %v1222_v61 = vsel %vm1209_vm6, %v4420_v2, %v5187_v22  ;;  %v1320_v2 = vsel %vm1307_vm7, %v4444_v13, %v5189_v44  ;;  %v5193_v44 = vld [vmem:[#allocation35_spill] sm:$0xff] }
 0x4c3   : > { %v2851_v50 = vmul.f32 -1.442695, %v1970_v1  ;;  %v2019_v25 = vadd.f32 %v2981_v36, %v4599_v51  ;;  %3104 = vpow2.f32 %v2853_v47  ;;  %v1148_v1 = vmul.f32 %v1132_v48, %v1124_v49  ;;  %v4619_v47 = vpop.permute.xlu0 %2014  ;;  %v1328_v51 = vld [vmem:[#allocation3 + $0x398] sm:$0xff] }
 0x4c4   : > { %v1934_v62 = vpop.f32.mrf.mxu1  ;;  %v1152_v36 = vmul.f32 %v1136_v58, %v1125_v56  ;;  %5190 = vst [vmem:[#allocation43_spill] sm:$0xff] %v4619_v47  ;;  %v1246_v49 = vmul.f32 %v1230_v32, %v1222_v61  ;;  %v1250_v58 = vmul.f32 %v1234_v46, %v1223_v63  ;;  %v5192_v56 = vld [vmem:[#allocation34_spill] sm:$0xff]  ;;  %v1344_v46 = vmul.f32 %v1328_v51, %v1320_v2  ;;  %v5194_v51 = vld [vmem:[#allocation13_spill] sm:$0xff] }
 0x4c5   : > { %3106 = vpow2.f32 %v2851_v50  ;;  %v2856_v41 = vmul.f32 -1.442695, %v2019_v25  ;;  %v2017_v45 = vadd.f32 %v4588_v60, %v1934_v62  ;;  %v1418_v13 = vsel %vm1405_vm8, %v4470_v59, %v5192_v56  ;;  %v1426_v25 = vld [vmem:[#allocation3 + $0x418] sm:$0xff] }
 0x4c6   : > { %v2982_v22 = vpop.f32.mrf.mxu1  ;;  %v1430_v62 = vld [vmem:[#allocation3 + $0x438] sm:$0xff]  ;;  %v1419_v60 = vsel %vm1405_vm8, %v4478_v24, %v5193_v44  ;;  %v1164_v61 = vadd.f32 %v1148_v1, %v4376_v39  ;;  %v1168_v63 = vadd.f32 %v1152_v36, %v4378_v57  ;;  %v1348_v32 = vmul.f32 %v1332_v11, %v1321_v28 }
 0x4c7   : > { %3108 = vpow2.f32 %v2856_v41  ;;  %v2854_v31 = vmul.f32 -1.442695, %v2017_v45  ;;  %v2020_v48 = vadd.f32 %v2982_v22, %v4619_v47  ;;  %v1442_v22 = vmul.f32 %v1426_v25, %v1418_v13  ;;  %v5195_v36 = vld [vmem:[#allocation14_spill] sm:$0xff] }
 0x4c8   : > { %v1937_v50 = vpop.f32.mrf.mxu1  ;;  %v1262_v41 = vadd.f32 %v1246_v49, %v1164_v61  ;;  %v1266_v45 = vadd.f32 %v1250_v58, %v1168_v63  ;;  %v1446_v56 = vmul.f32 %v1430_v62, %v1419_v60  ;;  %v5196_v61 = vld [vmem:[#allocation51_spill] sm:$0xff] }
 0x4c9   : > { %3110 = vpow2.f32 %v2854_v31  ;;  %v2857_v4 = vmul.f32 -1.442695, %v2020_v48  ;;  %v2018_v15 = vadd.f32 %v4592_v17, %v1937_v50  ;;  %v1126_v63 = vsel %vm1111_vm5, %v4486_v33, %v5196_v61 }
 0x4ca   : > { %v1360_v34 = vadd.f32 %v1344_v46, %v1262_v41  ;;  %v1364_v24 = vadd.f32 %v1348_v32, %v1266_v45  ;;  %v1144_v46 = vld [vmem:[#allocation3 + $0x2f8] sm:$0xff]  ;;  %v5197_v32 = vld [vmem:[#allocation52_spill] sm:$0xff]  ;;  %v1225_v33 = vsel %vm1209_vm6, %v4577_v43, %v4095_v40  ;;  %v1323_v40 = vsel %vm1307_vm7, %v4581_v6, %v4111_v54 }
 0x4cb   : > { %3112 = vpow2.f32 %v2857_v4  ;;  %v2855_v59 = vmul.f32 -1.442695, %v2018_v15  ;;  %v1140_v15 = vld [vmem:[#allocation3 + $0x2d8] sm:$0xff] }
 0x4cc   : > { %v1458_v48 = vadd.f32 %v1442_v22, %v1360_v34  ;;  %v1462_v44 = vadd.f32 %v1446_v56, %v1364_v24  ;;  %v1238_v22 = vld [vmem:[#allocation3 + $0x358] sm:$0xff] }
 0x4cd   : > { %3114 = vpow2.f32 %v2855_v59  ;;  %v5198_v59 = vld [vmem:[#allocation55_spill] sm:$0xff]  ;;  %v1242_v56 = vld [vmem:[#allocation3 + $0x378] sm:$0xff] }
 0x4ce   : > { %v3101_v47 = vpop.eup %3100  ;;  %v1498_v11 = vadd.f32 %v5194_v51, %v1458_v48  ;;  %v1502_v2 = vadd.f32 %v5195_v36, %v1462_v44  ;;  %v1224_v41 = vsel %vm1209_vm6, %v4575_v23, %v5198_v59  ;;  %v1156_v48 = vmul.f32 %v1140_v15, %v1126_v63  ;;  %v5200_v15 = vld [vmem:[#allocation54_spill] sm:$0xff] }
 0x4cf   : > { %v3103_v31 = vpop.eup %3102  ;;  %v1985_v50 = vadd.f32 1.0, %v3101_v47  ;;  %v1254_v44 = vmul.f32 %v1238_v22, %v1224_v41  ;;  %v1213_v61 = vsel %vm1209_vm6, %v5200_v15, %v4577_v43  ;;  %v3169_v15 = vld [vmem:[%s4966_s7 + $0x28] sm:$0xff]  }
 0x4d0   : > { %v3105_v17 = vpop.eup %3104  ;;  %v1987_v28 = vadd.f32 1.0, %v3103_v31  ;;  %v1514_v25 = vadd.f32 3.0, %v1498_v11  ;;  %v1518_v62 = vadd.f32 3.0, %v1502_v2 }
 0x4d1   : > { %3116 = vrcp.f32 %v1985_v50  ;;  %v1988_v49 = vadd.f32 1.0, %v3105_v17  ;;  %v1127_v17 = vsel %vm1111_vm5, %v4494_v29, %v5197_v32  ;;  %v1258_v50 = vmul.f32 %v1242_v56, %v1225_v33 }
 0x4d2   : > { %v3107_v39 = vpop.eup %3106  ;;  %v1530_v24 = vmax.f32 %v1514_v25, 0.0  ;;  %v1534_v31 = vmax.f32 %v1518_v62, 0.0  ;;  %v1160_v29 = vmul.f32 %v1144_v46, %v1127_v17  ;;  %v1434_v25 = vld [vmem:[#allocation3 + $0x458] sm:$0xff]  ;;  %v1420_v62 = vsel %vm1405_vm8, %v4583_v35, %v4284_v53 }
 0x4d3   : > { %v1986_v1 = vadd.f32 1.0, %v3107_v39  ;;  %v1336_v39 = vld [vmem:[#allocation3 + $0x3d8] sm:$0xff]  ;;  %v1450_v59 = vmul.f32 %v1434_v25, %v1420_v62 }
 0x4d4   : > { %v3109_v57 = vpop.eup %3108 }
 0x4d5   : > { %3118 = vrcp.f32 %v1986_v1  ;;  %v2035_v58 = vadd.f32 1.0, %v3109_v57  ;;  %v1322_v1 = vsel %vm1307_vm7, %v4579_v7, %v4105_v8  ;;  %v1340_v57 = vld [vmem:[#allocation3 + $0x3f8] sm:$0xff] }
 0x4d6   : > { %v3111_v60 = vpop.eup %3110  ;;  %3120 = vrcp.f32 %v1987_v28  ;;  %v1546_v28 = vmin.f32 %v1530_v24, 6.0  ;;  %v1438_v8 = vld [vmem:[#allocation3 + $0x478] sm:$0xff]  ;;  %v1352_v53 = vmul.f32 %v1336_v39, %v1322_v1  ;;  %v1356_v63 = vmul.f32 %v1340_v57, %v1323_v40  ;;  %v1437_v40 = vld [vmem:[#allocation3 + $0x470] sm:$0xff] }
 0x4d7   : > { %v2033_v34 = vadd.f32 1.0, %v3111_v60  ;;  %3122 = vrcp.f32 %v1988_v49  ;;  %v1550_v49 = vmin.f32 %v1534_v31, 6.0  ;;  %v1335_v31 = vld [vmem:[#allocation3 + $0x3d0] sm:$0xff]  ;;  %v1408_v39 = vsel %vm1405_vm8, %v4113_v19, %v4583_v35 }
 0x4d8   : > { %v3113_v13 = vpop.eup %3112  ;;  %3124 = vrcp.f32 %v2035_v58  ;;  %v1172_v58 = vadd.f32 %v1156_v48, %v4468_v10  ;;  %v1562_v41 = vmul.f32 %v1546_v28, %v1498_v11  ;;  %v1311_v11 = vsel %vm1307_vm7, %v4103_v18, %v4581_v6  ;;  %v3166_v6 = vld [vmem:[%s4966_s7 + $0x70] sm:$0xff]  }
 0x4d9   : > { %v2036_v47 = vadd.f32 1.0, %v3113_v13  ;;  %v1176_v13 = vadd.f32 %v1160_v29, %v4472_v0  ;;  %v1241_v0 = vld [vmem:[#allocation3 + $0x370] sm:$0xff]  ;;  %v1409_v18 = vsel %vm1405_vm8, %v4119_v5, %v4585_v14  ;;  %v1497_v19 = vadd.f32 %v5194_v51, %v4484_v55  ;;  %v3168_v55 = vld [vmem:[%s4966_s7 + $0x68] sm:$0xff]  }
 0x4da   : > { %v3115_v4 = vpop.eup %3114  ;;  %v1270_v46 = vadd.f32 %v1254_v44, %v1172_v58  ;;  %v1257_v33 = vmul.f32 %v1241_v0, %v1213_v61  ;;  %v1339_v29 = vld [vmem:[#allocation3 + $0x3f0] sm:$0xff]  ;;  %v3165_v44 = vld [vmem:[%s4966_s7 + $0x38] sm:$0xff]  }
 0x4db   : > { %3126 = vrcp.f32 %v2036_v47  ;;  %v2034_v45 = vadd.f32 1.0, %v3115_v4  ;;  %v1237_v47 = vld [vmem:[#allocation3 + $0x350] sm:$0xff]  ;;  %v1274_v32 = vadd.f32 %v1258_v50, %v1176_v13  ;;  %v1355_v42 = vmul.f32 %v1339_v29, %v1311_v11 }
 0x4dc   : > { %3128 = vrcp.f32 %v2033_v34  ;;  %v1421_v34 = vsel %vm1405_vm8, %v4585_v14, %v4293_v12  ;;  %v5199_v4 = vld [vmem:[#allocation53_spill] sm:$0xff]  ;;  %v1368_v48 = vadd.f32 %v1352_v53, %v1270_v46  ;;  %v1501_v13 = vadd.f32 %v5195_v36, %v4488_v27  ;;  %v5202_v36 = vld [vmem:[#allocation15_spill] sm:$0xff] }
 0x4dd   : > { %3130 = vrcp.f32 %v2034_v45  ;;  %v1212_v10 = vsel %vm1209_vm6, %v5199_v4, %v4575_v23  ;;  %v1454_v12 = vmul.f32 %v1438_v8, %v1421_v34  ;;  %v1566_v45 = vmul.f32 %v1550_v49, %v1502_v2  ;;  %v5201_v23 = vld [vmem:[#allocation56_spill] sm:$0xff]  ;;  %v1433_v50 = vld [vmem:[#allocation3 + $0x450] sm:$0xff] }
 0x4de   : > { %v3117_v60 = vpop.eup %3116  ;;  %v1253_v56 = vmul.f32 %v1237_v47, %v1212_v10  ;;  %v1310_v24 = vsel %vm1307_vm7, %v5201_v23, %v4579_v7  ;;  %v1372_v2 = vadd.f32 %v1356_v63, %v1274_v32  ;;  %v1466_v57 = vadd.f32 %v1450_v59, %v1368_v48  ;;  %v3167_v34 = vld [vmem:[%s4966_s7 + $0x30] sm:$0xff]   ;;  %v3170_v32 = vld [vmem:[%s4966_s7 + $0x60] sm:$0xff]  }
 0x4df   : > { %v4705_v49 = vmul.f32 0.16666667, %v1562_v41  ;;  %v1351_v35 = vmul.f32 %v1335_v31, %v1310_v24  ;;  %v1273_v62 = vadd.f32 %v1257_v33, %v4502_v21  ;;  %v1449_v8 = vmul.f32 %v1433_v50, %v1408_v39  ;;  %v5203_v47 = vld [vmem:[#allocation17_spill] sm:$0xff]  ;;  %v3172_v33 = vld [vmem:[%s4966_s7 + $0x58] sm:$0xff]  }
 0x4e0   : > { %v1470_v28 = vadd.f32 %v1454_v12, %v1372_v2  ;;  %v1269_v25 = vadd.f32 %v1253_v56, %v4500_v3  ;;  %v1506_v3 = vadd.f32 %v5202_v36, %v1466_v57  ;;  %v1513_v61 = vadd.f32 3.0, %v1497_v19  ;;  %v3171_v12 = vld [vmem:[%s4966_s7 + $0x20] sm:$0xff]   ;;  %v3174_v2 = vld [vmem:[%s4966_s7 + $0x50] sm:$0xff]  }
 0x4e1   : > { %v1371_v0 = vadd.f32 %v1355_v42, %v1273_v62  ;;  %v1517_v53 = vadd.f32 3.0, %v1501_v13  ;;  %v3175_v50 = vld [vmem:[%s4966_s7 + $0x10] sm:$0xff]   ;;  %v3179_v62 = vld [vmem:[%s4966_s7] sm:$0xff]  }
 0x4e2   : > { %v3119_v54 = vpop.eup %3118  ;;  %v1510_v21 = vadd.f32 %v5203_v47, %v1470_v28  ;;  %v1367_v10 = vadd.f32 %v1351_v35, %v1269_v25  ;;  %v1529_v41 = vmax.f32 %v1513_v61, 0.0 }
 0x4e3   : > { %v2045_v17 = vpack.c.bf16 %v3119_v54, %v3117_v60  ;;  %v3121_v22 = vpop.eup %3120  ;;  %v4707_v60 = vmul.f32 0.16666667, %v1566_v45  ;;  %v1453_v54 = vmul.f32 %v1437_v40, %v1409_v18  ;;  %v1533_v45 = vmax.f32 %v1517_v53, 0.0 }
 0x4e4   : > { %v3123_v43 = vpop.eup %3122  ;;  %v1465_v63 = vadd.f32 %v1449_v8, %v1367_v10  ;;  %v1526_v59 = vadd.f32 3.0, %v1510_v21  ;;  %v1545_v31 = vmin.f32 %v1529_v41, 6.0 }
 0x4e5   : > { %2860 = vmatmul.mubr.msk.bf16.vlgmr.msra.gmra.mxu1 %vm460_vm0, %v2045_v17  ;;  %v3125_v7 = vpop.eup %3124  ;;  %v2046_v51 = vpack.c.bf16 %v3123_v43, %v3121_v22  ;;  %v2206_v4 = vpack.c.bf16 %v4707_v60, %v4705_v49  ;;  %v1469_v46 = vadd.f32 %v1453_v54, %v1371_v0  ;;  %v1522_v17 = vadd.f32 3.0, %v1506_v3  ;;  %v3173_v43 = vld [vmem:[%s4966_s7 + $0x18] sm:$0xff]  }
 0x4e6   : > { %2930 = vmatpush3.bf16.msra.mxu1 %v3165_v44  ;;  %2107 = vmatprep.mubr.bf16.mxu1 %v5152_v37  ;;  %v1505_v22 = vadd.f32 %v5202_v36, %v1465_v63  ;;  %v1542_v24 = vmax.f32 %v1526_v59, 0.0  ;;  %v1549_v48 = vmin.f32 %v1533_v45, 6.0  ;;  %v1561_v39 = vmul.f32 %v1545_v31, %v1497_v19  ;;  %v3178_v19 = vld [vmem:[%s4966_s7 + $0x40] sm:$0xff]  }
 0x4e7   : > { %2931 = vmatprep.subr.bf16.mxu1 %v3166_v6  ;;  %v1509_v56 = vadd.f32 %v5203_v47, %v1469_v46  ;;  %v1538_v23 = vmax.f32 %v1522_v17, 0.0  ;;  %v3176_v6 = vld [vmem:[%s4966_s7 + $0x48] sm:$0xff]   ;;  %v5204_v47 = vmov 0.0  }
 0x4e8   : > { %v3127_v1 = vpop.eup %3126  ;;  %v1521_v29 = vadd.f32 3.0, %v1505_v22  ;;  %v1565_v18 = vmul.f32 %v1549_v48, %v1501_v13  ;;  %v4757_v35 = vmul.f32 0.16666667, %v1561_v39 }
 0x4e9   : > { %v3129_v58 = vpop.eup %3128  ;;  %v2119_v5 = vpack.c.bf16 %v3127_v1, %v3125_v7  ;;  %v1525_v11 = vadd.f32 3.0, %v1509_v56  ;;  %v1554_v44 = vmin.f32 %v1538_v23, 6.0  ;;  %v1558_v7 = vmin.f32 %v1542_v24, 6.0 }
 0x4ea   : > { %v3131_v14 = vpop.eup %3130  ;;  %2932 = vmatpush3.bf16.msra.mxu1 %v3167_v34  ;;  %v1537_v1 = vmax.f32 %v1521_v29, 0.0  ;;  %v4759_v42 = vmul.f32 0.16666667, %v1565_v18  ;;  %v5206_v18 = vld [vmem:[#allocation11_spill] sm:$0xff] }
 0x4eb   : > { %2126 = vrot.lane.b32.xlu0 %v2119_v5, %s5086_s27  ;;  %2933 = vmatprep.subr.bf16.mxu1 %v3168_v55  ;;  %v2118_v27 = vpack.c.bf16 %v3131_v14, %v3129_v58  ;;  %v1541_v57 = vmax.f32 %v1525_v11, 0.0  ;;  %v1570_v40 = vmul.f32 %v1554_v44, %v1506_v3  ;;  %v1574_v28 = vmul.f32 %v1558_v7, %v1510_v21  ;;  %v3177_v58 = vld [vmem:[%s4966_s7 + $0x8] sm:$0xff]  }
 0x4ec   : > { %v1553_v5 = vmin.f32 %v1537_v1, 6.0  ;;  %v2205_v8 = vpack.c.bf16 %v4759_v42, %v4757_v35 }
 0x4ed   : > { %2861 = vmatmul.mubr.msk.bf16.gmra.mxu1 %vm460_vm0, %v2046_v51  ;;  %2124 = vrot.lane.b32.xlu1 %v2118_v27, %s5086_s27  ;;  %v1557_v14 = vmin.f32 %v1541_v57, 6.0  ;;  %v4764_v13 = vmul.f32 0.16666667, %v1570_v40  ;;  %v4766_v25 = vmul.f32 0.16666667, %v1574_v28  ;;  %v5207_v40 = vld [vmem:[#allocation48_spill] sm:$0xff] }
 0x4ee   : > { %2934 = vmatpush3.bf16.msra.mxu1 %v3169_v15  ;;  %2241 = vmatprep.mubr.bf16.mxu1 %v2206_v4  ;;  %v1569_v34 = vmul.f32 %v1553_v5, %v1505_v22  ;;  %v5208_v28 = vld [vmem:[#allocation49_spill] sm:$0xff] }
 0x4ef   : > { %2935 = vmatprep.subr.bf16.mxu1 %v3170_v32  ;;  %v1573_v54 = vmul.f32 %v1557_v14, %v1509_v56  ;;  %v2208_v55 = vpack.c.bf16 %v4766_v25, %v4764_v13 }
 0x4f0   : > { %v4777_v51 = vmul.f32 0.16666667, %v1569_v34  ;;  %v5209_v34 = vld [vmem:[#allocation63_spill] sm:$0xff] }
 0x4f1   : > { %v4779_v27 = vmul.f32 0.16666667, %v1573_v54 }
 0x4f2   : > { %2936 = vmatpush3.bf16.msra.mxu1 %v3171_v12 }
 0x4f3   : > { %2937 = vmatprep.subr.bf16.mxu1 %v3172_v33  ;;  %v2207_v36 = vpack.c.bf16 %v4779_v27, %v4777_v51 }
 0x4f6   : > { %2938 = vmatpush3.bf16.msra.mxu1 %v3173_v43 }
 0x4f7   : > { %2939 = vmatprep.subr.bf16.mxu1 %v3174_v2 }
 0x4fa   : > { %2940 = vmatpush3.bf16.msra.mxu1 %v3175_v50  ;;  %v5205_v50 = vld [vmem:[#allocation16_spill] sm:$0xff] }
 0x4fb   : > { %2941 = vmatprep.subr.bf16.mxu1 %v3176_v6 }
 0x4fe   : > { %2942 = vmatpush3.bf16.msra.mxu1 %v3177_v58 }
 0x4ff   : > { %2943 = vmatprep.subr.bf16.mxu1 %v3178_v19 }
 0x502   : > { %2944 = vmatpush3.bf16.msra.mxu1 %v3179_v62 }
 0x503   : > { %2519 = vmatprep.subr.bf16.mxu1 %v4570_v38 }
 0x505   : > { %2242 = vmatmul.mubr.bf16.vlgmr.msra.gmra.mxu1 %v2205_v8 }
 0x506   : > { %2249 = vmatprep.mubr.bf16.mxu1 %v2208_v55  ;;  %2520 = vmatpush1.bf16.msra.mxu1 %v4565_v26  ;;  %v5210_v55 = vld [vmem:[#allocation64_spill] sm:$0xff] }
 0x50d   : > { %2250 = vmatmul.mubr.bf16.gmra.mxu1 %v2207_v36 }
 0x50e   : > { %2537 = vmatprep.mubr.bf16.mxu1 %v5152_v37 }
 0x55d   : > { %v2127_v38 = vpop.permute.xlu0 %2126 }
 0x55f   : > { %v2125_v3 = vpop.permute.xlu1 %2124 }
 0x560   : > { %2864 = vmatmul.mubr.msk.bf16.vlgmr.msra.gmra.mxu0 %vm460_vm0, %v2125_v3 }
 0x561   : > { %2186 = vmatprep.mubr.bf16.mxu0 %v5152_v37 }
 0x568   : > { %2865 = vmatmul.mubr.msk.bf16.gmra.mxu0 %vm460_vm0, %v2127_v38 }
 0x569   : > { %2987 = vmatprep.mubr.msk.bf16.mxu0 %vm3293_vm9, %v5204_v47 }
 0x5a5   : > { %v2099_v26 = vpop.f32.mrf.mxu1 }
 0x5a7   : > { %v2101_v21 = vpop.f32.mrf.mxu1 }
 0x5a9   : > { %v2103_v4 = vpop.f32.mrf.mxu1 }
 0x5ab   : > { %v2105_v10 = vpop.f32.mrf.mxu1 }
 0x5ad   : > { %v2109_v0 = vpop.f32.mrf.mxu1 }
 0x5af   : > { %v2111_v15 = vpop.f32.mrf.mxu1 }
 0x5b1   : > { %v2113_v61 = vpop.f32.mrf.mxu1 }
 0x5b3   : > { %v2115_v53 = vpop.f32.mrf.mxu1 }
 0x5c5   : > { %v2945_v63 = vpop.f32.mrf.mxu1 }
 0x5c7   : > { %v2946_v46 = vpop.f32.mrf.mxu1 }
 0x5c8   : > { %v2947_v24 = vadd.f32 %v2946_v46, %v2945_v63 }
 0x5c9   : > { %v2948_v32 = vpop.f32.mrf.mxu1 }
 0x5cb   : > { %v2949_v17 = vpop.f32.mrf.mxu1 }
 0x5cc   : > { %v2950_v33 = vadd.f32 %v2949_v17, %v2948_v32 }
 0x5cd   : > { %v2951_v59 = vpop.f32.mrf.mxu1 }
 0x5ce   : > { %v2258_v43 = vpack.c.bf16 %v2950_v33, %v2947_v24 }
 0x5cf   : > { %v2952_v12 = vpop.f32.mrf.mxu1 }
 0x5d0   : > { %v2953_v22 = vadd.f32 %v2952_v12, %v2951_v59 }
 0x5d1   : > { %v2954_v41 = vpop.f32.mrf.mxu1 }
 0x5d3   : > { %v2955_v45 = vpop.f32.mrf.mxu1 }
 0x5d4   : > { %v2956_v56 = vadd.f32 %v2955_v45, %v2954_v41  ;;  %v5211_v41 = vld [vmem:[#allocation60_spill] sm:$0xff] }
 0x5d6   : > { %v2259_v23 = vpack.c.bf16 %v2956_v56, %v2953_v22  ;;  %v5212_v56 = vld [vmem:[#allocation59_spill] sm:$0xff] }
 0x5d8   : > { %2984 = vmatpush3.bf16.msra.mxu0 %v2259_v23  ;;  %v5213_v23 = vld [vmem:[#allocation39_spill] sm:$0xff] }
 0x5d9   : > { %2985 = vmatprep.subr.bf16.mxu0 %v5204_v47 }
 0x5dc   : > { %2986 = vmatpush3.bf16.msra.mxu0 %v2258_v43  ;;  %v5216_v43 = vld [vmem:[#allocation65_spill] sm:$0xff] }
 0x5df   : > { %2988 = vmatmul.mubr.msk.bf16.vlgmr.msra.gmra.mxu0 %vm1789_vm10, %v4511_v16 }
 0x5e0   : > { %2993 = vmatprep.mubr.msk.bf16.mxu0 %vm1867_vm11, %v4518_v52 }
 0x620   : > { %v2178_v31 = vpop.f32.mrf.mxu0 }
 0x621   : > { %v2197_v29 = vmul.f32 %v2178_v31, %v2099_v26 }
 0x622   : > { %v2180_v48 = vpop.f32.mrf.mxu0 }
 0x623   : > { %v2198_v2 = vmul.f32 %v2180_v48, %v2101_v21  ;;  %v4795_v39 = vmul.f32 %v2197_v29, %v5205_v50 }
 0x624   : > { %v2182_v11 = vpop.f32.mrf.mxu0 }
 0x625   : > { %v2199_v44 = vmul.f32 %v2182_v11, %v2103_v4  ;;  %v4801_v16 = vmul.f32 %v2198_v2, %v5207_v40 }
 0x626   : > { %v2184_v7 = vpop.f32.mrf.mxu0 }
 0x627   : > { %v4798_v6 = vmul.f32 %v2199_v44, %v5206_v18  ;;  %v2200_v1 = vmul.f32 %v2184_v7, %v2105_v10  ;;  %v5218_v44 = vld [vmem:[#allocation66_spill] sm:$0xff] }
 0x628   : > { %v2188_v57 = vpop.f32.mrf.mxu0 }
 0x629   : > { %v2584_v52 = vpack.c.bf16 %v4798_v6, %v4795_v39  ;;  %v4806_v58 = vmul.f32 %v2200_v1, %v5208_v28  ;;  %v2201_v5 = vmul.f32 %v2188_v57, %v2109_v0  ;;  %v5219_v1 = vld [vmem:[#allocation62_spill] sm:$0xff]  ;;  %v4864_v39 = vld [vmem:[%s4964_s5] sm:$0xff]  }
 0x62a   : > { %v2190_v19 = vpop.f32.mrf.mxu0 }
 0x62b   : > { %v2585_v14 = vpack.c.bf16 %v4806_v58, %v4801_v16  ;;  %v4811_v54 = vmul.f32 %v2201_v5, %v5209_v34  ;;  %v2202_v59 = vmul.f32 %v2190_v19, %v2111_v15  ;;  %v5215_v15 = vld [vmem:[#allocation36_spill] sm:$0xff]  ;;  %v5220_v19 = vld [vmem:[#allocation41_spill] sm:$0xff] }
 0x62c   : > { %v2192_v62 = vpop.f32.mrf.mxu0  ;;  %v5221_v34 = vld [vmem:[#allocation37_spill] sm:$0xff]  ;;  %v2592_v16 = vld [vmem:[%s4965_s6 + $0x88] sm:$0xff] }
 0x62d   : > { %v2203_v8 = vmul.f32 %v2192_v62, %v2113_v61 }
 0x62e   : > { %v2194_v38 = vpop.f32.mrf.mxu0 }
 0x62f   : > { %v4814_v36 = vmul.f32 %v2203_v8, %v5210_v55  ;;  %v2204_v32 = vmul.f32 %v2194_v38, %v2115_v53  ;;  %v5214_v53 = vld [vmem:[#allocation38_spill] sm:$0xff] }
 0x631   : > { %v2588_v3 = vpack.c.bf16 %v4814_v36, %v4811_v54  ;;  %v2579_v45 = vmul.f32 %v2204_v32, %v5211_v41  ;;  %v2593_v36 = vld [vmem:[%s4965_s6 + $0x90] sm:$0xff] }
 0x69f   : > { %v2294_v47 = vpop.f32.mrf.mxu0 }
 0x6a0   : > { %v2295_v26 = vadd.f32 %v2294_v47, %v4301_v20  ;;  %v2575_v20 = vmul.f32 %v2202_v59, %v5212_v56 }
 0x6a1   : > { %v2989_v21 = vpop.f32.mrf.mxu0 }
 0x6a2   : > { %v2300_v4 = vadd.f32 3.0, %v2295_v26  ;;  %v2589_v33 = vpack.c.bf16 %v2579_v45, %v2575_v20 }
 0x6a3   : > { %v2297_v10 = vpop.f32.mrf.mxu0 }
 0x6a4   : > { %v2301_v0 = vmax.f32 %v2300_v4, 0.0 }
 0x6a5   : > { %v2990_v63 = vpop.f32.mrf.mxu0 }
 0x6a6   : > { %v2302_v46 = vmin.f32 %v2301_v0, 6.0  ;;  %v5223_v0 = vld [vmem:[#allocation40_spill] sm:$0xff] }
 0x6a8   : > { %v2303_v61 = vmul.f32 %v2302_v46, %v2295_v26  ;;  %v5222_v26 = vld [vmem:[#allocation43_spill] sm:$0xff] }
 0x6aa   : > { %v2304_v17 = vmul.f32 0.16666667, %v2303_v61 }
 0x6ac   : > { %v2305_v12 = vpack.c.bf16 %v2304_v17, %v2304_v17 }
 0x6ae   : > { %3002 = vmatprep.subr.msk.bf16.mxu0 %vm1880_vm12, %v2305_v12  ;;  %v2307_v22 = vsel %vm1880_vm12, %v2305_v12, 0 }
 0x6af   : > { %2992 = vmatpush3.bf16.msra.mxu0 %v2307_v22 }
 0x6b0   : > { %2452 = vmatprep.subr.bf16.mxu0 %v4555_v30  ;;  %v5217_v30 = vld [vmem:[#allocation61_spill] sm:$0xff] }
 0x6b2   : > { %2994 = vmatmul.mubr.msk.bf16.vlgmr.msra.gmra.mxu0 %vm1867_vm11, %v4528_v9 }
 0x6b3   : > { %2453 = vmatpush1.bf16.msra.mxu0 %v5213_v23  ;;  %2997 = vmatprep.mubr.msk.bf16.mxu0 %vm1867_vm11, %v5214_v53 }
 0x6b4   : > { %2624 = vmatprep.subr.bf16.mxu0 %v2589_v33 }
 0x6ba   : > { %2998 = vmatmul.mubr.msk.bf16.gmra.mxu0 %vm1867_vm11, %v5215_v15 }
 0x6bb   : > { %2470 = vmatprep.mubr.bf16.mxu0 %v5152_v37 }
 0x772   : > { %v2995_v24 = vpop.f32.mrf.mxu0 }
 0x773   : > { %v2376_v31 = vadd.f32 %v2995_v24, %v5216_v43 }
 0x774   : > { %v2343_v48 = vpop.f32.mrf.mxu0 }
 0x775   : > { %v2374_v29 = vadd.f32 %v2343_v48, %v5217_v30  ;;  %v2873_v9 = vmul.f32 -1.442695, %v2376_v31 }
 0x776   : > { %v2996_v11 = vpop.f32.mrf.mxu0 }
 0x777   : > { %v2871_v2 = vmul.f32 -1.442695, %v2374_v29  ;;  %v2377_v7 = vadd.f32 %v2996_v11, %v5218_v44 }
 0x778   : > { %v2346_v50 = vpop.f32.mrf.mxu0 }
 0x779   : > { %3132 = vpow2.f32 %v2871_v2  ;;  %v2874_v18 = vmul.f32 -1.442695, %v2377_v7  ;;  %v2375_v57 = vadd.f32 %v2346_v50, %v5219_v1 }
 0x77a   : > { %v2999_v40 = vpop.f32.mrf.mxu0  ;;  %3134 = vpow2.f32 %v2873_v9 }
 0x77b   : > { %v2872_v28 = vmul.f32 -1.442695, %v2375_v57  ;;  %v2404_v5 = vadd.f32 %v2999_v40, %v5220_v19  ;;  %3136 = vpow2.f32 %v2874_v18 }
 0x77c   : > { %v2359_v62 = vpop.f32.mrf.mxu0 }
 0x77d   : > { %3138 = vpow2.f32 %v2872_v28  ;;  %v2877_v8 = vmul.f32 -1.442695, %v2404_v5  ;;  %v2402_v55 = vadd.f32 %v2359_v62, %v5221_v34 }
 0x77e   : > { %v3000_v38 = vpop.f32.mrf.mxu0 }
 0x77f   : > { %3140 = vpow2.f32 %v2877_v8  ;;  %v2875_v47 = vmul.f32 -1.442695, %v2402_v55  ;;  %v2405_v21 = vadd.f32 %v3000_v38, %v5222_v26  ;;  %v3180_v55 = vld [vmem:[%s3436_s30] sm:$0xff] }
 0x780   : > { %v2362_v4 = vpop.f32.mrf.mxu0 }
 0x781   : > { %3142 = vpow2.f32 %v2875_v47  ;;  %v2878_v10 = vmul.f32 -1.442695, %v2405_v21  ;;  %v2403_v63 = vadd.f32 %v2362_v4, %v5223_v0  ;;  %v3181_v21 = vld [vmem:[%s3436_s30 + $0x8] sm:$0xff] }
 0x783   : > { %3144 = vpow2.f32 %v2878_v10  ;;  %v2876_v46 = vmul.f32 -1.442695, %v2403_v63  ;;  %v3182_v63 = vld [vmem:[%s3436_s30 + $0x20] sm:$0xff] }
 0x785   : > { %3146 = vpow2.f32 %v2876_v46 }
 0x786   : > { %v3133_v61 = vpop.eup %3132 }
 0x787   : > { %v3135_v32 = vpop.eup %3134  ;;  %v2390_v17 = vadd.f32 1.0, %v3133_v61 }
 0x788   : > { %v3137_v59 = vpop.eup %3136  ;;  %v2392_v22 = vadd.f32 1.0, %v3135_v32  ;;  %v3183_v32 = vld [vmem:[%s3436_s30 + $0x28] sm:$0xff] }
 0x789   : > { %3148 = vrcp.f32 %v2390_v17  ;;  %v2393_v56 = vadd.f32 1.0, %v3137_v59 }
 0x78a   : > { %v3139_v12 = vpop.eup %3138 }
 0x78b   : > { %v2391_v41 = vadd.f32 1.0, %v3139_v12 }
 0x78c   : > { %v3141_v45 = vpop.eup %3140 }
 0x78d   : > { %3150 = vrcp.f32 %v2391_v41  ;;  %v2420_v33 = vadd.f32 1.0, %v3141_v45 }
 0x78e   : > { %v3143_v20 = vpop.eup %3142  ;;  %3152 = vrcp.f32 %v2392_v22 }
 0x78f   : > { %v2418_v53 = vadd.f32 1.0, %v3143_v20  ;;  %3154 = vrcp.f32 %v2393_v56 }
 0x790   : > { %v3145_v23 = vpop.eup %3144  ;;  %3156 = vrcp.f32 %v2420_v33 }
 0x791   : > { %v2421_v15 = vadd.f32 1.0, %v3145_v23 }
 0x792   : > { %v3147_v24 = vpop.eup %3146 }
 0x793   : > { %3158 = vrcp.f32 %v2421_v15  ;;  %v2419_v43 = vadd.f32 1.0, %v3147_v24 }
 0x794   : > { %3160 = vrcp.f32 %v2418_v53 }
 0x795   : > { %3162 = vrcp.f32 %v2419_v43 }
 0x796   : > { %v3149_v31 = vpop.eup %3148 }
 0x79a   : > { %v3151_v48 = vpop.eup %3150 }
 0x79b   : > { %v2430_v30 = vpack.c.bf16 %v3151_v48, %v3149_v31  ;;  %v3153_v29 = vpop.eup %3152 }
 0x79c   : > { %v3155_v11 = vpop.eup %3154 }
 0x79d   : > { %2879 = vmatmul.mubr.msk.bf16.vlgmr.msra.gmra.mxu0 %vm460_vm0, %v2430_v30  ;;  %v3157_v9 = vpop.eup %3156  ;;  %v2431_v18 = vpack.c.bf16 %v3155_v11, %v3153_v29 }
 0x79e   : > { %2625 = vmatpush1.bf16.msra.mxu0 %v2588_v3  ;;  %2480 = vmatprep.mubr.bf16.mxu0 %v5152_v37 }
 0x79f   : > { %2626 = vmatprep.subr.bf16.mxu0 %v2585_v14 }
 0x7a0   : > { %v3159_v2 = vpop.eup %3158 }
 0x7a1   : > { %v3161_v44 = vpop.eup %3160  ;;  %v2492_v7 = vpack.c.bf16 %v3159_v2, %v3157_v9 }
 0x7a2   : > { %v3163_v50 = vpop.eup %3162  ;;  %2627 = vmatpush1.bf16.msra.mxu0 %v2584_v52 }
 0x7a3   : > { %2497 = vrot.lane.b32.xlu0 %v2492_v7, %s5086_s27  ;;  %v2491_v54 = vpack.c.bf16 %v3163_v50, %v3161_v44 }
 0x7a5   : > { %2880 = vmatmul.mubr.msk.bf16.gmra.mxu0 %vm460_vm0, %v2431_v18  ;;  %2495 = vrot.lane.b32.xlu1 %v2491_v54, %s5086_s27  ;;  %s4876_s27 = scalar_lea.vmem [#allocation6], %s3433_s23 }
 0x7a6   : > { %2644 = vmatprep.mubr.bf16.mxu0 %v5152_v37  ;;  %s2728_s23 = sshll.u32 %s4876_s27, 4  ;;  %s4903_s23 = int_to_ptr.vmem [resolvable:$true] %s2728_s23 }
 0x7a7   : > { %2601 = vperm.xlu0 %3069, %v2593_v36   ;;  %s3214_s12 = scalar_lea.vmem %s4903_s23, 1024  ;;  %p3221_p12 = scmp.lt.s32.totalorder %s4903_s23, %s3219_s29 }
 0x7a8   : > { %p3215_p5 = scmp.ne.s32.totalorder %s4903_s23, %s3214_s12  ;;  %p3222_p13 = scmp.lt.s32.totalorder %s3220_s20, %s3214_s12 }
 0x7a9   : > { %2596 = vperm.xlu1 %3070, %v2592_v16  }
 0x7aa   : > { %p3216_p10 = pnand %p3215_p5, %p5225_p6  ;;  %p3223_p0 = por %p3222_p13, %p3221_p12 }
 0x7ac   : > { %p3217_p11 = pneg %p3216_p10 }
 0x7ad   : > { %2884 = vmatmul.mubr.msk.bf16.vlgmr.msra.gmra.mxu0 %vm1789_vm10, %v4864_v39 }
 0x7ae   : > { %p3224_p1 = pnand %p3223_p0, %p3217_p11 }
 0x815   : > { %v2498_v52 = vpop.permute.xlu0 %2497 }
 0x817   : > { %v2496_v6 = vpop.permute.xlu1 %2495 }
 0x818   : > { %2881 = vmatmul.mubr.msk.bf16.vlgmr.msra.gmra.mxu1 %vm460_vm0, %v2496_v6  ;;  %v3185_v6 = vld [vmem:[%s3436_s30 + $0x18] sm:$0xff] }
 0x819   : > { %2547 = vmatprep.mubr.bf16.mxu1 %v5152_v37 }
 0x820   : > { %2882 = vmatmul.mubr.msk.bf16.gmra.mxu1 %vm460_vm0, %v2498_v52 }
 0x821   : > { %2687 = vmatprep.mubr.bf16.mxu1 %v5152_v37 }
 0x822   : > { %v4873_v37 = vpop.permute.xlu0 %2601 }
 0x824   : > { %v2597_v5 = vpop.permute.xlu1 %2596 }
 0x85d   : > { %v2472_v58 = vpop.f32.mrf.mxu0 }
 0x85f   : > { %v2474_v14 = vpop.f32.mrf.mxu0 }
 0x861   : > { %v2476_v3 = vpop.f32.mrf.mxu0 }
 0x863   : > { %v2478_v1 = vpop.f32.mrf.mxu0 }
 0x865   : > { %v2482_v57 = vpop.f32.mrf.mxu0 }
 0x867   : > { %v2484_v40 = vpop.f32.mrf.mxu0 }
 0x869   : > { %v2486_v28 = vpop.f32.mrf.mxu0 }
 0x86b   : > { %v2488_v19 = vpop.f32.mrf.mxu0 }
 0x86d   : > { %v2646_v62 = vpop.f32.mrf.mxu0 }
 0x86e   : > { %v2647_v8 = vadd.f32 %v2646_v62, %v2597_v5 }
 0x86f   : > { %v2648_v34 = vpop.f32.mrf.mxu0 }
 0x870   : > { %v2698_v38 = vadd.f32 %v3180_v55, %v2647_v8  ;;  %v2649_v47 = vadd.f32 %v2648_v34, %v2597_v5 }
 0x871   : > { %v2650_v26 = vpop.f32.mrf.mxu0 }
 0x872   : > { %2706 = vst [vmem:[%s4876_s27] sm:$0xff] %v2698_v38  ;;  %v2699_v4 = vadd.f32 %v3181_v21, %v2649_v47  ;;  %v2651_v10 = vadd.f32 %v2650_v26, %v4873_v37 }
 0x873   : > { %v2652_v0 = vpop.f32.mrf.mxu0 }
 0x874   : > { %2707 = vst [vmem:[%s4876_s27 + $0x8] sm:$0xff] %v2699_v4  ;;  %v2702_v46 = vadd.f32 %v3182_v63, %v2651_v10  ;;  %v2653_v61 = vadd.f32 %v2652_v0, %v4873_v37 }
 0x876   : > { %2710 = vst [vmem:[%s4876_s27 + $0x20] sm:$0xff] %v2702_v46  ;;  %v2703_v17 = vadd.f32 %v3183_v32, %v2653_v61 }
 0x878   : > { %2711 = vst [vmem:[%s4876_s27 + $0x28] sm:$0xff] %v2703_v17 }
 0x8d8   : > { %v2539_v59 = vpop.f32.mrf.mxu1 }
 0x8d9   : > { %v2558_v2 = vmul.f32 %v2539_v59, %v2472_v58 }
 0x8da   : > { %v2541_v12 = vpop.f32.mrf.mxu1 }
 0x8db   : > { %v2559_v43 = vmul.f32 %v2541_v12, %v2474_v14  ;;  %v3186_v14 = vld [vmem:[%s3436_s30 + $0x30] sm:$0xff] }
 0x8dc   : > { %v2543_v41 = vpop.f32.mrf.mxu1 }
 0x8dd   : > { %v2560_v48 = vmul.f32 %v2543_v41, %v2476_v3  ;;  %v2569_v7 = vmul.f32 %v2559_v43, %v4705_v49 }
 0x8de   : > { %v2545_v45 = vpop.f32.mrf.mxu1 }
 0x8df   : > { %v2561_v33 = vmul.f32 %v2545_v45, %v2478_v1  ;;  %v2572_v18 = vmul.f32 %v2560_v48, %v4759_v42 }
 0x8e0   : > { %v2549_v22 = vpop.f32.mrf.mxu1 }
 0x8e1   : > { %v2562_v15 = vmul.f32 %v2549_v22, %v2482_v57  ;;  %v2573_v29 = vmul.f32 %v2561_v33, %v4707_v60  ;;  %v2568_v60 = vmul.f32 %v2558_v2, %v4757_v35  ;;  %v3187_v57 = vld [vmem:[%s3436_s30 + $0x38] sm:$0xff] }
 0x8e2   : > { %v2551_v56 = vpop.f32.mrf.mxu1 }
 0x8e3   : > { %v2563_v23 = vmul.f32 %v2551_v56, %v2484_v40  ;;  %v2576_v44 = vmul.f32 %v2562_v15, %v4777_v51  ;;  %v3184_v51 = vld [vmem:[%s3436_s30 + $0x10] sm:$0xff] }
 0x8e4   : > { %v2553_v20 = vpop.f32.mrf.mxu1 }
 0x8e5   : > { %v2564_v53 = vmul.f32 %v2553_v20, %v2486_v28  ;;  %v2577_v11 = vmul.f32 %v2563_v23, %v4764_v13  ;;  %v2586_v13 = vpack.c.bf16 %v2572_v18, %v2568_v60 }
 0x8e6   : > { %v2555_v24 = vpop.f32.mrf.mxu1 }
 0x8e7   : > { %v2565_v31 = vmul.f32 %v2555_v24, %v2488_v19  ;;  %v2580_v30 = vmul.f32 %v2564_v53, %v4779_v27  ;;  %v2587_v27 = vpack.c.bf16 %v2573_v29, %v2569_v7 }
 0x8e9   : > { %v2581_v9 = vmul.f32 %v2565_v31, %v4766_v25  ;;  %v2590_v54 = vpack.c.bf16 %v2580_v30, %v2576_v44 }
 0x8eb   : > { %v2591_v50 = vpack.c.bf16 %v2581_v9, %v2577_v11 }
 0x8ed   : > { %2667 = vmatprep.subr.bf16.mxu1 %v2591_v50 }
 0x8ee   : > { %2668 = vmatpush1.bf16.msra.mxu1 %v2590_v54 }
 0x8ef   : > { %2669 = vmatprep.subr.bf16.mxu1 %v2587_v27 }
 0x8f2   : > { %2670 = vmatpush1.bf16.msra.mxu1 %v2586_v13 }
 0x8f5   : > { %2885 = vmatmul.mubr.msk.bf16.vlgmr.msra.gmra.mxu1 %vm1789_vm10, %v4864_v39 }
 0x9b5   : > { %v2689_v49 = vpop.f32.mrf.mxu1 }
 0x9b6   : > { %v2690_v42 = vadd.f32 %v2689_v49, %v2597_v5 }
 0x9b7   : > { %v2691_v25 = vpop.f32.mrf.mxu1 }
 0x9b8   : > { %v2700_v36 = vadd.f32 %v3184_v51, %v2690_v42  ;;  %v2692_v16 = vadd.f32 %v2691_v25, %v2597_v5 }
 0x9b9   : > { %v2693_v35 = vpop.f32.mrf.mxu1 }
 0x9ba   : > { %2708 = vst [vmem:[%s4876_s27 + $0x10] sm:$0xff] %v2700_v36  ;;  %v2701_v52 = vadd.f32 %v3185_v6, %v2692_v16  ;;  %v2694_v58 = vadd.f32 %v2693_v35, %v4873_v37 }
 0x9bb   : > { %v2695_v39 = vpop.f32.mrf.mxu1 }
 0x9bc   : > { %2709 = vst [vmem:[%s4876_s27 + $0x18] sm:$0xff] %v2701_v52  ;;  %v2704_v3 = vadd.f32 %v3186_v14, %v2694_v58  ;;  %v2696_v1 = vadd.f32 %v2695_v39, %v4873_v37 }
 0x9be   : > { %2712 = vst [vmem:[%s4876_s27 + $0x30] sm:$0xff] %v2704_v3  ;;  %v2705_v40 = vadd.f32 %v3187_v57, %v2696_v1 }
 0x9c0   : > { %2713 = vst [vmem:[%s4876_s27 + $0x38] sm:$0xff] %v2705_v40 }
 0x9c1   : > { %3227 = shalt.err (!%p3224_p1)
}
 0x9c2   : > { %s3228_s30 = scalar_lea.hbm %s4911_s26, 1024  ;;  %s3232_s28 = scalar_lea.hbm %s4969_s10, 2048 }
 0x9c3   : > { %p3229_p2 = scmp.ne.s32.totalorder %s4911_s26, %s3228_s30  ;;  %p3233_p7 = scmp.lt.s32.totalorder %s4911_s26, %s4969_s10 }
 0x9c4   : > { %p3234_p8 = scmp.lt.s32.totalorder %s3232_s28, %s3228_s30 }
 0x9c5   : > { %p3230_p3 = pnand %p3229_p2, %p5225_p6 }
 0x9c6   : > { %p3235_p5 = por %p3234_p8, %p3233_p7 }
 0x9c7   : > { %p3231_p4 = pneg %p3230_p3 }
 0x9c9   : > { %p3236_p10 = pnand %p3235_p5, %p3231_p4 }
 0x9cb   : > { %3239 = shalt.err (!%p3236_p10)
}
 0x9cc   : > { %s3295_s17 = smov 512   ;;  %s3296_s12 = smov 1024  }
 0x9cd   : > { %s3297_s11 = smov 32  }
 0x9ce   : > { %3007 = dma.vmem_to_hbm [thread:$0]  (%p5225_p6), %s4903_s23, 1024, %s4911_s26, %s4918_s19, %s3295_s17, %s3296_s12, %s3297_s11  }
 0x9cf PF: > { %s2743_s29 = sand.u32 1, %s3266_s13   ;;  %p5226_p11 = scmp.ne.s32.totalorder %s5074_s25, 0 }
 0x9d0   : > { %s2744_s20 = scalar_lea.sflag [#allocation5], %s2743_s29 }
 0x9d1   : > { %p3014_p12 = pnand %p2811_p9, %p5226_p11 }
 0x9d3   : > { %p3015_p13 = pneg %p3014_p12 }
 0x9d5   : > { %3261 = dma.done.wait (%p3015_p13), %s2744_s20, 1024  }
 0x9d6   : > { %3263 = vsyncadd (%p3015_p13), %s2744_s20, 4294966272  ;;  %s5227_s16 = sld [smem:[#allocation9_spill]]  ;;  %s5229_s13 = smov %s3270_s14 }
 0x9d7   : > { %s5228_s30 = sld [smem:[#allocation10_spill]]  ;;  %s5230_s14 = smov %s3274_s15 }
 0x9dc   : > { %p21_p0 = scmp.ge.s32.totalorder %s5227_s16, 4  }
 0x9dd   : > { %s5231_s15 = smov %s5228_s30 }
 0x9de   :  { %23 = sbr.rel (!%p21_p0) target bundleno = 4 (0x4), region = 136 }
 0x9e3   :  { %2749 = vsyncpa [#allocation4], 1 }
 0x9e4   :  { %2751 = vsyncpa [#allocation4 + $0x1], 1 }
 0x9e5   :  { %2752 = vsyncpa [#allocation5], 1 }
 0x9e6   :  { %2754 = vsyncpa [#allocation5 + $0x1], 1 }

</bundles_post_ra>
